<compile_context>
chip_gen: v7x
topology: tpu7x:2x2x1
jax: 0.10.0
libtpu: 0.0.40
codegen_flags: <defaults>
</compile_context>

<pallas_src>
import jax
import jax.numpy as jnp
from jax.experimental import pallas as pl
from jax.experimental.pallas import tpu as pltpu


def _fused_decoder_convs_kernel(x_ref, w1_ref, b1_ref, w2_ref, b2_ref, o_ref,
                                pad1_ref, pad2_ref):
    """One batch element: [3x3 conv + BN(folded) + ReLU] x 2, fully in VMEM.

    x_ref:   (1, H, W, Ccat)     upsampled+concatenated input (unpadded)
    w1_ref:  (9, Ccat, Cout)     conv1 weights (BN1 scale folded in), tap-major
    b1_ref:  (1, Cout)           folded BN1 shift
    w2_ref:  (9, Cout, Cout)     conv2 weights (BN2 scale folded in), tap-major
    b2_ref:  (1, Cout)           folded BN2 shift
    o_ref:   (1, H, W, Cout)
    pad1_ref: VMEM (H+2, W+2, Ccat)  scratch: zero-haloed conv1 input
    pad2_ref: VMEM (H+2, W+2, Cout)  scratch: zero-haloed conv2 input
    """
    H = o_ref.shape[1]
    W = o_ref.shape[2]
    Ccat = x_ref.shape[3]
    Cout = o_ref.shape[3]

    def conv3x3(src_ref, w_ref, cin):
        # 3x3 SAME conv as 9 shifted matmuls, accumulated in registers and
        # stored once (single f32 accumulator chain on the MXU result).
        acc = None
        for tap in range(9):
            dy, dx = tap // 3, tap % 3
            patch = src_ref[dy:dy + H, dx:dx + W, :].reshape(H * W, cin)
            part = jnp.dot(patch.astype(w_ref.dtype), w_ref[tap],
                           preferred_element_type=jnp.float32)
            acc = part if acc is None else acc + part
        return acc

    # ---- stage 1: build zero halo in VMEM (replaces wrapper jnp.pad) ----
    pad1_ref[...] = jnp.zeros_like(pad1_ref)
    pad1_ref[1:H + 1, 1:W + 1, :] = x_ref[0]

    y1 = conv3x3(pad1_ref, w1_ref, Ccat)
    y1 = jnp.maximum(y1 + b1_ref[...], 0.0)          # folded-BN shift + ReLU

    # ---- stage 2: conv1 output never leaves VMEM ----
    pad2_ref[...] = jnp.zeros_like(pad2_ref)
    pad2_ref[1:H + 1, 1:W + 1, :] = y1.reshape(H, W, Cout)

    y2 = conv3x3(pad2_ref, w2_ref, Cout)
    y2 = jnp.maximum(y2 + b2_ref[...], 0.0)

    o_ref[...] = y2.reshape(1, H, W, Cout).astype(o_ref.dtype)


def _fold_bn(gamma, beta, running_mean, running_var, eps=1e-5):
    scale = gamma / jnp.sqrt(running_var + eps)
    shift = beta - running_mean * scale
    return scale, shift


def decoder_block_forward(x_nchw, skip_nchw, params, matmul_dtype=jnp.float32):
    """Full DecoderBlock forward. Inputs/outputs NCHW to mirror PyTorch."""
    # NCHW -> NHWC
    x = jnp.transpose(x_nchw, (0, 2, 3, 1))
    # nearest 2x upsample (== F.interpolate(scale_factor=2, mode='nearest'))
    x = jnp.repeat(jnp.repeat(x, 2, axis=1), 2, axis=2)
    if skip_nchw is not None:
        skip = jnp.transpose(skip_nchw, (0, 2, 3, 1))
        x = jnp.concatenate([x, skip], axis=-1)       # channel concat
        # attention1 = Identity

    N, H, W, Ccat = x.shape
    Cout = params["w1"].shape[-1]

    # Fold BN (inference) scale into the conv weights; keep only the shift.
    s1, b1 = _fold_bn(params["bn1_gamma"], params["bn1_beta"],
                      params["bn1_mean"], params["bn1_var"])
    s2, b2 = _fold_bn(params["bn2_gamma"], params["bn2_beta"],
                      params["bn2_mean"], params["bn2_var"])
    w1 = (params["w1"] * s1[None, None, None, :]).reshape(9, Ccat, Cout)
    w2 = (params["w2"] * s2[None, None, None, :]).reshape(9, Cout, Cout)
    w1 = w1.astype(matmul_dtype)   # bf16 here doubles MXU rate on v6e/v7x
    w2 = w2.astype(matmul_dtype)
    b1 = b1.reshape(1, Cout).astype(jnp.float32)
    b2 = b2.reshape(1, Cout).astype(jnp.float32)
    x = x.astype(jnp.float32)

    out = pl.pallas_call(
        _fused_decoder_convs_kernel,
        out_shape=jax.ShapeDtypeStruct((N, H, W, Cout), jnp.float32),
        grid_spec=pltpu.PrefetchScalarGridSpec(
            num_scalar_prefetch=0,
            grid=(N,),
            in_specs=[
                pl.BlockSpec((1, H, W, Ccat), lambda n: (n, 0, 0, 0)),
                pl.BlockSpec((9, Ccat, Cout), lambda n: (0, 0, 0)),
                pl.BlockSpec((1, Cout), lambda n: (0, 0)),
                pl.BlockSpec((9, Cout, Cout), lambda n: (0, 0, 0)),
                pl.BlockSpec((1, Cout), lambda n: (0, 0)),
            ],
            out_specs=pl.BlockSpec((1, H, W, Cout), lambda n: (n, 0, 0, 0)),
            scratch_shapes=[
                pltpu.VMEM((H + 2, W + 2, Ccat), jnp.float32),
                pltpu.VMEM((H + 2, W + 2, Cout), jnp.float32),
            ],
        ),
        compiler_params=pltpu.CompilerParams(
            dimension_semantics=("parallel",),
            vmem_limit_bytes=64 * 1024 * 1024,
        ),
    )(x, w1, b1, w2, b2)

    # attention2 = Identity; NHWC -> NCHW
    return jnp.transpose(out, (0, 3, 1, 2))


def _reference_forward(x_nchw, skip_nchw, params):
    """Pure-JAX reference (lax.conv) for a correctness check."""
    x = jnp.transpose(x_nchw, (0, 2, 3, 1))
    x = jnp.repeat(jnp.repeat(x, 2, axis=1), 2, axis=2)
    if skip_nchw is not None:
        skip = jnp.transpose(skip_nchw, (0, 2, 3, 1))
        x = jnp.concatenate([x, skip], axis=-1)

    def cbr(z, w, gamma, beta, mean, var):
        y = jax.lax.conv_general_dilated(
            z, w, window_strides=(1, 1), padding="SAME",
            dimension_numbers=("NHWC", "HWIO", "NHWC"))
        y = (y - mean) / jnp.sqrt(var + 1e-5) * gamma + beta
        return jnp.maximum(y, 0.0)

    x = cbr(x, params["w1"], params["bn1_gamma"], params["bn1_beta"],
            params["bn1_mean"], params["bn1_var"])
    x = cbr(x, params["w2"], params["bn2_gamma"], params["bn2_beta"],
            params["bn2_mean"], params["bn2_var"])
    return jnp.transpose(x, (0, 3, 1, 2))


if __name__ == "__main__":
    # Small shapes consistent with a UNet decoder block:
    #   x:    (N, in_channels, H, W)        = (2, 6, 8, 8)
    #   skip: (N, skip_channels, 2H, 2W)    = (2, 2, 16, 16)
    #   out:  (N, out_channels, 2H, 2W)     = (2, 8, 16, 16)
    N, Cin, Cskip, Cout, H, W = 2, 6, 2, 8, 8, 8
    Ccat = Cin + Cskip

    key = jax.random.PRNGKey(0)
    ks = jax.random.split(key, 12)

    x = jax.random.normal(ks[0], (N, Cin, H, W), jnp.float32)
    skip = jax.random.normal(ks[1], (N, Cskip, 2 * H, 2 * W), jnp.float32)

    params = {
        # conv weights stored directly in HWIO (3, 3, Cin, Cout)
        "w1": 0.1 * jax.random.normal(ks[2], (3, 3, Ccat, Cout), jnp.float32),
        "w2": 0.1 * jax.random.normal(ks[3], (3, 3, Cout, Cout), jnp.float32),
        "bn1_gamma": jax.random.uniform(ks[4], (Cout,), jnp.float32, 0.5, 1.5),
        "bn1_beta": 0.1 * jax.random.normal(ks[5], (Cout,), jnp.float32),
        "bn1_mean": 0.1 * jax.random.normal(ks[6], (Cout,), jnp.float32),
        "bn1_var": jax.random.uniform(ks[7], (Cout,), jnp.float32, 0.5, 1.5),
        "bn2_gamma": jax.random.uniform(ks[8], (Cout,), jnp.float32, 0.5, 1.5),
        "bn2_beta": 0.1 * jax.random.normal(ks[9], (Cout,), jnp.float32),
        "bn2_mean": 0.1 * jax.random.normal(ks[10], (Cout,), jnp.float32),
        "bn2_var": jax.random.uniform(ks[11], (Cout,), jnp.float32, 0.5, 1.5),
    }

    out = decoder_block_forward(x, skip, params)
    out = jax.block_until_ready(out)
    assert out.shape == (N, Cout, 2 * H, 2 * W), out.shape

    ref = jax.block_until_ready(_reference_forward(x, skip, params))
    err = float(jnp.max(jnp.abs(out - ref)))
    assert err < 1e-3, err

    print("KERNEL_OK")
</pallas_src>

<mosaic_0001>
module attributes {stable_mosaic.version = 11 : i64} {
  func.func @_fused_decoder_convs_kernel(%arg0: i32, %arg1: memref<1x16x16x8xf32, #tpu.memory_space<vmem>>, %arg2: memref<9x8x8xf32, #tpu.memory_space<vmem>>, %arg3: memref<1x8xf32, #tpu.memory_space<vmem>>, %arg4: memref<9x8x8xf32, #tpu.memory_space<vmem>>, %arg5: memref<1x8xf32, #tpu.memory_space<vmem>>, %arg6: memref<1x16x16x8xf32, #tpu.memory_space<vmem>>, %arg7: memref<18x18x8xf32, #tpu.memory_space<vmem>>, %arg8: memref<18x18x8xf32, #tpu.memory_space<vmem>>) attributes {dimension_semantics = [#tpu.dimension_semantics<parallel>], iteration_bounds = array<i64: 2>, scalar_prefetch = 0 : i64, scratch_operands = 2 : i64, tpu.core_type = #tpu.core_type<tc>, window_params = [{transform_indices = @transform_0, window_bounds = array<i64: 1, 16, 16, 8>}, {pipeline_mode = #tpu.pipeline_mode<synchronous>, transform_indices = @transform_1, window_bounds = array<i64: 9, 8, 8>}, {pipeline_mode = #tpu.pipeline_mode<synchronous>, transform_indices = @transform_2, window_bounds = array<i64: 1, 8>}, {pipeline_mode = #tpu.pipeline_mode<synchronous>, transform_indices = @transform_3, window_bounds = array<i64: 9, 8, 8>}, {pipeline_mode = #tpu.pipeline_mode<synchronous>, transform_indices = @transform_4, window_bounds = array<i64: 1, 8>}, {transform_indices = @transform_5, window_bounds = array<i64: 1, 16, 16, 8>}]} {
    %cst = arith.constant 0.000000e+00 : f32
    %0 = vector.broadcast %cst : f32 to vector<18x18x8xf32>
    %c0 = arith.constant 0 : index
    %c0_0 = arith.constant 0 : index
    %c0_1 = arith.constant 0 : index
    %1 = vector.load %arg7[%c0, %c0_0, %c0_1] : memref<18x18x8xf32, #tpu.memory_space<vmem>>, vector<18x18x8xf32>
    tpu.vector_store %arg7[%c0, %c0_0, %c0_1], %0 {strides = array<i32>} : memref<18x18x8xf32, #tpu.memory_space<vmem>>, vector<18x18x8xf32>,
    %c0_2 = arith.constant 0 : index
    %c0_3 = arith.constant 0 : index
    %c0_4 = arith.constant 0 : index
    %c0_5 = arith.constant 0 : index
    %2 = vector.load %arg1[%c0_2, %c0_3, %c0_4, %c0_5] : memref<1x16x16x8xf32, #tpu.memory_space<vmem>>, vector<1x16x16x8xf32>
    %3 = vector.shape_cast %2 : vector<1x16x16x8xf32> to vector<16x16x8xf32>
    %c1 = arith.constant 1 : index
    %c1_6 = arith.constant 1 : index
    %c0_7 = arith.constant 0 : index
    %4 = vector.load %arg7[%c1, %c1_6, %c0_7] : memref<18x18x8xf32, #tpu.memory_space<vmem>>, vector<16x16x8xf32>
    tpu.vector_store %arg7[%c1, %c1_6, %c0_7], %3 {strides = array<i32>} : memref<18x18x8xf32, #tpu.memory_space<vmem>>, vector<16x16x8xf32>,
    %c0_8 = arith.constant 0 : index
    %c0_9 = arith.constant 0 : index
    %c0_10 = arith.constant 0 : index
    %5 = vector.load %arg7[%c0_8, %c0_9, %c0_10] : memref<18x18x8xf32, #tpu.memory_space<vmem>>, vector<16x16x8xf32>
    %6 = vector.shape_cast %5 : vector<16x16x8xf32> to vector<256x8xf32>
    %c0_11 = arith.constant 0 : index
    %c0_12 = arith.constant 0 : index
    %c0_13 = arith.constant 0 : index
    %7 = vector.load %arg2[%c0_11, %c0_12, %c0_13] : memref<9x8x8xf32, #tpu.memory_space<vmem>>, vector<1x8x8xf32>
    %8 = vector.shape_cast %7 : vector<1x8x8xf32> to vector<8x8xf32>
    %cst_14 = arith.constant dense<0.000000e+00> : vector<256x8xf32>
    %9 = tpu.matmul %6, %8, %cst_14 {dimension_numbers = #tpu.dot_dimension_numbers<[1], [0], [0], [1], [0, 0, 1, 1], [], []>} : vector<256x8xf32>, vector<8x8xf32>, vector<256x8xf32> -> vector<256x8xf32>
    %c0_15 = arith.constant 0 : index
    %c1_16 = arith.constant 1 : index
    %c0_17 = arith.constant 0 : index
    %10 = vector.load %arg7[%c0_15, %c1_16, %c0_17] : memref<18x18x8xf32, #tpu.memory_space<vmem>>, vector<16x16x8xf32>
    %11 = vector.shape_cast %10 : vector<16x16x8xf32> to vector<256x8xf32>
    %c1_18 = arith.constant 1 : index
    %c0_19 = arith.constant 0 : index
    %c0_20 = arith.constant 0 : index
    %12 = vector.load %arg2[%c1_18, %c0_19, %c0_20] : memref<9x8x8xf32, #tpu.memory_space<vmem>>, vector<1x8x8xf32>
    %13 = vector.shape_cast %12 : vector<1x8x8xf32> to vector<8x8xf32>
    %cst_21 = arith.constant dense<0.000000e+00> : vector<256x8xf32>
    %14 = tpu.matmul %11, %13, %cst_21 {dimension_numbers = #tpu.dot_dimension_numbers<[1], [0], [0], [1], [0, 0, 1, 1], [], []>} : vector<256x8xf32>, vector<8x8xf32>, vector<256x8xf32> -> vector<256x8xf32>
    %15 = arith.addf %9, %14 : vector<256x8xf32>
    %c0_22 = arith.constant 0 : index
    %c2 = arith.constant 2 : index
    %c0_23 = arith.constant 0 : index
    %16 = vector.load %arg7[%c0_22, %c2, %c0_23] : memref<18x18x8xf32, #tpu.memory_space<vmem>>, vector<16x16x8xf32>
    %17 = vector.shape_cast %16 : vector<16x16x8xf32> to vector<256x8xf32>
    %c2_24 = arith.constant 2 : index
    %c0_25 = arith.constant 0 : index
    %c0_26 = arith.constant 0 : index
    %18 = vector.load %arg2[%c2_24, %c0_25, %c0_26] : memref<9x8x8xf32, #tpu.memory_space<vmem>>, vector<1x8x8xf32>
    %19 = vector.shape_cast %18 : vector<1x8x8xf32> to vector<8x8xf32>
    %cst_27 = arith.constant dense<0.000000e+00> : vector<256x8xf32>
    %20 = tpu.matmul %17, %19, %cst_27 {dimension_numbers = #tpu.dot_dimension_numbers<[1], [0], [0], [1], [0, 0, 1, 1], [], []>} : vector<256x8xf32>, vector<8x8xf32>, vector<256x8xf32> -> vector<256x8xf32>
    %21 = arith.addf %15, %20 : vector<256x8xf32>
    %c1_28 = arith.constant 1 : index
    %c0_29 = arith.constant 0 : index
    %c0_30 = arith.constant 0 : index
    %22 = vector.load %arg7[%c1_28, %c0_29, %c0_30] : memref<18x18x8xf32, #tpu.memory_space<vmem>>, vector<16x16x8xf32>
    %23 = vector.shape_cast %22 : vector<16x16x8xf32> to vector<256x8xf32>
    %c3 = arith.constant 3 : index
    %c0_31 = arith.constant 0 : index
    %c0_32 = arith.constant 0 : index
    %24 = vector.load %arg2[%c3, %c0_31, %c0_32] : memref<9x8x8xf32, #tpu.memory_space<vmem>>, vector<1x8x8xf32>
    %25 = vector.shape_cast %24 : vector<1x8x8xf32> to vector<8x8xf32>
    %cst_33 = arith.constant dense<0.000000e+00> : vector<256x8xf32>
    %26 = tpu.matmul %23, %25, %cst_33 {dimension_numbers = #tpu.dot_dimension_numbers<[1], [0], [0], [1], [0, 0, 1, 1], [], []>} : vector<256x8xf32>, vector<8x8xf32>, vector<256x8xf32> -> vector<256x8xf32>
    %27 = arith.addf %21, %26 : vector<256x8xf32>
    %c1_34 = arith.constant 1 : index
    %c1_35 = arith.constant 1 : index
    %c0_36 = arith.constant 0 : index
    %28 = vector.load %arg7[%c1_34, %c1_35, %c0_36] : memref<18x18x8xf32, #tpu.memory_space<vmem>>, vector<16x16x8xf32>
    %29 = vector.shape_cast %28 : vector<16x16x8xf32> to vector<256x8xf32>
    %c4 = arith.constant 4 : index
    %c0_37 = arith.constant 0 : index
    %c0_38 = arith.constant 0 : index
    %30 = vector.load %arg2[%c4, %c0_37, %c0_38] : memref<9x8x8xf32, #tpu.memory_space<vmem>>, vector<1x8x8xf32>
    %31 = vector.shape_cast %30 : vector<1x8x8xf32> to vector<8x8xf32>
    %cst_39 = arith.constant dense<0.000000e+00> : vector<256x8xf32>
    %32 = tpu.matmul %29, %31, %cst_39 {dimension_numbers = #tpu.dot_dimension_numbers<[1], [0], [0], [1], [0, 0, 1, 1], [], []>} : vector<256x8xf32>, vector<8x8xf32>, vector<256x8xf32> -> vector<256x8xf32>
    %33 = arith.addf %27, %32 : vector<256x8xf32>
    %c1_40 = arith.constant 1 : index
    %c2_41 = arith.constant 2 : index
    %c0_42 = arith.constant 0 : index
    %34 = vector.load %arg7[%c1_40, %c2_41, %c0_42] : memref<18x18x8xf32, #tpu.memory_space<vmem>>, vector<16x16x8xf32>
    %35 = vector.shape_cast %34 : vector<16x16x8xf32> to vector<256x8xf32>
    %c5 = arith.constant 5 : index
    %c0_43 = arith.constant 0 : index
    %c0_44 = arith.constant 0 : index
    %36 = vector.load %arg2[%c5, %c0_43, %c0_44] : memref<9x8x8xf32, #tpu.memory_space<vmem>>, vector<1x8x8xf32>
    %37 = vector.shape_cast %36 : vector<1x8x8xf32> to vector<8x8xf32>
    %cst_45 = arith.constant dense<0.000000e+00> : vector<256x8xf32>
    %38 = tpu.matmul %35, %37, %cst_45 {dimension_numbers = #tpu.dot_dimension_numbers<[1], [0], [0], [1], [0, 0, 1, 1], [], []>} : vector<256x8xf32>, vector<8x8xf32>, vector<256x8xf32> -> vector<256x8xf32>
    %39 = arith.addf %33, %38 : vector<256x8xf32>
    %c2_46 = arith.constant 2 : index
    %c0_47 = arith.constant 0 : index
    %c0_48 = arith.constant 0 : index
    %40 = vector.load %arg7[%c2_46, %c0_47, %c0_48] : memref<18x18x8xf32, #tpu.memory_space<vmem>>, vector<16x16x8xf32>
    %41 = vector.shape_cast %40 : vector<16x16x8xf32> to vector<256x8xf32>
    %c6 = arith.constant 6 : index
    %c0_49 = arith.constant 0 : index
    %c0_50 = arith.constant 0 : index
    %42 = vector.load %arg2[%c6, %c0_49, %c0_50] : memref<9x8x8xf32, #tpu.memory_space<vmem>>, vector<1x8x8xf32>
    %43 = vector.shape_cast %42 : vector<1x8x8xf32> to vector<8x8xf32>
    %cst_51 = arith.constant dense<0.000000e+00> : vector<256x8xf32>
    %44 = tpu.matmul %41, %43, %cst_51 {dimension_numbers = #tpu.dot_dimension_numbers<[1], [0], [0], [1], [0, 0, 1, 1], [], []>} : vector<256x8xf32>, vector<8x8xf32>, vector<256x8xf32> -> vector<256x8xf32>
    %45 = arith.addf %39, %44 : vector<256x8xf32>
    %c2_52 = arith.constant 2 : index
    %c1_53 = arith.constant 1 : index
    %c0_54 = arith.constant 0 : index
    %46 = vector.load %arg7[%c2_52, %c1_53, %c0_54] : memref<18x18x8xf32, #tpu.memory_space<vmem>>, vector<16x16x8xf32>
    %47 = vector.shape_cast %46 : vector<16x16x8xf32> to vector<256x8xf32>
    %c7 = arith.constant 7 : index
    %c0_55 = arith.constant 0 : index
    %c0_56 = arith.constant 0 : index
    %48 = vector.load %arg2[%c7, %c0_55, %c0_56] : memref<9x8x8xf32, #tpu.memory_space<vmem>>, vector<1x8x8xf32>
    %49 = vector.shape_cast %48 : vector<1x8x8xf32> to vector<8x8xf32>
    %cst_57 = arith.constant dense<0.000000e+00> : vector<256x8xf32>
    %50 = tpu.matmul %47, %49, %cst_57 {dimension_numbers = #tpu.dot_dimension_numbers<[1], [0], [0], [1], [0, 0, 1, 1], [], []>} : vector<256x8xf32>, vector<8x8xf32>, vector<256x8xf32> -> vector<256x8xf32>
    %51 = arith.addf %45, %50 : vector<256x8xf32>
    %c2_58 = arith.constant 2 : index
    %c2_59 = arith.constant 2 : index
    %c0_60 = arith.constant 0 : index
    %52 = vector.load %arg7[%c2_58, %c2_59, %c0_60] : memref<18x18x8xf32, #tpu.memory_space<vmem>>, vector<16x16x8xf32>
    %53 = vector.shape_cast %52 : vector<16x16x8xf32> to vector<256x8xf32>
    %c8 = arith.constant 8 : index
    %c0_61 = arith.constant 0 : index
    %c0_62 = arith.constant 0 : index
    %54 = vector.load %arg2[%c8, %c0_61, %c0_62] : memref<9x8x8xf32, #tpu.memory_space<vmem>>, vector<1x8x8xf32>
    %55 = vector.shape_cast %54 : vector<1x8x8xf32> to vector<8x8xf32>
    %cst_63 = arith.constant dense<0.000000e+00> : vector<256x8xf32>
    %56 = tpu.matmul %53, %55, %cst_63 {dimension_numbers = #tpu.dot_dimension_numbers<[1], [0], [0], [1], [0, 0, 1, 1], [], []>} : vector<256x8xf32>, vector<8x8xf32>, vector<256x8xf32> -> vector<256x8xf32>
    %57 = arith.addf %51, %56 : vector<256x8xf32>
    %c0_64 = arith.constant 0 : index
    %c0_65 = arith.constant 0 : index
    %58 = vector.load %arg3[%c0_64, %c0_65] : memref<1x8xf32, #tpu.memory_space<vmem>>, vector<1x8xf32>
    %59 = vector.broadcast %58 : vector<1x8xf32> to vector<256x8xf32>
    %60 = arith.addf %57, %59 : vector<256x8xf32>
    %cst_66 = arith.constant 0.000000e+00 : f32
    %61 = vector.broadcast %cst_66 : f32 to vector<256x8xf32>
    %62 = arith.maximumf %60, %61 : vector<256x8xf32>
    %cst_67 = arith.constant 0.000000e+00 : f32
    %63 = vector.broadcast %cst_67 : f32 to vector<18x18x8xf32>
    %c0_68 = arith.constant 0 : index
    %c0_69 = arith.constant 0 : index
    %c0_70 = arith.constant 0 : index
    %64 = vector.load %arg8[%c0_68, %c0_69, %c0_70] : memref<18x18x8xf32, #tpu.memory_space<vmem>>, vector<18x18x8xf32>
    tpu.vector_store %arg8[%c0_68, %c0_69, %c0_70], %63 {strides = array<i32>} : memref<18x18x8xf32, #tpu.memory_space<vmem>>, vector<18x18x8xf32>,
    %65 = vector.shape_cast %62 : vector<256x8xf32> to vector<16x16x8xf32>
    %c1_71 = arith.constant 1 : index
    %c1_72 = arith.constant 1 : index
    %c0_73 = arith.constant 0 : index
    %66 = vector.load %arg8[%c1_71, %c1_72, %c0_73] : memref<18x18x8xf32, #tpu.memory_space<vmem>>, vector<16x16x8xf32>
    tpu.vector_store %arg8[%c1_71, %c1_72, %c0_73], %65 {strides = array<i32>} : memref<18x18x8xf32, #tpu.memory_space<vmem>>, vector<16x16x8xf32>,
    %c0_74 = arith.constant 0 : index
    %c0_75 = arith.constant 0 : index
    %c0_76 = arith.constant 0 : index
    %67 = vector.load %arg8[%c0_74, %c0_75, %c0_76] : memref<18x18x8xf32, #tpu.memory_space<vmem>>, vector<16x16x8xf32>
    %68 = vector.shape_cast %67 : vector<16x16x8xf32> to vector<256x8xf32>
    %c0_77 = arith.constant 0 : index
    %c0_78 = arith.constant 0 : index
    %c0_79 = arith.constant 0 : index
    %69 = vector.load %arg4[%c0_77, %c0_78, %c0_79] : memref<9x8x8xf32, #tpu.memory_space<vmem>>, vector<1x8x8xf32>
    %70 = vector.shape_cast %69 : vector<1x8x8xf32> to vector<8x8xf32>
    %cst_80 = arith.constant dense<0.000000e+00> : vector<256x8xf32>
    %71 = tpu.matmul %68, %70, %cst_80 {dimension_numbers = #tpu.dot_dimension_numbers<[1], [0], [0], [1], [0, 0, 1, 1], [], []>} : vector<256x8xf32>, vector<8x8xf32>, vector<256x8xf32> -> vector<256x8xf32>
    %c0_81 = arith.constant 0 : index
    %c1_82 = arith.constant 1 : index
    %c0_83 = arith.constant 0 : index
    %72 = vector.load %arg8[%c0_81, %c1_82, %c0_83] : memref<18x18x8xf32, #tpu.memory_space<vmem>>, vector<16x16x8xf32>
    %73 = vector.shape_cast %72 : vector<16x16x8xf32> to vector<256x8xf32>
    %c1_84 = arith.constant 1 : index
    %c0_85 = arith.constant 0 : index
    %c0_86 = arith.constant 0 : index
    %74 = vector.load %arg4[%c1_84, %c0_85, %c0_86] : memref<9x8x8xf32, #tpu.memory_space<vmem>>, vector<1x8x8xf32>
    %75 = vector.shape_cast %74 : vector<1x8x8xf32> to vector<8x8xf32>
    %cst_87 = arith.constant dense<0.000000e+00> : vector<256x8xf32>
    %76 = tpu.matmul %73, %75, %cst_87 {dimension_numbers = #tpu.dot_dimension_numbers<[1], [0], [0], [1], [0, 0, 1, 1], [], []>} : vector<256x8xf32>, vector<8x8xf32>, vector<256x8xf32> -> vector<256x8xf32>
    %77 = arith.addf %71, %76 : vector<256x8xf32>
    %c0_88 = arith.constant 0 : index
    %c2_89 = arith.constant 2 : index
    %c0_90 = arith.constant 0 : index
    %78 = vector.load %arg8[%c0_88, %c2_89, %c0_90] : memref<18x18x8xf32, #tpu.memory_space<vmem>>, vector<16x16x8xf32>
    %79 = vector.shape_cast %78 : vector<16x16x8xf32> to vector<256x8xf32>
    %c2_91 = arith.constant 2 : index
    %c0_92 = arith.constant 0 : index
    %c0_93 = arith.constant 0 : index
    %80 = vector.load %arg4[%c2_91, %c0_92, %c0_93] : memref<9x8x8xf32, #tpu.memory_space<vmem>>, vector<1x8x8xf32>
    %81 = vector.shape_cast %80 : vector<1x8x8xf32> to vector<8x8xf32>
    %cst_94 = arith.constant dense<0.000000e+00> : vector<256x8xf32>
    %82 = tpu.matmul %79, %81, %cst_94 {dimension_numbers = #tpu.dot_dimension_numbers<[1], [0], [0], [1], [0, 0, 1, 1], [], []>} : vector<256x8xf32>, vector<8x8xf32>, vector<256x8xf32> -> vector<256x8xf32>
    %83 = arith.addf %77, %82 : vector<256x8xf32>
    %c1_95 = arith.constant 1 : index
    %c0_96 = arith.constant 0 : index
    %c0_97 = arith.constant 0 : index
    %84 = vector.load %arg8[%c1_95, %c0_96, %c0_97] : memref<18x18x8xf32, #tpu.memory_space<vmem>>, vector<16x16x8xf32>
    %85 = vector.shape_cast %84 : vector<16x16x8xf32> to vector<256x8xf32>
    %c3_98 = arith.constant 3 : index
    %c0_99 = arith.constant 0 : index
    %c0_100 = arith.constant 0 : index
    %86 = vector.load %arg4[%c3_98, %c0_99, %c0_100] : memref<9x8x8xf32, #tpu.memory_space<vmem>>, vector<1x8x8xf32>
    %87 = vector.shape_cast %86 : vector<1x8x8xf32> to vector<8x8xf32>
    %cst_101 = arith.constant dense<0.000000e+00> : vector<256x8xf32>
    %88 = tpu.matmul %85, %87, %cst_101 {dimension_numbers = #tpu.dot_dimension_numbers<[1], [0], [0], [1], [0, 0, 1, 1], [], []>} : vector<256x8xf32>, vector<8x8xf32>, vector<256x8xf32> -> vector<256x8xf32>
    %89 = arith.addf %83, %88 : vector<256x8xf32>
    %c1_102 = arith.constant 1 : index
    %c1_103 = arith.constant 1 : index
    %c0_104 = arith.constant 0 : index
    %90 = vector.load %arg8[%c1_102, %c1_103, %c0_104] : memref<18x18x8xf32, #tpu.memory_space<vmem>>, vector<16x16x8xf32>
    %91 = vector.shape_cast %90 : vector<16x16x8xf32> to vector<256x8xf32>
    %c4_105 = arith.constant 4 : index
    %c0_106 = arith.constant 0 : index
    %c0_107 = arith.constant 0 : index
    %92 = vector.load %arg4[%c4_105, %c0_106, %c0_107] : memref<9x8x8xf32, #tpu.memory_space<vmem>>, vector<1x8x8xf32>
    %93 = vector.shape_cast %92 : vector<1x8x8xf32> to vector<8x8xf32>
    %cst_108 = arith.constant dense<0.000000e+00> : vector<256x8xf32>
    %94 = tpu.matmul %91, %93, %cst_108 {dimension_numbers = #tpu.dot_dimension_numbers<[1], [0], [0], [1], [0, 0, 1, 1], [], []>} : vector<256x8xf32>, vector<8x8xf32>, vector<256x8xf32> -> vector<256x8xf32>
    %95 = arith.addf %89, %94 : vector<256x8xf32>
    %c1_109 = arith.constant 1 : index
    %c2_110 = arith.constant 2 : index
    %c0_111 = arith.constant 0 : index
    %96 = vector.load %arg8[%c1_109, %c2_110, %c0_111] : memref<18x18x8xf32, #tpu.memory_space<vmem>>, vector<16x16x8xf32>
    %97 = vector.shape_cast %96 : vector<16x16x8xf32> to vector<256x8xf32>
    %c5_112 = arith.constant 5 : index
    %c0_113 = arith.constant 0 : index
    %c0_114 = arith.constant 0 : index
    %98 = vector.load %arg4[%c5_112, %c0_113, %c0_114] : memref<9x8x8xf32, #tpu.memory_space<vmem>>, vector<1x8x8xf32>
    %99 = vector.shape_cast %98 : vector<1x8x8xf32> to vector<8x8xf32>
    %cst_115 = arith.constant dense<0.000000e+00> : vector<256x8xf32>
    %100 = tpu.matmul %97, %99, %cst_115 {dimension_numbers = #tpu.dot_dimension_numbers<[1], [0], [0], [1], [0, 0, 1, 1], [], []>} : vector<256x8xf32>, vector<8x8xf32>, vector<256x8xf32> -> vector<256x8xf32>
    %101 = arith.addf %95, %100 : vector<256x8xf32>
    %c2_116 = arith.constant 2 : index
    %c0_117 = arith.constant 0 : index
    %c0_118 = arith.constant 0 : index
    %102 = vector.load %arg8[%c2_116, %c0_117, %c0_118] : memref<18x18x8xf32, #tpu.memory_space<vmem>>, vector<16x16x8xf32>
    %103 = vector.shape_cast %102 : vector<16x16x8xf32> to vector<256x8xf32>
    %c6_119 = arith.constant 6 : index
    %c0_120 = arith.constant 0 : index
    %c0_121 = arith.constant 0 : index
    %104 = vector.load %arg4[%c6_119, %c0_120, %c0_121] : memref<9x8x8xf32, #tpu.memory_space<vmem>>, vector<1x8x8xf32>
    %105 = vector.shape_cast %104 : vector<1x8x8xf32> to vector<8x8xf32>
    %cst_122 = arith.constant dense<0.000000e+00> : vector<256x8xf32>
    %106 = tpu.matmul %103, %105, %cst_122 {dimension_numbers = #tpu.dot_dimension_numbers<[1], [0], [0], [1], [0, 0, 1, 1], [], []>} : vector<256x8xf32>, vector<8x8xf32>, vector<256x8xf32> -> vector<256x8xf32>
    %107 = arith.addf %101, %106 : vector<256x8xf32>
    %c2_123 = arith.constant 2 : index
    %c1_124 = arith.constant 1 : index
    %c0_125 = arith.constant 0 : index
    %108 = vector.load %arg8[%c2_123, %c1_124, %c0_125] : memref<18x18x8xf32, #tpu.memory_space<vmem>>, vector<16x16x8xf32>
    %109 = vector.shape_cast %108 : vector<16x16x8xf32> to vector<256x8xf32>
    %c7_126 = arith.constant 7 : index
    %c0_127 = arith.constant 0 : index
    %c0_128 = arith.constant 0 : index
    %110 = vector.load %arg4[%c7_126, %c0_127, %c0_128] : memref<9x8x8xf32, #tpu.memory_space<vmem>>, vector<1x8x8xf32>
    %111 = vector.shape_cast %110 : vector<1x8x8xf32> to vector<8x8xf32>
    %cst_129 = arith.constant dense<0.000000e+00> : vector<256x8xf32>
    %112 = tpu.matmul %109, %111, %cst_129 {dimension_numbers = #tpu.dot_dimension_numbers<[1], [0], [0], [1], [0, 0, 1, 1], [], []>} : vector<256x8xf32>, vector<8x8xf32>, vector<256x8xf32> -> vector<256x8xf32>
    %113 = arith.addf %107, %112 : vector<256x8xf32>
    %c2_130 = arith.constant 2 : index
    %c2_131 = arith.constant 2 : index
    %c0_132 = arith.constant 0 : index
    %114 = vector.load %arg8[%c2_130, %c2_131, %c0_132] : memref<18x18x8xf32, #tpu.memory_space<vmem>>, vector<16x16x8xf32>
    %115 = vector.shape_cast %114 : vector<16x16x8xf32> to vector<256x8xf32>
    %c8_133 = arith.constant 8 : index
    %c0_134 = arith.constant 0 : index
    %c0_135 = arith.constant 0 : index
    %116 = vector.load %arg4[%c8_133, %c0_134, %c0_135] : memref<9x8x8xf32, #tpu.memory_space<vmem>>, vector<1x8x8xf32>
    %117 = vector.shape_cast %116 : vector<1x8x8xf32> to vector<8x8xf32>
    %cst_136 = arith.constant dense<0.000000e+00> : vector<256x8xf32>
    %118 = tpu.matmul %115, %117, %cst_136 {dimension_numbers = #tpu.dot_dimension_numbers<[1], [0], [0], [1], [0, 0, 1, 1], [], []>} : vector<256x8xf32>, vector<8x8xf32>, vector<256x8xf32> -> vector<256x8xf32>
    %119 = arith.addf %113, %118 : vector<256x8xf32>
    %c0_137 = arith.constant 0 : index
    %c0_138 = arith.constant 0 : index
    %120 = vector.load %arg5[%c0_137, %c0_138] : memref<1x8xf32, #tpu.memory_space<vmem>>, vector<1x8xf32>
    %121 = vector.broadcast %120 : vector<1x8xf32> to vector<256x8xf32>
    %122 = arith.addf %119, %121 : vector<256x8xf32>
    %cst_139 = arith.constant 0.000000e+00 : f32
    %123 = vector.broadcast %cst_139 : f32 to vector<256x8xf32>
    %124 = arith.maximumf %122, %123 : vector<256x8xf32>
    %125 = vector.shape_cast %124 : vector<256x8xf32> to vector<1x16x16x8xf32>
    %c0_140 = arith.constant 0 : index
    %c0_141 = arith.constant 0 : index
    %c0_142 = arith.constant 0 : index
    %c0_143 = arith.constant 0 : index
    %126 = vector.load %arg6[%c0_140, %c0_141, %c0_142, %c0_143] : memref<1x16x16x8xf32, #tpu.memory_space<vmem>>, vector<1x16x16x8xf32>
    tpu.vector_store %arg6[%c0_140, %c0_141, %c0_142, %c0_143], %125 {strides = array<i32>} : memref<1x16x16x8xf32, #tpu.memory_space<vmem>>, vector<1x16x16x8xf32>,
    return
  }
  func.func @transform_0(%arg0: i32) -> (i32, i32, i32, i32) {
    %c0_i32 = arith.constant 0 : i32
    %c0_i32_0 = arith.constant 0 : i32
    %c0_i32_1 = arith.constant 0 : i32
    %c0_i32_2 = arith.constant 0 : i32
    return %arg0, %c0_i32, %c0_i32_0, %c0_i32_1 : i32, i32, i32, i32
  }
  func.func @transform_1(%arg0: i32) -> (i32, i32, i32) {
    %c0_i32 = arith.constant 0 : i32
    %c0_i32_0 = arith.constant 0 : i32
    %c0_i32_1 = arith.constant 0 : i32
    %c0_i32_2 = arith.constant 0 : i32
    return %c0_i32, %c0_i32_0, %c0_i32_1 : i32, i32, i32
  }
  func.func @transform_2(%arg0: i32) -> (i32, i32) {
    %c0_i32 = arith.constant 0 : i32
    %c0_i32_0 = arith.constant 0 : i32
    %c0_i32_1 = arith.constant 0 : i32
    return %c0_i32, %c0_i32_0 : i32, i32
  }
  func.func @transform_3(%arg0: i32) -> (i32, i32, i32) {
    %c0_i32 = arith.constant 0 : i32
    %c0_i32_0 = arith.constant 0 : i32
    %c0_i32_1 = arith.constant 0 : i32
    %c0_i32_2 = arith.constant 0 : i32
    return %c0_i32, %c0_i32_0, %c0_i32_1 : i32, i32, i32
  }
  func.func @transform_4(%arg0: i32) -> (i32, i32) {
    %c0_i32 = arith.constant 0 : i32
    %c0_i32_0 = arith.constant 0 : i32
    %c0_i32_1 = arith.constant 0 : i32
    return %c0_i32, %c0_i32_0 : i32, i32
  }
  func.func @transform_5(%arg0: i32) -> (i32, i32, i32, i32) {
    %c0_i32 = arith.constant 0 : i32
    %c0_i32_0 = arith.constant 0 : i32
    %c0_i32_1 = arith.constant 0 : i32
    %c0_i32_2 = arith.constant 0 : i32
    return %arg0, %c0_i32, %c0_i32_0, %c0_i32_1 : i32, i32, i32, i32
  }
}

</mosaic_0001>

<bundles_post_ra>
// kernel: tpu_custom_call.1
= control target key start
LH: loop header
LB: loop body
LE: loop exit
PB: predicated region body
PF: predicated region fallthrough
CT: control target
= control target key end

     0   :  { %10 = vsyncpa [#allocation5], 0  ;;  %s12858_s0 = inlined_call_operand.hbm [shape: f32[2,16,16,8], index: 0, kind: input, shape index: {}]   ;;  %s12859_s1 = inlined_call_operand.hbm [shape: f32[9,8,8], index: 1, kind: input, shape index: {}]   ;;  %s12860_s2 = inlined_call_operand.hbm [shape: f32[1,8], index: 2, kind: input, shape index: {}]   ;;  %s12861_s3 = inlined_call_operand.hbm [shape: f32[9,8,8], index: 3, kind: input, shape index: {}]   ;;  %s12862_s4 = inlined_call_operand.hbm [shape: f32[1,8], index: 4, kind: input, shape index: {}]   ;;  %s12863_s5 = inlined_call_operand.hbm [shape: f32[2,16,16,8], index: 5, kind: output, shape index: {}]  }
   0x1   :  { %12 = vsyncpa [#allocation5 + $0x1], 0 }
   0x2   :  { %13 = vsyncpa [#allocation8], 0 }
   0x3   :  { %14 = vsyncpa [#allocation11], 0 }
   0x4   :  { %15 = vsyncpa [#allocation6], 0 }
   0x5   :  { %17 = vsyncpa [#allocation6 + $0x1], 0  ;;  %s10601_s18 = smov 0   ;;  %s10603_s19 = smov 0  }
   0x6   :  { %s10605_s20 = smov 0   ;;  %s10607_s21 = smov 0  }
   0x7 LB: > { %s10622_s22 = sadd.s32 4294967295, %s10558_s21   ;;  %s7642_s23 = sadd.s32 4294967294, %s10558_s21   ;;  %s10558_s21 = sphi %s10607_s21, %s13158_s21   ;;  %s10554_s20 = sphi %s10605_s20, %s13157_s20   ;;  %s10550_s19 = sphi %s10603_s19, %s13156_s19   ;;  %s10546_s18 = sphi %s10601_s18, %s13155_s18  }
   0x8   : > { %p43_p0 = scmp.ne.s32.totalorder %s10550_s19, %s10546_s18  ;;  %p12864_p1 = scmp.eq.s32.totalorder %s10622_s22, 0 }
   0x9   : > { %p157_p3 = scmp.eq.s32.totalorder %s7642_s23, 1  ;;  %p7643_p5 = scmp.ge.s32.totalorder %s10558_s21, 1 }
   0xa   : > { %p10631_p4 = por %p12864_p1, %p43_p0  ;;  %p164_p7 = scmp.lt.s32.totalorder %s10558_s21, 3 }
   0xb   : > { %p10636_p6 = por %p157_p3, %p43_p0  ;;  %s10560_s27 = smov [#allocation7]  }
   0xc   : > { %s12980_s24 = scalar_select %p10631_p4, 1, 0 }
   0xd   : > { %s12981_s25 = scalar_select %p10636_p6, 1, 0 }
   0xe   : > { %p10641_p8 = pnand %p7643_p5, %p164_p7  ;;  %s176_s28 = sshll.u32 %s10560_s27, 4  ;;  %s10645_s28 = int_to_ptr.vmem [resolvable:$true] %s176_s28 }
   0xf   : > { %s10561_s30 = smov [#allocation10]   ;;  %s10562_s7 = smov [#allocation9]  }
  0x10   : > { %s12982_s26 = scalar_select %p10641_p8, 1, 0 }
  0x11   : > { %p10270_p9 = pneg %p10641_p8  ;;  %s200_s6 = sshll.u32 %s10561_s30, 4  ;;  %s10656_s6 = int_to_ptr.vmem [resolvable:$true] %s200_s6 }
  0x12   : > { %s10658_s8 = sshll.u32 %s10562_s7, 4  ;;  %s10342_s11 = scalar_lea.hbm %s12859_s1, 1152  ;;  %s191_s8 = int_to_ptr.vmem [resolvable:$true] %s10658_s8 }
  0x13   : > { %p10652_p11 = pnand %p10270_p9, %p12864_p1  ;;  %p10343_p12 = scmp.ne.s32.totalorder %s12859_s1, %s10342_s11 }
  0x14   : > { %p10349_p5 = scmp.lt.u32.totalorder %s10342_s11, %s12859_s1 }
  0x15   : > { %p10668_p13 = pneg %p10652_p11 }
  0x17   : > { %p10345_p0 = pnand %p10668_p13, %p10343_p12 }
  0x19   : > { %p10346_p3 = pneg %p10345_p0 }
  0x1b   : > { %p10351_p7 = pnand %p10349_p5, %p10346_p3 }
  0x1d   : > { %10354 = shalt.err (!%p10351_p7)
}
  0x1e   : > { %s10355_s17 = scalar_lea.vmem %s10645_s28, 1152  ;;  %p10363_p2 = scmp.lt.s32.totalorder %s10645_s28, %s10645_s28 }
  0x1f   : > { %p10356_p9 = scmp.ne.s32.totalorder %s10645_s28, %s10355_s17  ;;  %p10364_p6 = scmp.lt.s32.totalorder %s10355_s17, %s10355_s17 }
  0x21   : > { %p10358_p10 = pnand %p10356_p9, %p10668_p13  ;;  %p10365_p12 = por %p10364_p6, %p10363_p2 }
  0x23   : > { %p10359_p1 = pneg %p10358_p10 }
  0x25   : > { %p10366_p0 = pnand %p10365_p12, %p10359_p1 }
  0x27   : > { %10369 = shalt.err (!%p10366_p0)
}
  0x28   : > { %s10563_s23 = smov 128   ;;  %s10564_s27 = smov 8  }
  0x29   : > { %10273 = dma.hbm_to_vmem [thread:$0]  (!%p10652_p11), %s12859_s1, 1152, %s10645_s28, [#allocation8], %s10563_s23, %s10563_s23, %s10564_s27  }
  0x2a   : > { %s10370_s11 = scalar_lea.hbm %s12861_s3, 1152 }
  0x2b   : > { %p10371_p1 = scmp.ne.s32.totalorder %s12861_s3, %s10370_s11  ;;  %p10377_p10 = scmp.lt.u32.totalorder %s10370_s11, %s12861_s3 }
  0x2d   : > { %p10373_p2 = pnand %p10371_p1, %p10668_p13 }
  0x2f   : > { %p10374_p6 = pneg %p10373_p2 }
  0x31   : > { %p10379_p3 = pnand %p10377_p10, %p10374_p6 }
  0x33   : > { %10382 = shalt.err (!%p10379_p3)
}
  0x34   : > { %s10383_s28 = scalar_lea.vmem %s10656_s6, 1152  ;;  %p10391_p12 = scmp.lt.s32.totalorder %s10656_s6, %s10656_s6 }
  0x35   : > { %p10384_p5 = scmp.ne.s32.totalorder %s10656_s6, %s10383_s28  ;;  %p10392_p0 = scmp.lt.s32.totalorder %s10383_s28, %s10383_s28 }
  0x37   : > { %p10386_p7 = pnand %p10384_p5, %p10668_p13  ;;  %p10393_p1 = por %p10392_p0, %p10391_p12 }
  0x39   : > { %p10387_p9 = pneg %p10386_p7 }
  0x3b   : > { %p10394_p2 = pnand %p10393_p1, %p10387_p9 }
  0x3d   : > { %10397 = shalt.err (!%p10394_p2)
}
  0x3e   : > { %10279 = dma.hbm_to_vmem [thread:$0]  (!%p10652_p11), %s12861_s3, 1152, %s10656_s6, [#allocation11], %s10563_s23, %s10563_s23, %s10564_s27  }
  0x3f   : > { %s10398_s10 = scalar_lea.hbm %s12860_s2, 16 }
  0x40   : > { %p10399_p6 = scmp.ne.s32.totalorder %s12860_s2, %s10398_s10  ;;  %p10405_p5 = scmp.lt.u32.totalorder %s10398_s10, %s12860_s2 }
  0x42   : > { %p10401_p10 = pnand %p10399_p6, %p10668_p13 }
  0x44   : > { %p10402_p3 = pneg %p10401_p10 }
  0x46   : > { %p10407_p7 = pnand %p10405_p5, %p10402_p3 }
  0x48   : > { %10410 = shalt.err (!%p10407_p7)
}
  0x49   : > { %s10411_s16 = scalar_lea.vmem %s191_s8, 16  ;;  %s10418_s6 = scalar_lea.vmem %s191_s8, 32 }
  0x4a   : > { %p10412_p9 = scmp.ne.s32.totalorder %s191_s8, %s10411_s16  ;;  %p10419_p1 = scmp.lt.s32.totalorder %s191_s8, %s191_s8 }
  0x4b   : > { %p10420_p2 = scmp.lt.s32.totalorder %s10418_s6, %s10411_s16 }
  0x4c   : > { %p10414_p12 = pnand %p10412_p9, %p10668_p13 }
  0x4d   : > { %p10421_p4 = por %p10420_p2, %p10419_p1 }
  0x4e   : > { %p10415_p0 = pneg %p10414_p12 }
  0x50   : > { %p10422_p8 = pnand %p10421_p4, %p10415_p0 }
  0x52   : > { %10425 = shalt.err (!%p10422_p8)
}
  0x53   : > { %10276 = dma.hbm_to_vmem [thread:$0]  (!%p10652_p11), %s12860_s2, 16, %s191_s8, [#allocation8]  }
  0x54   : > { %s10565_s30 = smov [#allocation12]   ;;  %s10426_s11 = scalar_lea.hbm %s12862_s4, 16 }
  0x55   : > { %s214_s7 = sshll.u32 %s10565_s30, 4  ;;  %p10427_p6 = scmp.ne.s32.totalorder %s12862_s4, %s10426_s11  ;;  %s215_s7 = int_to_ptr.vmem [resolvable:$true] %s214_s7 }
  0x56   : > { %p10433_p10 = scmp.lt.u32.totalorder %s10426_s11, %s12862_s4 }
  0x57   : > { %p10429_p4 = pnand %p10427_p6, %p10668_p13 }
  0x59   : > { %p10430_p8 = pneg %p10429_p4 }
  0x5b   : > { %p10435_p3 = pnand %p10433_p10, %p10430_p8 }
  0x5d   : > { %10438 = shalt.err (!%p10435_p3)
}
  0x5e   : > { %s10439_s8 = scalar_lea.vmem %s215_s7, 16  ;;  %s10446_s6 = scalar_lea.vmem %s215_s7, 32 }
  0x5f   : > { %p10440_p5 = scmp.ne.s32.totalorder %s215_s7, %s10439_s8  ;;  %p10447_p12 = scmp.lt.s32.totalorder %s215_s7, %s215_s7 }
  0x60   : > { %p10448_p0 = scmp.lt.s32.totalorder %s10446_s6, %s10439_s8 }
  0x61   : > { %p10442_p7 = pnand %p10440_p5, %p10668_p13 }
  0x62   : > { %p10449_p1 = por %p10448_p0, %p10447_p12 }
  0x63   : > { %p10443_p9 = pneg %p10442_p7 }
  0x65   : > { %p10450_p2 = pnand %p10449_p1, %p10443_p9 }
  0x67   : > { %10453 = shalt.err (!%p10450_p2)
}
  0x68   : > { %10282 = dma.hbm_to_vmem [thread:$0]  (!%p10652_p11), %s12862_s4, 16, %s215_s7, [#allocation11]  }
  0x69   : > { %s10756_s14 = sadd.s32 1, %s10558_s21   ;;  %s30_s30 = sadd.s32 1, %s10554_s20 }
  0x6a   : > { %s27_s29 = ssub.s32 %s10558_s21, %s10756_s14  ;;  %p37_p13 = scmp.ne.s32.totalorder %s10554_s20, %s10550_s19 }
  0x6b   : > { %p28_p6 = scmp.eq.s32.totalorder %s27_s29, 0  ;;  %p38_p4 = scmp.eq.s32.totalorder %s10558_s21, 0 }
  0x6c   : > { %p12985_p8 = scmp.eq.s32.totalorder %s10622_s22, 1  ;;  %p10295_p3 = scmp.lt.s32.totalorder %s10558_s21, 2 }
  0x6d   : > { %s10772_s10 = scalar_select %p28_p6, %s10554_s20, %s30_s30  }
  0x6e   : > { %p10766_p10 = por %p12985_p8, %p37_p13  ;;  %p39_p5 = por %p38_p4, %p37_p13 }
  0x6f   : > { %s225_s11 = sand.u32 1, %s10554_s20   ;;  %s8242_s7 = sshll.u32 %s10558_s21, 12 }
  0x70   : > { %s7649_s12 = sshll.u32 %s225_s11, 8  ;;  %s10779_s16 = scalar_lea.hbm %s12858_s0, %s8242_s7 }
  0x71   : > { %s229_s8 = scalar_lea.vmem [#allocation4], %s7649_s12  ;;  %p10783_p11 = pnand %p10295_p3, %p39_p5 }
  0x72   : > { %s236_s6 = sshll.u32 %s229_s8, 4  ;;  %s10787_s17 = scalar_lea.sflag [#allocation5], %s225_s11  ;;  %s10781_s6 = int_to_ptr.vmem [resolvable:$true] %s236_s6 }
  0x73   : > { %s10454_s30 = scalar_lea.hbm %s10779_s16, 4096  ;;  %p10456_p9 = pneg %p10783_p11 }
  0x74   : > { %p10455_p7 = scmp.ne.s32.totalorder %s10779_s16, %s10454_s30  ;;  %s10459_s7 = scalar_lea.hbm %s12858_s0, 8192 }
  0x75   : > { %p10460_p1 = scmp.lt.u32.totalorder %s10779_s16, %s12858_s0  ;;  %p10461_p2 = scmp.lt.u32.totalorder %s10459_s7, %s10454_s30 }
  0x76   : > { %p10457_p12 = pnand %p10456_p9, %p10455_p7  ;;  %p10463_p6 = scmp.lt.u32.totalorder %s10454_s30, %s10779_s16 }
  0x77   : > { %p10462_p13 = por %p10461_p2, %p10460_p1 }
  0x78   : > { %p10458_p0 = pneg %p10457_p12 }
  0x79   : > { %p10464_p4 = por %p10463_p6, %p10462_p13 }
  0x7b   : > { %p10465_p8 = pnand %p10464_p4, %p10458_p0 }
  0x7d   : > { %10468 = shalt.err (!%p10465_p8)
}
  0x7e   : > { %s10469_s11 = scalar_lea.vmem %s10781_s6, 4096  ;;  %s10566_s8 = smov [#allocation4]  }
  0x7f   : > { %p10470_p3 = scmp.ne.s32.totalorder %s10781_s6, %s10469_s11  ;;  %s10474_s29 = sshll.u32 %s10566_s8, 4  ;;  %s10475_s29 = int_to_ptr.vmem [resolvable:$false] %s10474_s29 }
  0x80   : > { %s10476_s12 = scalar_lea.vmem %s10475_s29, 8192  ;;  %p10477_p12 = scmp.lt.s32.totalorder %s10781_s6, %s10475_s29 }
  0x81   : > { %p10472_p5 = pnand %p10470_p3, %p10456_p9  ;;  %p10478_p1 = scmp.lt.s32.totalorder %s10476_s12, %s10469_s11 }
  0x83   : > { %p10473_p7 = pneg %p10472_p5  ;;  %p10479_p2 = por %p10478_p1, %p10477_p12 }
  0x85   : > { %p10480_p13 = pnand %p10479_p2, %p10473_p7 }
  0x87   : > { %10483 = shalt.err (!%p10480_p13)
}
  0x88   : > { %10286 = dma.hbm_to_vmem [thread:$0]  (!%p10783_p11), %s10779_s16, 4096, %s10781_s6, %s10787_s17, %s10563_s23, %s10563_s23, %s10564_s27  }
  0x89   : > { %p12988_p9 = scmp.ne.s32.totalorder %s12982_s26, 0 }
  0x8b   : > { %248 = sbr.rel (%p12988_p9) target bundleno = 1755 (0x6db), region = 40 }
  0x92   : > { %s10821_s30 = sand.u32 1, %s10550_s19   ;;  %p12989_p0 = scmp.ne.s32.totalorder %s12980_s24, 0 }
  0x93   : > { %s7653_s7 = sshll.u32 %s10821_s30, 8  ;;  %s251_s13 = scalar_lea.sflag [#allocation5], %s10821_s30 }
  0x94   : > { %s10827_s28 = scalar_lea.vmem [#allocation4], %s7653_s7 }
  0x95   : > { %10529 = dma.done.wait (%p12989_p0), %s251_s13, 4096  }
  0x96   : > { %10531 = vsyncadd (%p12989_p0), %s251_s13, 4294963200  ;;  %p12990_p11 = scmp.eq.s32.totalorder %s10622_s22, 0 }
  0x98   : > { %10533 = dma.done.wait (%p12990_p11), [#allocation8], 1168   ;;  %p12991_p6 = pmov %p12990_p11 }
  0x9a   : > { %10535 = vsyncadd (%p12991_p6), [#allocation8], 4294966128  ;;  %p12992_p4 = pmov %p12991_p6 }
  0x9c   : > { %10537 = dma.done.wait (%p12992_p4), [#allocation11], 1168   ;;  %p12993_p8 = pmov %p12992_p4 }
  0x9d   : > { %vm297_vm0 = vcmask 64512   ;;  %vm300_vm1 = vcmask 58368   ;;  %v10567_v0 = vmov 0.0   ;;  %v484_v1 = vld [vmem:[#allocation7 + $0x8] sm:$0xff]  ;;  %v450_v2 = vld [vmem:[#allocation7] sm:$0xff]  ;;  %v355_v7 = vld [vmem:[%s10827_s28 + $0x10] sm:$0xff] }
  0x9e   : > { %10539 = vsyncadd (%p12993_p8), [#allocation11], 4294966128  ;;  %298 = vst.msk [vmem:[#allocation2] sm:$0xff] %vm297_vm0, %v10567_v0  ;;  %v353_v3 = vld [vmem:[%s10827_s28] sm:$0xff]  ;;  %8838 = vmatprep.subr.mxu0 %v484_v1  ;;  %v354_v6 = vld [vmem:[%s10827_s28 + $0x8] sm:$0xff]  ;;  %s12711_s24 = scalar_lea.vmem [#allocation13], %s7653_s7 }
  0x9f   : > { %299 = vst.msk [vmem:[#allocation2 + $0x8] sm:$0xff] %vm297_vm0, %v10567_v0  ;;  %302 = vst.msk [vmem:[#allocation2 + $0x18] sm:$0xff] %vm297_vm0, %v10567_v0  ;;  %8839 = vmatpush3.msra.mxu0 %v484_v1  ;;  %v356_v8 = vld [vmem:[%s10827_s28 + $0x18] sm:$0xff]  ;;  %v357_v9 = vld [vmem:[%s10827_s28 + $0x20] sm:$0xff]  ;;  %s8243_s26 = sshll.u32 %s10622_s22, 12  ;;  %s7531_s23 = sshll.u32 %s12711_s24, 4  ;;  %s12810_s23 = int_to_ptr.vmem [resolvable:$true] %s7531_s23 }
  0xa0   : > { %303 = vst.msk [vmem:[#allocation2 + $0x20] sm:$0xff] %vm297_vm0, %v10567_v0  ;;  %305 = vst.msk [vmem:[#allocation2 + $0x30] sm:$0xff] %vm297_vm0, %v10567_v0  ;;  %8888 = vmatprep.subr.mxu0 %v450_v2  ;;  %v358_v10 = vld [vmem:[%s10827_s28 + $0x28] sm:$0xff]  ;;  %v359_v11 = vld [vmem:[%s10827_s28 + $0x30] sm:$0xff]  ;;  %s12808_s6 = scalar_lea.hbm %s12863_s5, %s8243_s26  ;;  %s7518_s22 = scalar_lea.sflag [#allocation6], %s10821_s30 }
  0xa1   : > { %306 = vst.msk [vmem:[#allocation2 + $0x38] sm:$0xff] %vm297_vm0, %v10567_v0  ;;  %308 = vst.msk [vmem:[#allocation2 + $0x48] sm:$0xff] %vm297_vm0, %v10567_v0  ;;  %v360_v12 = vld [vmem:[%s10827_s28 + $0x38] sm:$0xff]  ;;  %v361_v13 = vld [vmem:[%s10827_s28 + $0x40] sm:$0xff]  ;;  %s10484_s17 = scalar_lea.vmem %s12810_s23, 4096  ;;  %s10568_s15 = smov [#allocation13]  }
  0xa2   : > { %309 = vst.msk [vmem:[#allocation2 + $0x50] sm:$0xff] %vm297_vm0, %v10567_v0  ;;  %311 = vst.msk [vmem:[#allocation2 + $0x60] sm:$0xff] %vm297_vm0, %v10567_v0  ;;  %v362_v14 = vld [vmem:[%s10827_s28 + $0x48] sm:$0xff]  ;;  %v363_v15 = vld [vmem:[%s10827_s28 + $0x50] sm:$0xff]  ;;  %p10485_p3 = scmp.ne.s32.totalorder %s12810_s23, %s10484_s17  ;;  %s10488_s11 = sshll.u32 %s10568_s15, 4  ;;  %s10489_s11 = int_to_ptr.vmem [resolvable:$false] %s10488_s11 }
  0xa3   : > { %312 = vst.msk [vmem:[#allocation2 + $0x68] sm:$0xff] %vm297_vm0, %v10567_v0  ;;  %314 = vst.msk [vmem:[#allocation2 + $0x78] sm:$0xff] %vm297_vm0, %v10567_v0  ;;  %v364_v16 = vld [vmem:[%s10827_s28 + $0x58] sm:$0xff]  ;;  %v365_v17 = vld [vmem:[%s10827_s28 + $0x60] sm:$0xff]  ;;  %s10490_s8 = scalar_lea.vmem %s10489_s11, 8192  ;;  %p10491_p12 = scmp.lt.s32.totalorder %s12810_s23, %s10489_s11 }
  0xa4   : > { %315 = vst.msk [vmem:[#allocation2 + $0x80] sm:$0xff] %vm297_vm0, %v10567_v0  ;;  %317 = vst.msk [vmem:[#allocation2 + $0x90] sm:$0xff] %vm297_vm0, %v10567_v0  ;;  %v366_v18 = vld [vmem:[%s10827_s28 + $0x68] sm:$0xff]  ;;  %v367_v19 = vld [vmem:[%s10827_s28 + $0x70] sm:$0xff]  ;;  %p10486_p5 = pnand %p10485_p3, %p10766_p10  ;;  %p10492_p1 = scmp.lt.s32.totalorder %s10490_s8, %s10484_s17 }
  0xa5   : > { %318 = vst.msk [vmem:[#allocation2 + $0x98] sm:$0xff] %vm297_vm0, %v10567_v0  ;;  %320 = vst.msk [vmem:[#allocation2 + $0xa8] sm:$0xff] %vm297_vm0, %v10567_v0  ;;  %v368_v20 = vld [vmem:[%s10827_s28 + $0x78] sm:$0xff]  ;;  %v369_v21 = vld [vmem:[%s10827_s28 + $0x80] sm:$0xff] }
  0xa6   : > { %321 = vst.msk [vmem:[#allocation2 + $0xb0] sm:$0xff] %vm297_vm0, %v10567_v0  ;;  %323 = vst.msk [vmem:[#allocation2 + $0xc0] sm:$0xff] %vm297_vm0, %v10567_v0  ;;  %v451_v4 = vld [vmem:[#allocation2 + $0x1] sm:$0xff]  ;;  %v371_v23 = vld [vmem:[%s10827_s28 + $0x90] sm:$0xff]  ;;  %p10487_p7 = pneg %p10486_p5  ;;  %p10493_p2 = por %p10492_p1, %p10491_p12 }
  0xa7   : > { %324 = vst.msk [vmem:[#allocation2 + $0xc8] sm:$0xff] %vm297_vm0, %v10567_v0  ;;  %326 = vst.msk [vmem:[#allocation2 + $0xd8] sm:$0xff] %vm297_vm0, %v10567_v0  ;;  %8840 = vmatprep.mubr.msk.f32.mxu0 %vm297_vm0, %v451_v4  ;;  %v370_v22 = vld [vmem:[%s10827_s28 + $0x88] sm:$0xff]  ;;  %v372_v24 = vld [vmem:[%s10827_s28 + $0x98] sm:$0xff] }
  0xa8   : > { %327 = vst.msk [vmem:[#allocation2 + $0xe0] sm:$0xff] %vm297_vm0, %v10567_v0  ;;  %329 = vst.msk [vmem:[#allocation2 + $0xf0] sm:$0xff] %vm297_vm0, %v10567_v0  ;;  %v373_v26 = vld [vmem:[%s10827_s28 + $0xa0] sm:$0xff]  ;;  %v374_v27 = vld [vmem:[%s10827_s28 + $0xa8] sm:$0xff]  ;;  %p10494_p13 = pnand %p10493_p2, %p10487_p7 }
  0xa9   : > { %330 = vst.msk [vmem:[#allocation2 + $0xf8] sm:$0xff] %vm297_vm0, %v10567_v0  ;;  %332 = vst.msk [vmem:[#allocation2 + $0x108] sm:$0xff] %vm297_vm0, %v10567_v0  ;;  %v375_v29 = vld [vmem:[%s10827_s28 + $0xb0] sm:$0xff]  ;;  %v376_v30 = vld [vmem:[%s10827_s28 + $0xb8] sm:$0xff] }
  0xaa   : > { %333 = vst.msk [vmem:[#allocation2 + $0x110] sm:$0xff] %vm297_vm0, %v10567_v0  ;;  %335 = vst.msk [vmem:[#allocation2 + $0x120] sm:$0xff] %vm297_vm0, %v10567_v0  ;;  %v377_v36 = vld [vmem:[%s10827_s28 + $0xc0] sm:$0xff]  ;;  %v378_v37 = vld [vmem:[%s10827_s28 + $0xc8] sm:$0xff] }
  0xab   : > { %336 = vst.msk [vmem:[#allocation2 + $0x128] sm:$0xff] %vm297_vm0, %v10567_v0  ;;  %338 = vst.msk [vmem:[#allocation2 + $0x138] sm:$0xff] %vm297_vm0, %v10567_v0  ;;  %v379_v38 = vld [vmem:[%s10827_s28 + $0xd0] sm:$0xff]  ;;  %v380_v39 = vld [vmem:[%s10827_s28 + $0xd8] sm:$0xff] }
  0xac   : > { %339 = vst.msk [vmem:[#allocation2 + $0x140] sm:$0xff] %vm297_vm0, %v10567_v0  ;;  %341 = vst.msk [vmem:[#allocation2 + $0x150] sm:$0xff] %vm297_vm0, %v10567_v0  ;;  %v381_v40 = vld [vmem:[%s10827_s28 + $0xe0] sm:$0xff]  ;;  %v382_v42 = vld [vmem:[%s10827_s28 + $0xe8] sm:$0xff] }
  0xad   : > { %342 = vst.msk [vmem:[#allocation2 + $0x158] sm:$0xff] %vm297_vm0, %v10567_v0  ;;  %344 = vst.msk [vmem:[#allocation2 + $0x168] sm:$0xff] %vm297_vm0, %v10567_v0  ;;  %v1160_v43 = vld [vmem:[#allocation7 + $0x10] sm:$0xff] }
  0xae   : > { %345 = vst.msk [vmem:[#allocation2 + $0x170] sm:$0xff] %vm297_vm0, %v10567_v0  ;;  %347 = vst.msk [vmem:[#allocation2 + $0x180] sm:$0xff] %vm297_vm0, %v10567_v0 }
  0xaf   : > { %348 = vst.msk [vmem:[#allocation2 + $0x188] sm:$0xff] %vm297_vm0, %v10567_v0  ;;  %350 = vst.msk [vmem:[#allocation2 + $0x198] sm:$0xff] %vm297_vm0, %v10567_v0 }
  0xb0   : > { %351 = vst.msk [vmem:[#allocation2 + $0x1a0] sm:$0xff] %vm297_vm0, %v10567_v0  ;;  %3908 = vst.msk [vmem:[#allocation3] sm:$0xff] %vm297_vm0, %v10567_v0 }
  0xb1   : > { %3909 = vst.msk [vmem:[#allocation3 + $0x8] sm:$0xff] %vm297_vm0, %v10567_v0  ;;  %3911 = vst.msk [vmem:[#allocation3 + $0x18] sm:$0xff] %vm297_vm0, %v10567_v0 }
  0xb2   : > { %3912 = vst.msk [vmem:[#allocation3 + $0x20] sm:$0xff] %vm297_vm0, %v10567_v0  ;;  %3914 = vst.msk [vmem:[#allocation3 + $0x30] sm:$0xff] %vm297_vm0, %v10567_v0 }
  0xb3   : > { %3915 = vst.msk [vmem:[#allocation3 + $0x38] sm:$0xff] %vm297_vm0, %v10567_v0  ;;  %3917 = vst.msk [vmem:[#allocation3 + $0x48] sm:$0xff] %vm297_vm0, %v10567_v0 }
  0xb4   : > { %3918 = vst.msk [vmem:[#allocation3 + $0x50] sm:$0xff] %vm297_vm0, %v10567_v0  ;;  %3920 = vst.msk [vmem:[#allocation3 + $0x60] sm:$0xff] %vm297_vm0, %v10567_v0 }
  0xb5   : > { %3921 = vst.msk [vmem:[#allocation3 + $0x68] sm:$0xff] %vm297_vm0, %v10567_v0  ;;  %3923 = vst.msk [vmem:[#allocation3 + $0x78] sm:$0xff] %vm297_vm0, %v10567_v0 }
  0xb6   : > { %3924 = vst.msk [vmem:[#allocation3 + $0x80] sm:$0xff] %vm297_vm0, %v10567_v0  ;;  %3926 = vst.msk [vmem:[#allocation3 + $0x90] sm:$0xff] %vm297_vm0, %v10567_v0 }
  0xb7   : > { %3927 = vst.msk [vmem:[#allocation3 + $0x98] sm:$0xff] %vm297_vm0, %v10567_v0  ;;  %3929 = vst.msk [vmem:[#allocation3 + $0xa8] sm:$0xff] %vm297_vm0, %v10567_v0 }
  0xb8   : > { %3930 = vst.msk [vmem:[#allocation3 + $0xb0] sm:$0xff] %vm297_vm0, %v10567_v0  ;;  %3932 = vst.msk [vmem:[#allocation3 + $0xc0] sm:$0xff] %vm297_vm0, %v10567_v0 }
  0xb9   : > { %3933 = vst.msk [vmem:[#allocation3 + $0xc8] sm:$0xff] %vm297_vm0, %v10567_v0  ;;  %3935 = vst.msk [vmem:[#allocation3 + $0xd8] sm:$0xff] %vm297_vm0, %v10567_v0 }
  0xba   : > { %3936 = vst.msk [vmem:[#allocation3 + $0xe0] sm:$0xff] %vm297_vm0, %v10567_v0  ;;  %3938 = vst.msk [vmem:[#allocation3 + $0xf0] sm:$0xff] %vm297_vm0, %v10567_v0 }
  0xbb   : > { %3939 = vst.msk [vmem:[#allocation3 + $0xf8] sm:$0xff] %vm297_vm0, %v10567_v0  ;;  %3941 = vst.msk [vmem:[#allocation3 + $0x108] sm:$0xff] %vm297_vm0, %v10567_v0 }
  0xbc   : > { %3942 = vst.msk [vmem:[#allocation3 + $0x110] sm:$0xff] %vm297_vm0, %v10567_v0  ;;  %3944 = vst.msk [vmem:[#allocation3 + $0x120] sm:$0xff] %vm297_vm0, %v10567_v0 }
  0xbd   : > { %3945 = vst.msk [vmem:[#allocation3 + $0x128] sm:$0xff] %vm297_vm0, %v10567_v0  ;;  %3947 = vst.msk [vmem:[#allocation3 + $0x138] sm:$0xff] %vm297_vm0, %v10567_v0 }
  0xbe   : > { %3948 = vst.msk [vmem:[#allocation3 + $0x140] sm:$0xff] %vm297_vm0, %v10567_v0  ;;  %3950 = vst.msk [vmem:[#allocation3 + $0x150] sm:$0xff] %vm297_vm0, %v10567_v0 }
  0xbf   : > { %3951 = vst.msk [vmem:[#allocation3 + $0x158] sm:$0xff] %vm297_vm0, %v10567_v0  ;;  %3953 = vst.msk [vmem:[#allocation3 + $0x168] sm:$0xff] %vm297_vm0, %v10567_v0 }
  0xc0   : > { %3954 = vst.msk [vmem:[#allocation3 + $0x170] sm:$0xff] %vm297_vm0, %v10567_v0  ;;  %3956 = vst.msk [vmem:[#allocation3 + $0x180] sm:$0xff] %vm297_vm0, %v10567_v0 }
  0xc1   : > { %3957 = vst.msk [vmem:[#allocation3 + $0x188] sm:$0xff] %vm297_vm0, %v10567_v0  ;;  %3959 = vst.msk [vmem:[#allocation3 + $0x198] sm:$0xff] %vm297_vm0, %v10567_v0 }
  0xc2   : > { %3960 = vst.msk [vmem:[#allocation3 + $0x1a0] sm:$0xff] %vm297_vm0, %v10567_v0  ;;  %386 = vst.msk [vmem:[#allocation2 + $0x19] sm:$0xff] %vm297_vm0, %v353_v3  ;;  %v419_v3 = vld [vmem:[#allocation2 + $0x8] sm:$0xff] }
  0xc3   : > { %301 = vst.msk [vmem:[#allocation2 + $0x10] sm:$0x3] %vm300_vm1, %v10567_v0  ;;  %304 = vst.msk [vmem:[#allocation2 + $0x28] sm:$0x3] %vm300_vm1, %v10567_v0 }
  0xc4   : > { %307 = vst.msk [vmem:[#allocation2 + $0x40] sm:$0x3] %vm300_vm1, %v10567_v0  ;;  %310 = vst.msk [vmem:[#allocation2 + $0x58] sm:$0x3] %vm300_vm1, %v10567_v0 }
  0xc5   : > { %313 = vst.msk [vmem:[#allocation2 + $0x70] sm:$0x3] %vm300_vm1, %v10567_v0  ;;  %316 = vst.msk [vmem:[#allocation2 + $0x88] sm:$0x3] %vm300_vm1, %v10567_v0 }
  0xc6   : > { %319 = vst.msk [vmem:[#allocation2 + $0xa0] sm:$0x3] %vm300_vm1, %v10567_v0  ;;  %322 = vst.msk [vmem:[#allocation2 + $0xb8] sm:$0x3] %vm300_vm1, %v10567_v0 }
  0xc7   : > { %325 = vst.msk [vmem:[#allocation2 + $0xd0] sm:$0x3] %vm300_vm1, %v10567_v0  ;;  %328 = vst.msk [vmem:[#allocation2 + $0xe8] sm:$0x3] %vm300_vm1, %v10567_v0 }
  0xc8   : > { %331 = vst.msk [vmem:[#allocation2 + $0x100] sm:$0x3] %vm300_vm1, %v10567_v0  ;;  %334 = vst.msk [vmem:[#allocation2 + $0x118] sm:$0x3] %vm300_vm1, %v10567_v0 }
  0xc9   : > { %337 = vst.msk [vmem:[#allocation2 + $0x130] sm:$0x3] %vm300_vm1, %v10567_v0  ;;  %340 = vst.msk [vmem:[#allocation2 + $0x148] sm:$0x3] %vm300_vm1, %v10567_v0  ;;  %v11096_v25 = vld [vmem:[#allocation2 + $0x19] sm:$0xff] }
  0xca   : > { %343 = vst.msk [vmem:[#allocation2 + $0x160] sm:$0x3] %vm300_vm1, %v10567_v0  ;;  %346 = vst.msk [vmem:[#allocation2 + $0x178] sm:$0x3] %vm300_vm1, %v10567_v0  ;;  %v452_v5 = vld [vmem:[#allocation2 + $0x9] sm:$0xff]  ;;  %v11240_v4 = vld [vmem:[#allocation2 + $0x18] sm:$0xff] }
  0xcb   : > { %349 = vst.msk [vmem:[#allocation2 + $0x190] sm:$0x3] %vm300_vm1, %v10567_v0  ;;  %352 = vst.msk [vmem:[#allocation2 + $0x1a8] sm:$0x3] %vm300_vm1, %v10567_v0  ;;  %8841 = vmatmul.mubr.msk.f32.vlgmr.msra.gmra.mrb[0].mxu0 %vm297_vm0, %v452_v5  ;;  %v11242_v5 = vld [vmem:[#allocation7 + $0x18] sm:$0xff] }
  0xcc   : > { %3910 = vst.msk [vmem:[#allocation3 + $0x10] sm:$0x3] %vm300_vm1, %v10567_v0  ;;  %3913 = vst.msk [vmem:[#allocation3 + $0x28] sm:$0x3] %vm300_vm1, %v10567_v0  ;;  %8889 = vmatpush3.msra.mxu0 %v450_v2  ;;  %8843 = vmatprep.mubr.msk.f32.mxu0 %vm297_vm0, %v11096_v25  ;;  %v418_v2 = vld [vmem:[#allocation2] sm:$0xff] }
  0xcd   : > { %3916 = vst.msk [vmem:[#allocation3 + $0x40] sm:$0x3] %vm300_vm1, %v10567_v0  ;;  %3919 = vst.msk [vmem:[#allocation3 + $0x58] sm:$0x3] %vm300_vm1, %v10567_v0  ;;  %8938 = vmatprep.subr.mxu0 %v1160_v43 }
  0xce   : > { %3922 = vst.msk [vmem:[#allocation3 + $0x70] sm:$0x3] %vm300_vm1, %v10567_v0  ;;  %3925 = vst.msk [vmem:[#allocation3 + $0x88] sm:$0x3] %vm300_vm1, %v10567_v0 }
  0xcf   : > { %3928 = vst.msk [vmem:[#allocation3 + $0xa0] sm:$0x3] %vm300_vm1, %v10567_v0  ;;  %3931 = vst.msk [vmem:[#allocation3 + $0xb8] sm:$0x3] %vm300_vm1, %v10567_v0 }
  0xd0   : > { %3934 = vst.msk [vmem:[#allocation3 + $0xd0] sm:$0x3] %vm300_vm1, %v10567_v0  ;;  %3937 = vst.msk [vmem:[#allocation3 + $0xe8] sm:$0x3] %vm300_vm1, %v10567_v0 }
  0xd1   : > { %3940 = vst.msk [vmem:[#allocation3 + $0x100] sm:$0x3] %vm300_vm1, %v10567_v0  ;;  %3943 = vst.msk [vmem:[#allocation3 + $0x118] sm:$0x3] %vm300_vm1, %v10567_v0 }
  0xd2   : > { %3946 = vst.msk [vmem:[#allocation3 + $0x130] sm:$0x3] %vm300_vm1, %v10567_v0  ;;  %3949 = vst.msk [vmem:[#allocation3 + $0x148] sm:$0x3] %vm300_vm1, %v10567_v0 }
  0xd3   : > { %3952 = vst.msk [vmem:[#allocation3 + $0x160] sm:$0x3] %vm300_vm1, %v10567_v0  ;;  %3955 = vst.msk [vmem:[#allocation3 + $0x178] sm:$0x3] %vm300_vm1, %v10567_v0 }
  0xd4   : > { %3958 = vst.msk [vmem:[#allocation3 + $0x190] sm:$0x3] %vm300_vm1, %v10567_v0  ;;  %3961 = vst.msk [vmem:[#allocation3 + $0x1a8] sm:$0x3] %vm300_vm1, %v10567_v0 }
  0xd5   : > { %387 = vst.msk [vmem:[#allocation2 + $0x21] sm:$0xff] %vm297_vm0, %v354_v6  ;;  %388 = vst.msk [vmem:[#allocation2 + $0x31] sm:$0xff] %vm297_vm0, %v355_v7 }
  0xd6   : > { %389 = vst.msk [vmem:[#allocation2 + $0x39] sm:$0xff] %vm297_vm0, %v356_v8  ;;  %390 = vst.msk [vmem:[#allocation2 + $0x49] sm:$0xff] %vm297_vm0, %v357_v9 }
  0xd7   : > { %391 = vst.msk [vmem:[#allocation2 + $0x51] sm:$0xff] %vm297_vm0, %v358_v10  ;;  %392 = vst.msk [vmem:[#allocation2 + $0x61] sm:$0xff] %vm297_vm0, %v359_v11 }
  0xd8   : > { %393 = vst.msk [vmem:[#allocation2 + $0x69] sm:$0xff] %vm297_vm0, %v360_v12  ;;  %394 = vst.msk [vmem:[#allocation2 + $0x79] sm:$0xff] %vm297_vm0, %v361_v13 }
  0xd9   : > { %395 = vst.msk [vmem:[#allocation2 + $0x81] sm:$0xff] %vm297_vm0, %v362_v14  ;;  %396 = vst.msk [vmem:[#allocation2 + $0x91] sm:$0xff] %vm297_vm0, %v363_v15 }
  0xda   : > { %397 = vst.msk [vmem:[#allocation2 + $0x99] sm:$0xff] %vm297_vm0, %v364_v16  ;;  %398 = vst.msk [vmem:[#allocation2 + $0xa9] sm:$0xff] %vm297_vm0, %v365_v17 }
  0xdb   : > { %399 = vst.msk [vmem:[#allocation2 + $0xb1] sm:$0xff] %vm297_vm0, %v366_v18  ;;  %400 = vst.msk [vmem:[#allocation2 + $0xc1] sm:$0xff] %vm297_vm0, %v367_v19 }
  0xdc   : > { %401 = vst.msk [vmem:[#allocation2 + $0xc9] sm:$0xff] %vm297_vm0, %v368_v20  ;;  %402 = vst.msk [vmem:[#allocation2 + $0xd9] sm:$0xff] %vm297_vm0, %v369_v21  ;;  %v11105_v28 = vld [vmem:[#allocation2 + $0x21] sm:$0xff]  ;;  %v11113_v31 = vld [vmem:[#allocation2 + $0x31] sm:$0xff] }
  0xdd   : > { %403 = vst.msk [vmem:[#allocation2 + $0xe1] sm:$0xff] %vm297_vm0, %v370_v22  ;;  %404 = vst.msk [vmem:[#allocation2 + $0xf1] sm:$0xff] %vm297_vm0, %v371_v23  ;;  %8844 = vmatmul.mubr.msk.f32.gmra.mrb[2].mxu0 %vm297_vm0, %v11105_v28  ;;  %v11119_v32 = vld [vmem:[#allocation2 + $0x39] sm:$0xff]  ;;  %v11121_v33 = vld [vmem:[#allocation2 + $0x49] sm:$0xff] }
  0xde   : > { %405 = vst.msk [vmem:[#allocation2 + $0xf9] sm:$0xff] %vm297_vm0, %v372_v24  ;;  %406 = vst.msk [vmem:[#allocation2 + $0x109] sm:$0xff] %vm297_vm0, %v373_v26  ;;  %8846 = vmatprep.mubr.msk.f32.mxu0 %vm297_vm0, %v11113_v31  ;;  %v11127_v34 = vld [vmem:[#allocation2 + $0x51] sm:$0xff]  ;;  %v11129_v35 = vld [vmem:[#allocation2 + $0x61] sm:$0xff] }
  0xdf   : > { %407 = vst.msk [vmem:[#allocation2 + $0x111] sm:$0xff] %vm297_vm0, %v374_v27  ;;  %408 = vst.msk [vmem:[#allocation2 + $0x121] sm:$0xff] %vm297_vm0, %v375_v29  ;;  %v11142_v41 = vld [vmem:[#allocation2 + $0x69] sm:$0xff]  ;;  %v11148_v44 = vld [vmem:[#allocation2 + $0x79] sm:$0xff] }
  0xe0   : > { %409 = vst.msk [vmem:[#allocation2 + $0x129] sm:$0xff] %vm297_vm0, %v376_v30  ;;  %410 = vst.msk [vmem:[#allocation2 + $0x139] sm:$0xff] %vm297_vm0, %v377_v36  ;;  %v11155_v45 = vld [vmem:[#allocation2 + $0x81] sm:$0xff]  ;;  %v11157_v46 = vld [vmem:[#allocation2 + $0x91] sm:$0xff] }
  0xe1   : > { %8847 = vmatmul.mubr.msk.f32.gmra.mrb[4].mxu0 %vm297_vm0, %v11119_v32  ;;  %411 = vst.msk [vmem:[#allocation2 + $0x141] sm:$0xff] %vm297_vm0, %v378_v37  ;;  %412 = vst.msk [vmem:[#allocation2 + $0x151] sm:$0xff] %vm297_vm0, %v379_v38  ;;  %v11163_v47 = vld [vmem:[#allocation2 + $0x99] sm:$0xff]  ;;  %v11165_v48 = vld [vmem:[#allocation2 + $0xa9] sm:$0xff] }
  0xe2   : > { %8849 = vmatprep.mubr.msk.f32.mxu0 %vm297_vm0, %v11121_v33  ;;  %413 = vst.msk [vmem:[#allocation2 + $0x159] sm:$0xff] %vm297_vm0, %v380_v39  ;;  %414 = vst.msk [vmem:[#allocation2 + $0x169] sm:$0xff] %vm297_vm0, %v381_v40  ;;  %v11171_v49 = vld [vmem:[#allocation2 + $0xb1] sm:$0xff]  ;;  %v11173_v50 = vld [vmem:[#allocation2 + $0xc1] sm:$0xff] }
  0xe3   : > { %415 = vst.msk [vmem:[#allocation2 + $0x171] sm:$0xff] %vm297_vm0, %v382_v42  ;;  %v11179_v51 = vld [vmem:[#allocation2 + $0xc9] sm:$0xff]  ;;  %v11181_v52 = vld [vmem:[#allocation2 + $0xd9] sm:$0xff] }
  0xe4   : > { %v11187_v53 = vld [vmem:[#allocation2 + $0xe1] sm:$0xff]  ;;  %v11189_v54 = vld [vmem:[#allocation2 + $0xf1] sm:$0xff] }
  0xe5   : > { %8850 = vmatmul.mubr.msk.f32.gmra.mrb[6].mxu0 %vm297_vm0, %v11127_v34  ;;  %v11195_v55 = vld [vmem:[#allocation2 + $0xf9] sm:$0xff]  ;;  %v11197_v56 = vld [vmem:[#allocation2 + $0x109] sm:$0xff] }
  0xe6   : > { %8852 = vmatprep.mubr.msk.f32.mxu0 %vm297_vm0, %v11129_v35  ;;  %v11203_v57 = vld [vmem:[#allocation2 + $0x111] sm:$0xff]  ;;  %v11205_v58 = vld [vmem:[#allocation2 + $0x121] sm:$0xff] }
  0xe7   : > { %v11211_v59 = vld [vmem:[#allocation2 + $0x129] sm:$0xff]  ;;  %v11213_v60 = vld [vmem:[#allocation2 + $0x139] sm:$0xff] }
  0xe8   : > { %v11219_v61 = vld [vmem:[#allocation2 + $0x141] sm:$0xff]  ;;  %v11221_v62 = vld [vmem:[#allocation2 + $0x151] sm:$0xff] }
  0xe9   : > { %8853 = vmatmul.mubr.msk.f32.gmra.mrb[8].mxu0 %vm297_vm0, %v11142_v41  ;;  %12994 = vst [vmem:[#allocation18_spill] sm:$0xff] %v11221_v62  ;;  %v11227_v63 = vld [vmem:[#allocation2 + $0x159] sm:$0xff]  ;;  %v11229_v0 = vld [vmem:[#allocation2 + $0x169] sm:$0xff] }
  0xea   : > { %8855 = vmatprep.mubr.msk.f32.mxu0 %vm297_vm0, %v11148_v44  ;;  %12995 = vst [vmem:[#allocation19_spill] sm:$0xff] %v11227_v63  ;;  %12996 = vst [vmem:[#allocation20_spill] sm:$0xff] %v11229_v0  ;;  %v11235_v1 = vld [vmem:[#allocation2 + $0x171] sm:$0xff]  ;;  %v11247_v6 = vld [vmem:[#allocation2 + $0x20] sm:$0xff] }
  0xeb   : > { %12997 = vst [vmem:[#allocation21_spill] sm:$0xff] %v11235_v1  ;;  %v11249_v7 = vld [vmem:[#allocation2 + $0x30] sm:$0xff]  ;;  %v11256_v8 = vld [vmem:[#allocation2 + $0x38] sm:$0xff]  ;;  %v11258_v9 = vld [vmem:[#allocation2 + $0x48] sm:$0xff] }
  0xec   : > { %v11264_v10 = vld [vmem:[#allocation2 + $0x50] sm:$0xff]  ;;  %v11266_v11 = vld [vmem:[#allocation2 + $0x60] sm:$0xff]  ;;  %v11272_v12 = vld [vmem:[#allocation2 + $0x68] sm:$0xff] }
  0xed   : > { %8856 = vmatmul.mubr.msk.f32.gmra.mrb[10].mxu0 %vm297_vm0, %v11155_v45  ;;  %v11274_v13 = vld [vmem:[#allocation2 + $0x78] sm:$0xff]  ;;  %v11280_v14 = vld [vmem:[#allocation2 + $0x80] sm:$0xff]  ;;  %v11282_v15 = vld [vmem:[#allocation2 + $0x90] sm:$0xff] }
  0xee   : > { %8858 = vmatprep.mubr.msk.f32.mxu0 %vm297_vm0, %v11157_v46  ;;  %v11288_v16 = vld [vmem:[#allocation2 + $0x98] sm:$0xff]  ;;  %v11290_v17 = vld [vmem:[#allocation2 + $0xa8] sm:$0xff]  ;;  %v11296_v18 = vld [vmem:[#allocation2 + $0xb0] sm:$0xff] }
  0xef   : > { %v11298_v19 = vld [vmem:[#allocation2 + $0xc0] sm:$0xff]  ;;  %v11304_v20 = vld [vmem:[#allocation2 + $0xc8] sm:$0xff]  ;;  %v11306_v21 = vld [vmem:[#allocation2 + $0xd8] sm:$0xff] }
  0xf0   : > { %v11312_v22 = vld [vmem:[#allocation2 + $0xe0] sm:$0xff]  ;;  %v11314_v23 = vld [vmem:[#allocation2 + $0xf0] sm:$0xff]  ;;  %v11320_v24 = vld [vmem:[#allocation2 + $0xf8] sm:$0xff] }
  0xf1   : > { %8859 = vmatmul.mubr.msk.f32.gmra.mrb[12].mxu0 %vm297_vm0, %v11163_v47  ;;  %v11322_v26 = vld [vmem:[#allocation2 + $0x108] sm:$0xff]  ;;  %v11328_v27 = vld [vmem:[#allocation2 + $0x110] sm:$0xff]  ;;  %v11330_v29 = vld [vmem:[#allocation2 + $0x120] sm:$0xff] }
  0xf2   : > { %8861 = vmatprep.mubr.msk.f32.mxu0 %vm297_vm0, %v11165_v48  ;;  %v11336_v30 = vld [vmem:[#allocation2 + $0x128] sm:$0xff]  ;;  %v11338_v36 = vld [vmem:[#allocation2 + $0x138] sm:$0xff]  ;;  %v11344_v37 = vld [vmem:[#allocation2 + $0x140] sm:$0xff] }
  0xf3   : > { %v11346_v38 = vld [vmem:[#allocation2 + $0x150] sm:$0xff]  ;;  %v384_v40 = vld [vmem:[%s10827_s28 + $0xf8] sm:$0xff] }
  0xf4   : > { %v383_v39 = vld [vmem:[%s10827_s28 + $0xf0] sm:$0xff]  ;;  %417 = vst.msk [vmem:[#allocation2 + $0x189] sm:$0xff] %vm297_vm0, %v384_v40  ;;  %v11356_v42 = vld [vmem:[#allocation2 + $0x158] sm:$0xff] }
  0xf5   : > { %8862 = vmatmul.mubr.msk.f32.gmra.mrb[14].mxu0 %vm297_vm0, %v11171_v49  ;;  %416 = vst.msk [vmem:[#allocation2 + $0x181] sm:$0xff] %vm297_vm0, %v383_v39  ;;  %v1128_v39 = vld [vmem:[#allocation2 + $0xa] sm:$0xff]  ;;  %v11369_v40 = vld [vmem:[#allocation2 + $0x1a] sm:$0xff] }
  0xf6   : > { %8864 = vmatprep.mubr.msk.f32.mxu0 %vm297_vm0, %v11173_v50  ;;  %12998 = vst [vmem:[#allocation22_spill] sm:$0xff] %v11369_v40 }
  0xf9   : > { %8865 = vmatmul.mubr.msk.f32.gmra.mrb[16].mxu0 %vm297_vm0, %v11179_v51 }
  0xfa   : > { %8867 = vmatprep.mubr.msk.f32.mxu0 %vm297_vm0, %v11181_v52 }
  0xfd   : > { %8868 = vmatmul.mubr.msk.f32.gmra.mrb[18].mxu0 %vm297_vm0, %v11187_v53 }
  0xfe   : > { %8870 = vmatprep.mubr.msk.f32.mxu0 %vm297_vm0, %v11189_v54 }
 0x101   : > { %8871 = vmatmul.mubr.msk.f32.gmra.mrb[20].mxu0 %vm297_vm0, %v11195_v55 }
 0x102   : > { %8873 = vmatprep.mubr.msk.f32.mxu0 %vm297_vm0, %v11197_v56 }
 0x105   : > { %8874 = vmatmul.mubr.msk.f32.gmra.mrb[22].mxu0 %vm297_vm0, %v11203_v57 }
 0x106   : > { %8876 = vmatprep.mubr.msk.f32.mxu0 %vm297_vm0, %v11205_v58 }
 0x109   : > { %8877 = vmatmul.mubr.msk.f32.gmra.mrb[24].mxu0 %vm297_vm0, %v11211_v59 }
 0x10a   : > { %8879 = vmatprep.mubr.msk.f32.mxu0 %vm297_vm0, %v11213_v60 }
 0x10d   : > { %8880 = vmatmul.mubr.msk.f32.gmra.mrb[26].mxu0 %vm297_vm0, %v11219_v61 }
 0x10e   : > { %8882 = vmatprep.mubr.msk.f32.mxu0 %vm297_vm0, %v11221_v62 }
 0x111   : > { %8883 = vmatmul.mubr.msk.f32.gmra.mrb[28].mxu0 %vm297_vm0, %v11227_v63  ;;  %v11379_v63 = vld [vmem:[#allocation2 + $0x32] sm:$0xff] }
 0x112   : > { %8885 = vmatprep.mubr.msk.f32.mxu0 %vm297_vm0, %v11229_v0  ;;  %v11377_v0 = vld [vmem:[#allocation2 + $0x22] sm:$0xff]  ;;  %13000 = vst [vmem:[#allocation24_spill] sm:$0xff] %v11379_v63 }
 0x113   : > { %12999 = vst [vmem:[#allocation23_spill] sm:$0xff] %v11377_v0 }
 0x115   : > { %8886 = vmatmul.mubr.msk.f32.gmra.mrb[30].mxu0 %vm297_vm0, %v11235_v1  ;;  %v11371_v1 = vld [vmem:[#allocation7 + $0x20] sm:$0xff] }
 0x116   : > { %8890 = vmatprep.mubr.msk.f32.mxu0 %vm297_vm0, %v418_v2  ;;  %v11364_v2 = vld [vmem:[#allocation2 + $0x170] sm:$0xff] }
 0x119   : > { %8891 = vmatmul.mubr.msk.f32.vlgmr.msra.gmra.mrb[0].mxu0 %vm297_vm0, %v419_v3  ;;  %v1127_v3 = vld [vmem:[#allocation2 + $0x2] sm:$0xff] }
 0x11a   : > { %8939 = vmatpush3.msra.mxu0 %v1160_v43  ;;  %8893 = vmatprep.mubr.msk.f32.mxu0 %vm297_vm0, %v11240_v4  ;;  %v11358_v43 = vld [vmem:[#allocation2 + $0x168] sm:$0xff] }
 0x11b   : > { %8988 = vmatprep.subr.mxu0 %v11242_v5 }
 0x11d   : > { %8894 = vmatmul.mubr.msk.f32.gmra.mrb[2].mxu0 %vm297_vm0, %v11247_v6 }
 0x11e   : > { %8896 = vmatprep.mubr.msk.f32.mxu0 %vm297_vm0, %v11249_v7 }
 0x121   : > { %8897 = vmatmul.mubr.msk.f32.gmra.mrb[4].mxu0 %vm297_vm0, %v11256_v8 }
 0x122   : > { %8899 = vmatprep.mubr.msk.f32.mxu0 %vm297_vm0, %v11258_v9 }
 0x125   : > { %8900 = vmatmul.mubr.msk.f32.gmra.mrb[6].mxu0 %vm297_vm0, %v11264_v10 }
 0x126   : > { %8902 = vmatprep.mubr.msk.f32.mxu0 %vm297_vm0, %v11266_v11 }
 0x129   : > { %8903 = vmatmul.mubr.msk.f32.gmra.mrb[8].mxu0 %vm297_vm0, %v11272_v12 }
 0x12a   : > { %8905 = vmatprep.mubr.msk.f32.mxu0 %vm297_vm0, %v11274_v13 }
 0x12d   : > { %8906 = vmatmul.mubr.msk.f32.gmra.mrb[10].mxu0 %vm297_vm0, %v11280_v14 }
 0x12e   : > { %8908 = vmatprep.mubr.msk.f32.mxu0 %vm297_vm0, %v11282_v15 }
 0x131   : > { %8909 = vmatmul.mubr.msk.f32.gmra.mrb[12].mxu0 %vm297_vm0, %v11288_v16 }
 0x132   : > { %8911 = vmatprep.mubr.msk.f32.mxu0 %vm297_vm0, %v11290_v17 }
 0x135   : > { %8912 = vmatmul.mubr.msk.f32.gmra.mrb[14].mxu0 %vm297_vm0, %v11296_v18 }
 0x136   : > { %8914 = vmatprep.mubr.msk.f32.mxu0 %vm297_vm0, %v11298_v19 }
 0x139   : > { %8915 = vmatmul.mubr.msk.f32.gmra.mrb[16].mxu0 %vm297_vm0, %v11304_v20 }
 0x13a   : > { %8917 = vmatprep.mubr.msk.f32.mxu0 %vm297_vm0, %v11306_v21 }
 0x13d   : > { %8918 = vmatmul.mubr.msk.f32.gmra.mrb[18].mxu0 %vm297_vm0, %v11312_v22 }
 0x13e   : > { %8920 = vmatprep.mubr.msk.f32.mxu0 %vm297_vm0, %v11314_v23 }
 0x141   : > { %8921 = vmatmul.mubr.msk.f32.gmra.mrb[20].mxu0 %vm297_vm0, %v11320_v24 }
 0x142   : > { %8923 = vmatprep.mubr.msk.f32.mxu0 %vm297_vm0, %v11322_v26 }
 0x145   : > { %8924 = vmatmul.mubr.msk.f32.gmra.mrb[22].mxu0 %vm297_vm0, %v11328_v27 }
 0x146   : > { %8926 = vmatprep.mubr.msk.f32.mxu0 %vm297_vm0, %v11330_v29 }
 0x149   : > { %8927 = vmatmul.mubr.msk.f32.gmra.mrb[24].mxu0 %vm297_vm0, %v11336_v30 }
 0x14a   : > { %8929 = vmatprep.mubr.msk.f32.mxu0 %vm297_vm0, %v11338_v36 }
 0x14d   : > { %8930 = vmatmul.mubr.msk.f32.gmra.mrb[26].mxu0 %vm297_vm0, %v11344_v37 }
 0x14e   : > { %8932 = vmatprep.mubr.msk.f32.mxu0 %vm297_vm0, %v11346_v38 }
 0x151   : > { %8933 = vmatmul.mubr.msk.f32.gmra.mrb[28].mxu0 %vm297_vm0, %v11356_v42 }
 0x152   : > { %8935 = vmatprep.mubr.msk.f32.mxu0 %vm297_vm0, %v11358_v43 }
 0x155   : > { %8936 = vmatmul.mubr.msk.f32.gmra.mrb[30].mxu0 %vm297_vm0, %v11364_v2 }
 0x156   : > { %8940 = vmatprep.mubr.msk.f32.mxu0 %vm297_vm0, %v1127_v3  ;;  %v11386_v3 = vld [vmem:[#allocation2 + $0x3a] sm:$0xff] }
 0x157   : > { %13001 = vst [vmem:[#allocation25_spill] sm:$0xff] %v11386_v3 }
 0x159   : > { %8941 = vmatmul.mubr.msk.f32.vlgmr.msra.gmra.mrb[0].mxu0 %vm297_vm0, %v1128_v39  ;;  %v11388_v39 = vld [vmem:[#allocation2 + $0x4a] sm:$0xff] }
 0x15a   : > { %8989 = vmatpush3.msra.mxu0 %v11242_v5  ;;  %8943 = vmatprep.mubr.msk.f32.mxu0 %vm297_vm0, %v11369_v40  ;;  %13002 = vst [vmem:[#allocation26_spill] sm:$0xff] %v11388_v39  ;;  %v11394_v5 = vld [vmem:[#allocation2 + $0x52] sm:$0xff]  ;;  %v11396_v40 = vld [vmem:[#allocation2 + $0x62] sm:$0xff] }
 0x15b   : > { %9038 = vmatprep.subr.mxu0 %v11371_v1  ;;  %13003 = vst [vmem:[#allocation27_spill] sm:$0xff] %v11394_v5  ;;  %13004 = vst [vmem:[#allocation28_spill] sm:$0xff] %v11396_v40 }
 0x15d   : > { %8944 = vmatmul.mubr.msk.f32.gmra.mrb[2].mxu0 %vm297_vm0, %v11377_v0  ;;  %v11404_v0 = vld [vmem:[#allocation2 + $0x7a] sm:$0xff] }
 0x15e   : > { %8946 = vmatprep.mubr.msk.f32.mxu0 %vm297_vm0, %v11379_v63  ;;  %v11402_v63 = vld [vmem:[#allocation2 + $0x6a] sm:$0xff]  ;;  %13006 = vst [vmem:[#allocation30_spill] sm:$0xff] %v11404_v0 }
 0x15f   : > { %13005 = vst [vmem:[#allocation29_spill] sm:$0xff] %v11402_v63 }
 0x161   : > { %8947 = vmatmul.mubr.msk.f32.gmra.mrb[4].mxu0 %vm297_vm0, %v11386_v3  ;;  %v11412_v3 = vld [vmem:[#allocation2 + $0x92] sm:$0xff] }
 0x162   : > { %8949 = vmatprep.mubr.msk.f32.mxu0 %vm297_vm0, %v11388_v39  ;;  %v11410_v39 = vld [vmem:[#allocation2 + $0x82] sm:$0xff]  ;;  %13008 = vst [vmem:[#allocation32_spill] sm:$0xff] %v11412_v3 }
 0x163   : > { %13007 = vst [vmem:[#allocation31_spill] sm:$0xff] %v11410_v39 }
 0x165   : > { %8950 = vmatmul.mubr.msk.f32.gmra.mrb[6].mxu0 %vm297_vm0, %v11394_v5  ;;  %v11420_v5 = vld [vmem:[#allocation2 + $0xaa] sm:$0xff] }
 0x166   : > { %8952 = vmatprep.mubr.msk.f32.mxu0 %vm297_vm0, %v11396_v40  ;;  %v11418_v40 = vld [vmem:[#allocation2 + $0x9a] sm:$0xff]  ;;  %13010 = vst [vmem:[#allocation34_spill] sm:$0xff] %v11420_v5 }
 0x167   : > { %13009 = vst [vmem:[#allocation33_spill] sm:$0xff] %v11418_v40 }
 0x169   : > { %8953 = vmatmul.mubr.msk.f32.gmra.mrb[8].mxu0 %vm297_vm0, %v11402_v63  ;;  %v11428_v63 = vld [vmem:[#allocation2 + $0xc2] sm:$0xff] }
 0x16a   : > { %8955 = vmatprep.mubr.msk.f32.mxu0 %vm297_vm0, %v11404_v0  ;;  %v11426_v0 = vld [vmem:[#allocation2 + $0xb2] sm:$0xff]  ;;  %13012 = vst [vmem:[#allocation36_spill] sm:$0xff] %v11428_v63 }
 0x16b   : > { %13011 = vst [vmem:[#allocation35_spill] sm:$0xff] %v11426_v0 }
 0x16d   : > { %8956 = vmatmul.mubr.msk.f32.gmra.mrb[10].mxu0 %vm297_vm0, %v11410_v39  ;;  %v11436_v39 = vld [vmem:[#allocation2 + $0xda] sm:$0xff] }
 0x16e   : > { %8958 = vmatprep.mubr.msk.f32.mxu0 %vm297_vm0, %v11412_v3  ;;  %v11434_v3 = vld [vmem:[#allocation2 + $0xca] sm:$0xff]  ;;  %13014 = vst [vmem:[#allocation38_spill] sm:$0xff] %v11436_v39 }
 0x16f   : > { %13013 = vst [vmem:[#allocation37_spill] sm:$0xff] %v11434_v3 }
 0x171   : > { %8959 = vmatmul.mubr.msk.f32.gmra.mrb[12].mxu0 %vm297_vm0, %v11418_v40  ;;  %v11444_v40 = vld [vmem:[#allocation2 + $0xf2] sm:$0xff] }
 0x172   : > { %8961 = vmatprep.mubr.msk.f32.mxu0 %vm297_vm0, %v11420_v5  ;;  %v11442_v5 = vld [vmem:[#allocation2 + $0xe2] sm:$0xff]  ;;  %13016 = vst [vmem:[#allocation40_spill] sm:$0xff] %v11444_v40 }
 0x173   : > { %13015 = vst [vmem:[#allocation39_spill] sm:$0xff] %v11442_v5 }
 0x175   : > { %8962 = vmatmul.mubr.msk.f32.gmra.mrb[14].mxu0 %vm297_vm0, %v11426_v0  ;;  %v11452_v0 = vld [vmem:[#allocation2 + $0x10a] sm:$0xff] }
 0x176   : > { %8964 = vmatprep.mubr.msk.f32.mxu0 %vm297_vm0, %v11428_v63  ;;  %v11450_v63 = vld [vmem:[#allocation2 + $0xfa] sm:$0xff]  ;;  %13018 = vst [vmem:[#allocation42_spill] sm:$0xff] %v11452_v0 }
 0x177   : > { %13017 = vst [vmem:[#allocation41_spill] sm:$0xff] %v11450_v63 }
 0x179   : > { %8965 = vmatmul.mubr.msk.f32.gmra.mrb[16].mxu0 %vm297_vm0, %v11434_v3  ;;  %v11460_v3 = vld [vmem:[#allocation2 + $0x122] sm:$0xff] }
 0x17a   : > { %8967 = vmatprep.mubr.msk.f32.mxu0 %vm297_vm0, %v11436_v39  ;;  %v11458_v39 = vld [vmem:[#allocation2 + $0x112] sm:$0xff]  ;;  %13020 = vst [vmem:[#allocation44_spill] sm:$0xff] %v11460_v3 }
 0x17b   : > { %13019 = vst [vmem:[#allocation43_spill] sm:$0xff] %v11458_v39 }
 0x17d   : > { %8968 = vmatmul.mubr.msk.f32.gmra.mrb[18].mxu0 %vm297_vm0, %v11442_v5  ;;  %v11468_v5 = vld [vmem:[#allocation2 + $0x13a] sm:$0xff] }
 0x17e   : > { %8970 = vmatprep.mubr.msk.f32.mxu0 %vm297_vm0, %v11444_v40  ;;  %v11466_v40 = vld [vmem:[#allocation2 + $0x12a] sm:$0xff]  ;;  %13021 = vst [vmem:[#allocation45_spill] sm:$0xff] %v11468_v5 }
 0x181   : > { %8971 = vmatmul.mubr.msk.f32.gmra.mrb[20].mxu0 %vm297_vm0, %v11450_v63  ;;  %v11476_v63 = vld [vmem:[#allocation2 + $0x152] sm:$0xff] }
 0x182   : > { %8973 = vmatprep.mubr.msk.f32.mxu0 %vm297_vm0, %v11452_v0  ;;  %v11474_v0 = vld [vmem:[#allocation2 + $0x142] sm:$0xff] }
 0x183   : > { %13022 = vst [vmem:[#allocation46_spill] sm:$0xff] %v11474_v0 }
 0x185   : > { %8974 = vmatmul.mubr.msk.f32.gmra.mrb[22].mxu0 %vm297_vm0, %v11458_v39  ;;  %v11484_v39 = vld [vmem:[#allocation2 + $0x16a] sm:$0xff] }
 0x186   : > { %8976 = vmatprep.mubr.msk.f32.mxu0 %vm297_vm0, %v11460_v3  ;;  %v11482_v3 = vld [vmem:[#allocation2 + $0x15a] sm:$0xff] }
 0x187   : > { %13023 = vst [vmem:[#allocation47_spill] sm:$0xff] %v11482_v3 }
 0x189   : > { %8977 = vmatmul.mubr.msk.f32.gmra.mrb[24].mxu0 %vm297_vm0, %v11466_v40 }
 0x18a   : > { %8979 = vmatprep.mubr.msk.f32.mxu0 %vm297_vm0, %v11468_v5  ;;  %v11490_v5 = vld [vmem:[#allocation2 + $0x172] sm:$0xff] }
 0x18d   : > { %8980 = vmatmul.mubr.msk.f32.gmra.mrb[26].mxu0 %vm297_vm0, %v11474_v0  ;;  %v2321_v0 = vld [vmem:[#allocation7 + $0x28] sm:$0xff] }
 0x18e   : > { %8982 = vmatprep.mubr.msk.f32.mxu0 %vm297_vm0, %v11476_v63 }
 0x191   : > { %8983 = vmatmul.mubr.msk.f32.gmra.mrb[28].mxu0 %vm297_vm0, %v11482_v3 }
 0x192   : > { %8985 = vmatprep.mubr.msk.f32.mxu0 %vm297_vm0, %v11484_v39 }
 0x195   : > { %8986 = vmatmul.mubr.msk.f32.gmra.mrb[30].mxu0 %vm297_vm0, %v11490_v5 }
 0x196   : > { %8990 = vmatprep.mubr.msk.f32.mxu0 %vm297_vm0, %v11240_v4  ;;  %v11559_v4 = vld [vmem:[#allocation2 + $0x188] sm:$0xff] }
 0x199   : > { %8991 = vmatmul.mubr.msk.f32.vlgmr.msra.gmra.mrb[0].mxu0 %vm297_vm0, %v11247_v6  ;;  %v2709_v6 = vld [vmem:[#allocation7 + $0x30] sm:$0xff] }
 0x19a   : > { %9039 = vmatpush3.msra.mxu0 %v11371_v1  ;;  %8993 = vmatprep.mubr.msk.f32.mxu0 %vm297_vm0, %v11249_v7  ;;  %v11553_v1 = vld [vmem:[#allocation2 + $0x180] sm:$0xff] }
 0x19b   : > { %9088 = vmatprep.subr.mxu0 %v2321_v0 }
 0x19d   : > { %8994 = vmatmul.mubr.msk.f32.gmra.mrb[2].mxu0 %vm297_vm0, %v11256_v8 }
 0x19e   : > { %8996 = vmatprep.mubr.msk.f32.mxu0 %vm297_vm0, %v11258_v9 }
 0x1a1   : > { %8997 = vmatmul.mubr.msk.f32.gmra.mrb[4].mxu0 %vm297_vm0, %v11264_v10 }
 0x1a2   : > { %8999 = vmatprep.mubr.msk.f32.mxu0 %vm297_vm0, %v11266_v11 }
 0x1a5   : > { %9000 = vmatmul.mubr.msk.f32.gmra.mrb[6].mxu0 %vm297_vm0, %v11272_v12 }
 0x1a6   : > { %9002 = vmatprep.mubr.msk.f32.mxu0 %vm297_vm0, %v11274_v13 }
 0x1a9   : > { %9003 = vmatmul.mubr.msk.f32.gmra.mrb[8].mxu0 %vm297_vm0, %v11280_v14 }
 0x1aa   : > { %9005 = vmatprep.mubr.msk.f32.mxu0 %vm297_vm0, %v11282_v15 }
 0x1ad   : > { %9006 = vmatmul.mubr.msk.f32.gmra.mrb[10].mxu0 %vm297_vm0, %v11288_v16 }
 0x1ae   : > { %9008 = vmatprep.mubr.msk.f32.mxu0 %vm297_vm0, %v11290_v17 }
 0x1b1   : > { %9009 = vmatmul.mubr.msk.f32.gmra.mrb[12].mxu0 %vm297_vm0, %v11296_v18 }
 0x1b2   : > { %9011 = vmatprep.mubr.msk.f32.mxu0 %vm297_vm0, %v11298_v19 }
 0x1b5   : > { %9012 = vmatmul.mubr.msk.f32.gmra.mrb[14].mxu0 %vm297_vm0, %v11304_v20 }
 0x1b6   : > { %9014 = vmatprep.mubr.msk.f32.mxu0 %vm297_vm0, %v11306_v21 }
 0x1b9   : > { %9015 = vmatmul.mubr.msk.f32.gmra.mrb[16].mxu0 %vm297_vm0, %v11312_v22 }
 0x1ba   : > { %9017 = vmatprep.mubr.msk.f32.mxu0 %vm297_vm0, %v11314_v23 }
 0x1bd   : > { %9018 = vmatmul.mubr.msk.f32.gmra.mrb[18].mxu0 %vm297_vm0, %v11320_v24 }
 0x1be   : > { %9020 = vmatprep.mubr.msk.f32.mxu0 %vm297_vm0, %v11322_v26 }
 0x1c1   : > { %9021 = vmatmul.mubr.msk.f32.gmra.mrb[20].mxu0 %vm297_vm0, %v11328_v27 }
 0x1c2   : > { %9023 = vmatprep.mubr.msk.f32.mxu0 %vm297_vm0, %v11330_v29 }
 0x1c5   : > { %9024 = vmatmul.mubr.msk.f32.gmra.mrb[22].mxu0 %vm297_vm0, %v11336_v30 }
 0x1c6   : > { %9026 = vmatprep.mubr.msk.f32.mxu0 %vm297_vm0, %v11338_v36 }
 0x1c9   : > { %9027 = vmatmul.mubr.msk.f32.gmra.mrb[24].mxu0 %vm297_vm0, %v11344_v37 }
 0x1ca   : > { %9029 = vmatprep.mubr.msk.f32.mxu0 %vm297_vm0, %v11346_v38 }
 0x1cd   : > { %9030 = vmatmul.mubr.msk.f32.gmra.mrb[26].mxu0 %vm297_vm0, %v11356_v42 }
 0x1ce   : > { %9032 = vmatprep.mubr.msk.f32.mxu0 %vm297_vm0, %v11358_v43 }
 0x1d1   : > { %9033 = vmatmul.mubr.msk.f32.gmra.mrb[28].mxu0 %vm297_vm0, %v11364_v2 }
 0x1d2   : > { %9035 = vmatprep.mubr.msk.f32.mxu0 %vm297_vm0, %v11553_v1 }
 0x1d5   : > { %9036 = vmatmul.mubr.msk.f32.gmra.mrb[30].mxu0 %vm297_vm0, %v11559_v4 }
 0x1d6   : > { %9040 = vmatprep.mubr.msk.f32.mxu0 %vm297_vm0, %v11096_v25  ;;  %v13024_v25 = vld [vmem:[#allocation19_spill] sm:$0xff] }
 0x1d9   : > { %9041 = vmatmul.mubr.msk.f32.vlgmr.msra.gmra.mrb[0].mxu0 %vm297_vm0, %v11105_v28  ;;  %v13025_v28 = vld [vmem:[#allocation20_spill] sm:$0xff] }
 0x1da   : > { %9089 = vmatpush3.msra.mxu0 %v2321_v0  ;;  %9043 = vmatprep.mubr.msk.f32.mxu0 %vm297_vm0, %v11113_v31  ;;  %v11621_v31 = vld [vmem:[#allocation2 + $0x181] sm:$0xff]  ;;  %v3096_v0 = vld [vmem:[#allocation7 + $0x38] sm:$0xff] }
 0x1db   : > { %9138 = vmatprep.subr.mxu0 %v2709_v6  ;;  %13026 = vst [vmem:[#allocation48_spill] sm:$0xff] %v11621_v31 }
 0x1dd   : > { %9044 = vmatmul.mubr.msk.f32.gmra.mrb[2].mxu0 %vm297_vm0, %v11119_v32  ;;  %v13027_v32 = vld [vmem:[#allocation21_spill] sm:$0xff] }
 0x1de   : > { %9046 = vmatprep.mubr.msk.f32.mxu0 %vm297_vm0, %v11121_v33  ;;  %v11627_v33 = vld [vmem:[#allocation2 + $0x189] sm:$0xff] }
 0x1df   : > { %13028 = vst [vmem:[#allocation49_spill] sm:$0xff] %v11627_v33 }
 0x1e1   : > { %9047 = vmatmul.mubr.msk.f32.gmra.mrb[4].mxu0 %vm297_vm0, %v11127_v34  ;;  %v13029_v34 = vld [vmem:[#allocation22_spill] sm:$0xff] }
 0x1e2   : > { %9049 = vmatprep.mubr.msk.f32.mxu0 %vm297_vm0, %v11129_v35 }
 0x1e5   : > { %9050 = vmatmul.mubr.msk.f32.gmra.mrb[6].mxu0 %vm297_vm0, %v11142_v41 }
 0x1e6   : > { %9052 = vmatprep.mubr.msk.f32.mxu0 %vm297_vm0, %v11148_v44 }
 0x1e9   : > { %9053 = vmatmul.mubr.msk.f32.gmra.mrb[8].mxu0 %vm297_vm0, %v11155_v45 }
 0x1ea   : > { %9055 = vmatprep.mubr.msk.f32.mxu0 %vm297_vm0, %v11157_v46 }
 0x1ed   : > { %9056 = vmatmul.mubr.msk.f32.gmra.mrb[10].mxu0 %vm297_vm0, %v11163_v47 }
 0x1ee   : > { %9058 = vmatprep.mubr.msk.f32.mxu0 %vm297_vm0, %v11165_v48 }
 0x1f1   : > { %9059 = vmatmul.mubr.msk.f32.gmra.mrb[12].mxu0 %vm297_vm0, %v11171_v49 }
 0x1f2   : > { %9061 = vmatprep.mubr.msk.f32.mxu0 %vm297_vm0, %v11173_v50 }
 0x1f5   : > { %9062 = vmatmul.mubr.msk.f32.gmra.mrb[14].mxu0 %vm297_vm0, %v11179_v51 }
 0x1f6   : > { %9064 = vmatprep.mubr.msk.f32.mxu0 %vm297_vm0, %v11181_v52 }
 0x1f9   : > { %9065 = vmatmul.mubr.msk.f32.gmra.mrb[16].mxu0 %vm297_vm0, %v11187_v53 }
 0x1fa   : > { %9067 = vmatprep.mubr.msk.f32.mxu0 %vm297_vm0, %v11189_v54 }
 0x1fd   : > { %9068 = vmatmul.mubr.msk.f32.gmra.mrb[18].mxu0 %vm297_vm0, %v11195_v55 }
 0x1fe   : > { %9070 = vmatprep.mubr.msk.f32.mxu0 %vm297_vm0, %v11197_v56 }
 0x201   : > { %9071 = vmatmul.mubr.msk.f32.gmra.mrb[20].mxu0 %vm297_vm0, %v11203_v57 }
 0x202   : > { %9073 = vmatprep.mubr.msk.f32.mxu0 %vm297_vm0, %v11205_v58 }
 0x205   : > { %9074 = vmatmul.mubr.msk.f32.gmra.mrb[22].mxu0 %vm297_vm0, %v11211_v59 }
 0x206   : > { %9076 = vmatprep.mubr.msk.f32.mxu0 %vm297_vm0, %v11213_v60 }
 0x209   : > { %9077 = vmatmul.mubr.msk.f32.gmra.mrb[24].mxu0 %vm297_vm0, %v11219_v61 }
 0x20a   : > { %9079 = vmatprep.mubr.msk.f32.mxu0 %vm297_vm0, %v11221_v62  ;;  %v13034_v62 = vld [vmem:[#allocation27_spill] sm:$0xff] }
 0x20d   : > { %9080 = vmatmul.mubr.msk.f32.gmra.mrb[26].mxu0 %vm297_vm0, %v13024_v25  ;;  %v13030_v25 = vld [vmem:[#allocation23_spill] sm:$0xff] }
 0x20e   : > { %9082 = vmatprep.mubr.msk.f32.mxu0 %vm297_vm0, %v13025_v28  ;;  %v13031_v28 = vld [vmem:[#allocation24_spill] sm:$0xff] }
 0x211   : > { %9083 = vmatmul.mubr.msk.f32.gmra.mrb[28].mxu0 %vm297_vm0, %v13027_v32  ;;  %v13032_v32 = vld [vmem:[#allocation25_spill] sm:$0xff] }
 0x212   : > { %9085 = vmatprep.mubr.msk.f32.mxu0 %vm297_vm0, %v11621_v31  ;;  %v13033_v31 = vld [vmem:[#allocation26_spill] sm:$0xff] }
 0x215   : > { %9086 = vmatmul.mubr.msk.f32.gmra.mrb[30].mxu0 %vm297_vm0, %v11627_v33  ;;  %v13035_v33 = vld [vmem:[#allocation28_spill] sm:$0xff] }
 0x216   : > { %9090 = vmatprep.mubr.msk.f32.mxu0 %vm297_vm0, %v13029_v34  ;;  %v13036_v34 = vld [vmem:[#allocation29_spill] sm:$0xff] }
 0x219   : > { %9091 = vmatmul.mubr.msk.f32.vlgmr.msra.gmra.mrb[0].mxu0 %vm297_vm0, %v13030_v25  ;;  %v13038_v25 = vld [vmem:[#allocation31_spill] sm:$0xff] }
 0x21a   : > { %9139 = vmatpush3.msra.mxu0 %v2709_v6  ;;  %9093 = vmatprep.mubr.msk.f32.mxu0 %vm297_vm0, %v13031_v28  ;;  %v13037_v6 = vld [vmem:[#allocation30_spill] sm:$0xff]  ;;  %v13039_v28 = vld [vmem:[#allocation32_spill] sm:$0xff] }
 0x21b   : > { %9188 = vmatprep.subr.mxu0 %v3096_v0 }
 0x21d   : > { %9094 = vmatmul.mubr.msk.f32.gmra.mrb[2].mxu0 %vm297_vm0, %v13032_v32  ;;  %v13040_v32 = vld [vmem:[#allocation33_spill] sm:$0xff] }
 0x21e   : > { %9096 = vmatprep.mubr.msk.f32.mxu0 %vm297_vm0, %v13033_v31  ;;  %v13041_v31 = vld [vmem:[#allocation34_spill] sm:$0xff] }
 0x221   : > { %9097 = vmatmul.mubr.msk.f32.gmra.mrb[4].mxu0 %vm297_vm0, %v13034_v62  ;;  %v13042_v62 = vld [vmem:[#allocation35_spill] sm:$0xff] }
 0x222   : > { %9099 = vmatprep.mubr.msk.f32.mxu0 %vm297_vm0, %v13035_v33  ;;  %v13043_v33 = vld [vmem:[#allocation36_spill] sm:$0xff] }
 0x225   : > { %9100 = vmatmul.mubr.msk.f32.gmra.mrb[6].mxu0 %vm297_vm0, %v13036_v34  ;;  %v13044_v34 = vld [vmem:[#allocation37_spill] sm:$0xff] }
 0x226   : > { %9102 = vmatprep.mubr.msk.f32.mxu0 %vm297_vm0, %v13037_v6  ;;  %v13045_v6 = vld [vmem:[#allocation38_spill] sm:$0xff] }
 0x229   : > { %9103 = vmatmul.mubr.msk.f32.gmra.mrb[8].mxu0 %vm297_vm0, %v13038_v25  ;;  %v13046_v25 = vld [vmem:[#allocation39_spill] sm:$0xff] }
 0x22a   : > { %9105 = vmatprep.mubr.msk.f32.mxu0 %vm297_vm0, %v13039_v28  ;;  %v13047_v28 = vld [vmem:[#allocation40_spill] sm:$0xff] }
 0x22d   : > { %9106 = vmatmul.mubr.msk.f32.gmra.mrb[10].mxu0 %vm297_vm0, %v13040_v32  ;;  %v13048_v32 = vld [vmem:[#allocation41_spill] sm:$0xff] }
 0x22e   : > { %9108 = vmatprep.mubr.msk.f32.mxu0 %vm297_vm0, %v13041_v31  ;;  %v13049_v31 = vld [vmem:[#allocation42_spill] sm:$0xff] }
 0x231   : > { %9109 = vmatmul.mubr.msk.f32.gmra.mrb[12].mxu0 %vm297_vm0, %v13042_v62  ;;  %v13050_v62 = vld [vmem:[#allocation43_spill] sm:$0xff] }
 0x232   : > { %9111 = vmatprep.mubr.msk.f32.mxu0 %vm297_vm0, %v13043_v33  ;;  %v13051_v33 = vld [vmem:[#allocation44_spill] sm:$0xff] }
 0x235   : > { %9112 = vmatmul.mubr.msk.f32.gmra.mrb[14].mxu0 %vm297_vm0, %v13044_v34 }
 0x236   : > { %9114 = vmatprep.mubr.msk.f32.mxu0 %vm297_vm0, %v13045_v6  ;;  %v13052_v6 = vld [vmem:[#allocation45_spill] sm:$0xff] }
 0x239   : > { %9115 = vmatmul.mubr.msk.f32.gmra.mrb[16].mxu0 %vm297_vm0, %v13046_v25  ;;  %v13053_v25 = vld [vmem:[#allocation46_spill] sm:$0xff] }
 0x23a   : > { %9117 = vmatprep.mubr.msk.f32.mxu0 %vm297_vm0, %v13047_v28 }
 0x23d   : > { %9118 = vmatmul.mubr.msk.f32.gmra.mrb[18].mxu0 %vm297_vm0, %v13048_v32 }
 0x23e   : > { %9120 = vmatprep.mubr.msk.f32.mxu0 %vm297_vm0, %v13049_v31 }
 0x241   : > { %9121 = vmatmul.mubr.msk.f32.gmra.mrb[20].mxu0 %vm297_vm0, %v13050_v62  ;;  %v11689_v62 = vld [vmem:[#allocation2 + $0x182] sm:$0xff] }
 0x242   : > { %9123 = vmatprep.mubr.msk.f32.mxu0 %vm297_vm0, %v13051_v33 }
 0x245   : > { %9124 = vmatmul.mubr.msk.f32.gmra.mrb[22].mxu0 %vm297_vm0, %v11466_v40 }
 0x246   : > { %9126 = vmatprep.mubr.msk.f32.mxu0 %vm297_vm0, %v13052_v6  ;;  %v11695_v6 = vld [vmem:[#allocation2 + $0x18a] sm:$0xff] }
 0x249   : > { %9127 = vmatmul.mubr.msk.f32.gmra.mrb[24].mxu0 %vm297_vm0, %v13053_v25 }
 0x24a   : > { %9129 = vmatprep.mubr.msk.f32.mxu0 %vm297_vm0, %v11476_v63 }
 0x24d   : > { %9130 = vmatmul.mubr.msk.f32.gmra.mrb[26].mxu0 %vm297_vm0, %v11482_v3  ;;  %v3483_v3 = vld [vmem:[#allocation7 + $0x40] sm:$0xff] }
 0x24e   : > { %9132 = vmatprep.mubr.msk.f32.mxu0 %vm297_vm0, %v11484_v39 }
 0x251   : > { %9133 = vmatmul.mubr.msk.f32.gmra.mrb[28].mxu0 %vm297_vm0, %v11490_v5 }
 0x252   : > { %9135 = vmatprep.mubr.msk.f32.mxu0 %vm297_vm0, %v11689_v62 }
 0x255   : > { %9136 = vmatmul.mubr.msk.f32.gmra.mrb[30].mxu0 %vm297_vm0, %v11695_v6 }
 0x256   : > { %9140 = vmatprep.mubr.msk.f32.mxu0 %vm297_vm0, %v11249_v7  ;;  %v2706_v7 = vld [vmem:[#allocation2 + $0x198] sm:$0xff] }
 0x259   : > { %9141 = vmatmul.mubr.msk.f32.vlgmr.msra.gmra.mrb[0].mxu0 %vm297_vm0, %v11256_v8  ;;  %v2707_v8 = vld [vmem:[#allocation2 + $0x1a0] sm:$0xff] }
 0x25a   : > { %9189 = vmatpush3.msra.mxu0 %v3096_v0  ;;  %9143 = vmatprep.mubr.msk.f32.mxu0 %vm297_vm0, %v11258_v9  ;;  %v3063_v9 = vld [vmem:[#allocation2 + $0x31] sm:$0xff] }
 0x25b   : > { %9238 = vmatprep.subr.mxu0 %v3483_v3 }
 0x25d   : > { %9144 = vmatmul.mubr.msk.f32.gmra.mrb[2].mxu0 %vm297_vm0, %v11264_v10  ;;  %v3064_v10 = vld [vmem:[#allocation2 + $0x39] sm:$0xff] }
 0x25e   : > { %9146 = vmatprep.mubr.msk.f32.mxu0 %vm297_vm0, %v11266_v11  ;;  %v3065_v11 = vld [vmem:[#allocation2 + $0x49] sm:$0xff] }
 0x261   : > { %9147 = vmatmul.mubr.msk.f32.gmra.mrb[4].mxu0 %vm297_vm0, %v11272_v12  ;;  %v3066_v12 = vld [vmem:[#allocation2 + $0x51] sm:$0xff] }
 0x262   : > { %9149 = vmatprep.mubr.msk.f32.mxu0 %vm297_vm0, %v11274_v13  ;;  %v13072_v13 = vld [vmem:[#allocation36_spill] sm:$0xff] }
 0x265   : > { %9150 = vmatmul.mubr.msk.f32.gmra.mrb[6].mxu0 %vm297_vm0, %v11280_v14  ;;  %v13073_v14 = vld [vmem:[#allocation38_spill] sm:$0xff] }
 0x266   : > { %9152 = vmatprep.mubr.msk.f32.mxu0 %vm297_vm0, %v11282_v15  ;;  %v13074_v15 = vld [vmem:[#allocation39_spill] sm:$0xff] }
 0x269   : > { %9153 = vmatmul.mubr.msk.f32.gmra.mrb[8].mxu0 %vm297_vm0, %v11288_v16  ;;  %v13075_v16 = vld [vmem:[#allocation43_spill] sm:$0xff] }
 0x26a   : > { %9155 = vmatprep.mubr.msk.f32.mxu0 %vm297_vm0, %v11290_v17  ;;  %v13076_v17 = vld [vmem:[#allocation45_spill] sm:$0xff] }
 0x26d   : > { %9156 = vmatmul.mubr.msk.f32.gmra.mrb[10].mxu0 %vm297_vm0, %v11296_v18  ;;  %v13077_v18 = vld [vmem:[#allocation47_spill] sm:$0xff] }
 0x26e   : > { %9158 = vmatprep.mubr.msk.f32.mxu0 %vm297_vm0, %v11298_v19  ;;  %v3480_v19 = vld [vmem:[#allocation2 + $0x19a] sm:$0xff] }
 0x271   : > { %9159 = vmatmul.mubr.msk.f32.gmra.mrb[12].mxu0 %vm297_vm0, %v11304_v20  ;;  %v3481_v20 = vld [vmem:[#allocation2 + $0x1a2] sm:$0xff] }
 0x272   : > { %9161 = vmatprep.mubr.msk.f32.mxu0 %vm297_vm0, %v11306_v21  ;;  %v4028_v21 = vld [vmem:[#allocation3 + $0x1] sm:$0xff] }
 0x273   : > { %9290 = vmatprep.mubr.msk.f32.mxu1 %vm297_vm0, %v4028_v21 }
 0x275   : > { %9162 = vmatmul.mubr.msk.f32.gmra.mrb[14].mxu0 %vm297_vm0, %v11312_v22  ;;  %v4029_v22 = vld [vmem:[#allocation3 + $0x9] sm:$0xff] }
 0x276   : > { %9164 = vmatprep.mubr.msk.f32.mxu0 %vm297_vm0, %v11314_v23  ;;  %v4027_v23 = vld [vmem:[#allocation10] sm:$0xff] }
 0x279   : > { %9165 = vmatmul.mubr.msk.f32.gmra.mrb[16].mxu0 %vm297_vm0, %v11320_v24  ;;  %v11886_v24 = vld [vmem:[#allocation9] ss:$0 sm:$0xff] }
 0x27a   : > { %9167 = vmatprep.mubr.msk.f32.mxu0 %vm297_vm0, %v11322_v26 }
 0x27d   : > { %9168 = vmatmul.mubr.msk.f32.gmra.mrb[18].mxu0 %vm297_vm0, %v11328_v27 }
 0x27e   : > { %9170 = vmatprep.mubr.msk.f32.mxu0 %vm297_vm0, %v11330_v29 }
 0x281   : > { %9171 = vmatmul.mubr.msk.f32.gmra.mrb[20].mxu0 %vm297_vm0, %v11336_v30 }
 0x282   : > { %9173 = vmatprep.mubr.msk.f32.mxu0 %vm297_vm0, %v11338_v36 }
 0x285   : > { %9174 = vmatmul.mubr.msk.f32.gmra.mrb[22].mxu0 %vm297_vm0, %v11344_v37 }
 0x286   : > { %9176 = vmatprep.mubr.msk.f32.mxu0 %vm297_vm0, %v11346_v38 }
 0x289   : > { %9177 = vmatmul.mubr.msk.f32.gmra.mrb[24].mxu0 %vm297_vm0, %v11356_v42 }
 0x28a   : > { %9179 = vmatprep.mubr.msk.f32.mxu0 %vm297_vm0, %v11358_v43 }
 0x28d   : > { %9180 = vmatmul.mubr.msk.f32.gmra.mrb[26].mxu0 %vm297_vm0, %v11364_v2 }
 0x28e   : > { %9182 = vmatprep.mubr.msk.f32.mxu0 %vm297_vm0, %v11553_v1 }
 0x291   : > { %9183 = vmatmul.mubr.msk.f32.gmra.mrb[28].mxu0 %vm297_vm0, %v11559_v4 }
 0x292   : > { %9185 = vmatprep.mubr.msk.f32.mxu0 %vm297_vm0, %v2706_v7 }
 0x295   : > { %9186 = vmatmul.mubr.msk.f32.gmra.mrb[30].mxu0 %vm297_vm0, %v2707_v8 }
 0x296   : > { %9190 = vmatprep.mubr.msk.f32.mxu0 %vm297_vm0, %v3063_v9 }
 0x299   : > { %9191 = vmatmul.mubr.msk.f32.vlgmr.msra.gmra.mrb[0].mxu0 %vm297_vm0, %v3064_v10 }
 0x29a   : > { %9239 = vmatpush3.msra.mxu0 %v3483_v3  ;;  %9193 = vmatprep.mubr.msk.f32.mxu0 %vm297_vm0, %v3065_v11 }
 0x29d   : > { %9194 = vmatmul.mubr.msk.f32.gmra.mrb[2].mxu0 %vm297_vm0, %v3066_v12 }
 0x29e   : > { %9196 = vmatprep.mubr.msk.f32.mxu0 %vm297_vm0, %v11129_v35  ;;  %v13054_v35 = vld [vmem:[#allocation18_spill] sm:$0xff] }
 0x2a1   : > { %9197 = vmatmul.mubr.msk.f32.gmra.mrb[4].mxu0 %vm297_vm0, %v11142_v41  ;;  %v13055_v41 = vld [vmem:[#allocation19_spill] sm:$0xff] }
 0x2a2   : > { %9199 = vmatprep.mubr.msk.f32.mxu0 %vm297_vm0, %v11148_v44  ;;  %v13056_v44 = vld [vmem:[#allocation20_spill] sm:$0xff] }
 0x2a5   : > { %9200 = vmatmul.mubr.msk.f32.gmra.mrb[6].mxu0 %vm297_vm0, %v11155_v45  ;;  %v13057_v45 = vld [vmem:[#allocation21_spill] sm:$0xff] }
 0x2a6   : > { %9202 = vmatprep.mubr.msk.f32.mxu0 %vm297_vm0, %v11157_v46  ;;  %v13058_v46 = vld [vmem:[#allocation48_spill] sm:$0xff] }
 0x2a9   : > { %9203 = vmatmul.mubr.msk.f32.gmra.mrb[8].mxu0 %vm297_vm0, %v11163_v47  ;;  %v3093_v47 = vld [vmem:[#allocation2 + $0x199] sm:$0xff] }
 0x2aa   : > { %9205 = vmatprep.mubr.msk.f32.mxu0 %vm297_vm0, %v11165_v48  ;;  %v13059_v48 = vld [vmem:[#allocation49_spill] sm:$0xff] }
 0x2ad   : > { %9206 = vmatmul.mubr.msk.f32.gmra.mrb[10].mxu0 %vm297_vm0, %v11171_v49  ;;  %v3094_v49 = vld [vmem:[#allocation2 + $0x1a1] sm:$0xff] }
 0x2ae   : > { %9208 = vmatprep.mubr.msk.f32.mxu0 %vm297_vm0, %v11173_v50  ;;  %v13060_v50 = vld [vmem:[#allocation24_spill] sm:$0xff] }
 0x2b1   : > { %9209 = vmatmul.mubr.msk.f32.gmra.mrb[12].mxu0 %vm297_vm0, %v11179_v51  ;;  %v13061_v51 = vld [vmem:[#allocation25_spill] sm:$0xff] }
 0x2b2   : > { %9211 = vmatprep.mubr.msk.f32.mxu0 %vm297_vm0, %v11181_v52  ;;  %v13062_v52 = vld [vmem:[#allocation26_spill] sm:$0xff] }
 0x2b5   : > { %9212 = vmatmul.mubr.msk.f32.gmra.mrb[14].mxu0 %vm297_vm0, %v11187_v53  ;;  %v13063_v53 = vld [vmem:[#allocation27_spill] sm:$0xff] }
 0x2b6   : > { %9214 = vmatprep.mubr.msk.f32.mxu0 %vm297_vm0, %v11189_v54  ;;  %v13064_v54 = vld [vmem:[#allocation28_spill] sm:$0xff] }
 0x2b9   : > { %9215 = vmatmul.mubr.msk.f32.gmra.mrb[16].mxu0 %vm297_vm0, %v11195_v55  ;;  %v13065_v55 = vld [vmem:[#allocation29_spill] sm:$0xff] }
 0x2ba   : > { %9217 = vmatprep.mubr.msk.f32.mxu0 %vm297_vm0, %v11197_v56  ;;  %v13066_v56 = vld [vmem:[#allocation30_spill] sm:$0xff] }
 0x2bd   : > { %9218 = vmatmul.mubr.msk.f32.gmra.mrb[18].mxu0 %vm297_vm0, %v11203_v57  ;;  %v13067_v57 = vld [vmem:[#allocation31_spill] sm:$0xff] }
 0x2be   : > { %9220 = vmatprep.mubr.msk.f32.mxu0 %vm297_vm0, %v11205_v58  ;;  %v13068_v58 = vld [vmem:[#allocation32_spill] sm:$0xff] }
 0x2c1   : > { %9221 = vmatmul.mubr.msk.f32.gmra.mrb[20].mxu0 %vm297_vm0, %v11211_v59  ;;  %v13069_v59 = vld [vmem:[#allocation33_spill] sm:$0xff] }
 0x2c2   : > { %9223 = vmatprep.mubr.msk.f32.mxu0 %vm297_vm0, %v11213_v60  ;;  %v13070_v60 = vld [vmem:[#allocation34_spill] sm:$0xff] }
 0x2c5   : > { %9224 = vmatmul.mubr.msk.f32.gmra.mrb[22].mxu0 %vm297_vm0, %v11219_v61  ;;  %v13071_v61 = vld [vmem:[#allocation35_spill] sm:$0xff] }
 0x2c6   : > { %9226 = vmatprep.mubr.msk.f32.mxu0 %vm297_vm0, %v13054_v35 }
 0x2c9   : > { %9227 = vmatmul.mubr.msk.f32.gmra.mrb[24].mxu0 %vm297_vm0, %v13055_v41 }
 0x2ca   : > { %9229 = vmatprep.mubr.msk.f32.mxu0 %vm297_vm0, %v13056_v44 }
 0x2cd   : > { %9230 = vmatmul.mubr.msk.f32.gmra.mrb[26].mxu0 %vm297_vm0, %v13057_v45 }
 0x2ce   : > { %9232 = vmatprep.mubr.msk.f32.mxu0 %vm297_vm0, %v13058_v46 }
 0x2d1   : > { %9233 = vmatmul.mubr.msk.f32.gmra.mrb[28].mxu0 %vm297_vm0, %v13059_v48 }
 0x2d2   : > { %9235 = vmatprep.mubr.msk.f32.mxu0 %vm297_vm0, %v3093_v47 }
 0x2d5   : > { %9236 = vmatmul.mubr.msk.f32.gmra.mrb[30].mxu0 %vm297_vm0, %v3094_v49 }
 0x2d6   : > { %9240 = vmatprep.mubr.msk.f32.mxu0 %vm297_vm0, %v13060_v50 }
 0x2d9   : > { %9241 = vmatmul.mubr.msk.f32.vlgmr.msra.gmra.mrb[0].mxu0 %vm297_vm0, %v13061_v51 }
 0x2da   : > { %9243 = vmatprep.mubr.msk.f32.mxu0 %vm297_vm0, %v13062_v52 }
 0x2dd   : > { %9244 = vmatmul.mubr.msk.f32.gmra.mrb[2].mxu0 %vm297_vm0, %v13063_v53 }
 0x2de   : > { %9246 = vmatprep.mubr.msk.f32.mxu0 %vm297_vm0, %v13064_v54 }
 0x2e1   : > { %9247 = vmatmul.mubr.msk.f32.gmra.mrb[4].mxu0 %vm297_vm0, %v13065_v55 }
 0x2e2   : > { %9249 = vmatprep.mubr.msk.f32.mxu0 %vm297_vm0, %v13066_v56 }
 0x2e5   : > { %9250 = vmatmul.mubr.msk.f32.gmra.mrb[6].mxu0 %vm297_vm0, %v13067_v57 }
 0x2e6   : > { %9252 = vmatprep.mubr.msk.f32.mxu0 %vm297_vm0, %v13068_v58 }
 0x2e9   : > { %9253 = vmatmul.mubr.msk.f32.gmra.mrb[8].mxu0 %vm297_vm0, %v13069_v59 }
 0x2ea   : > { %9255 = vmatprep.mubr.msk.f32.mxu0 %vm297_vm0, %v13070_v60 }
 0x2ed   : > { %9256 = vmatmul.mubr.msk.f32.gmra.mrb[10].mxu0 %vm297_vm0, %v13071_v61 }
 0x2ee   : > { %9258 = vmatprep.mubr.msk.f32.mxu0 %vm297_vm0, %v13072_v13 }
 0x2f1   : > { %9259 = vmatmul.mubr.msk.f32.gmra.mrb[12].mxu0 %vm297_vm0, %v13044_v34 }
 0x2f2   : > { %9261 = vmatprep.mubr.msk.f32.mxu0 %vm297_vm0, %v13073_v14 }
 0x2f5   : > { %9262 = vmatmul.mubr.msk.f32.gmra.mrb[14].mxu0 %vm297_vm0, %v13074_v15 }
 0x2f6   : > { %9264 = vmatprep.mubr.msk.f32.mxu0 %vm297_vm0, %v13047_v28 }
 0x2f9   : > { %9265 = vmatmul.mubr.msk.f32.gmra.mrb[16].mxu0 %vm297_vm0, %v13048_v32 }
 0x2fa   : > { %9267 = vmatprep.mubr.msk.f32.mxu0 %vm297_vm0, %v13049_v31 }
 0x2fd   : > { %9268 = vmatmul.mubr.msk.f32.gmra.mrb[18].mxu0 %vm297_vm0, %v13075_v16 }
 0x2fe   : > { %9270 = vmatprep.mubr.msk.f32.mxu0 %vm297_vm0, %v13051_v33 }
 0x301   : > { %9271 = vmatmul.mubr.msk.f32.gmra.mrb[20].mxu0 %vm297_vm0, %v11466_v40 }
 0x302   : > { %9273 = vmatprep.mubr.msk.f32.mxu0 %vm297_vm0, %v13076_v17 }
 0x305   : > { %9274 = vmatmul.mubr.msk.f32.gmra.mrb[22].mxu0 %vm297_vm0, %v13053_v25 }
 0x306   : > { %9276 = vmatprep.mubr.msk.f32.mxu0 %vm297_vm0, %v11476_v63  ;;  %v4061_v63 = vld [vmem:[#allocation10 + $0x8] sm:$0xff] }
 0x307   : > { %9288 = vmatprep.subr.mxu1 %v4061_v63 }
 0x308   : > { %9289 = vmatpush3.msra.mxu1 %v4061_v63 }
 0x309   : > { %9277 = vmatmul.mubr.msk.f32.gmra.mrb[24].mxu0 %vm297_vm0, %v13077_v18  ;;  %9291 = vmatmul.mubr.msk.f32.vlgmr.msra.gmra.mrb[0].mxu1 %vm297_vm0, %v4029_v22 }
 0x30a   : > { %9279 = vmatprep.mubr.msk.f32.mxu0 %vm297_vm0, %v11484_v39  ;;  %9338 = vmatprep.subr.mxu1 %v4027_v23 }
 0x30b   : > { %9339 = vmatpush3.msra.mxu1 %v4027_v23 }
 0x30d   : > { %9280 = vmatmul.mubr.msk.f32.gmra.mrb[26].mxu0 %vm297_vm0, %v11490_v5 }
 0x30e   : > { %9282 = vmatprep.mubr.msk.f32.mxu0 %vm297_vm0, %v11689_v62  ;;  %v11883_v62 = vld [vmem:[#allocation10 + $0x10] sm:$0xff] }
 0x30f   : > { %9388 = vmatprep.subr.mxu1 %v11883_v62 }
 0x311   : > { %9283 = vmatmul.mubr.msk.f32.gmra.mrb[28].mxu0 %vm297_vm0, %v11695_v6 }
 0x312   : > { %9285 = vmatprep.mubr.msk.f32.mxu0 %vm297_vm0, %v3480_v19 }
 0x315   : > { %9286 = vmatmul.mubr.msk.f32.gmra.mrb[30].mxu0 %vm297_vm0, %v3481_v20 }
 0x3ac   : > { %v9242_v26 = vpop.f32.mrb[0].mxu0 }
 0x3ad   : > { %v3845_v27 = vadd.f32 %v9242_v26, %v11886_v24  ;;  %v3646_v29 = vpop.f32.mrb[1].mxu0 }
 0x3ae   : > { %v3844_v30 = vadd.f32 %v11886_v24, %v3646_v29 }
 0x3af   : > { %v3877_v36 = vmax.f32 %v3845_v27, 0.0 }
 0x3b0   : > { %v3876_v37 = vmax.f32 %v3844_v30, 0.0  ;;  %v9245_v38 = vpop.f32.mrb[2].mxu0 }
 0x3b1   : > { %3964 = vst.msk [vmem:[#allocation3 + $0x21] sm:$0xff] %vm297_vm0, %v3877_v36  ;;  %v3847_v42 = vadd.f32 %v9245_v38, %v11886_v24  ;;  %v3656_v43 = vpop.f32.mrb[3].mxu0 }
 0x3b2   : > { %3963 = vst.msk [vmem:[#allocation3 + $0x19] sm:$0xff] %vm297_vm0, %v3876_v37  ;;  %v3846_v2 = vadd.f32 %v11886_v24, %v3656_v43 }
 0x3b3   : > { %v3879_v40 = vmax.f32 %v3847_v42, 0.0 }
 0x3b4   : > { %v3878_v3 = vmax.f32 %v3846_v2, 0.0  ;;  %v9248_v39 = vpop.f32.mrb[4].mxu0 }
 0x3b5   : > { %3966 = vst.msk [vmem:[#allocation3 + $0x39] sm:$0xff] %vm297_vm0, %v3879_v40  ;;  %v3849_v5 = vadd.f32 %v9248_v39, %v11886_v24  ;;  %v3666_v1 = vpop.f32.mrb[5].mxu0 }
 0x3b6   : > { %3965 = vst.msk [vmem:[#allocation3 + $0x31] sm:$0xff] %vm297_vm0, %v3878_v3  ;;  %v3848_v4 = vadd.f32 %v11886_v24, %v3666_v1 }
 0x3b7   : > { %v3881_v28 = vmax.f32 %v3849_v5, 0.0 }
 0x3b8   : > { %v3880_v31 = vmax.f32 %v3848_v4, 0.0  ;;  %v9251_v32 = vpop.f32.mrb[6].mxu0  ;;  %v11906_v25 = vld [vmem:[#allocation3 + $0x21] sm:$0xff] }
 0x3b9   : > { %3968 = vst.msk [vmem:[#allocation3 + $0x51] sm:$0xff] %vm297_vm0, %v3881_v28  ;;  %v3851_v33 = vadd.f32 %v9251_v32, %v11886_v24  ;;  %v3676_v0 = vpop.f32.mrb[7].mxu0  ;;  %v11900_v34 = vld [vmem:[#allocation3 + $0x19] sm:$0xff] }
 0x3ba   : > { %3967 = vst.msk [vmem:[#allocation3 + $0x49] sm:$0xff] %vm297_vm0, %v3880_v31  ;;  %v3850_v6 = vadd.f32 %v11886_v24, %v3676_v0  ;;  %9293 = vmatprep.mubr.msk.f32.mxu1 %vm297_vm0, %v11900_v34 }
 0x3bb   : > { %v3883_v7 = vmax.f32 %v3851_v33, 0.0  ;;  %9294 = vmatmul.mubr.msk.f32.gmra.mrb[2].mxu1 %vm297_vm0, %v11906_v25 }
 0x3bc   : > { %v3882_v8 = vmax.f32 %v3850_v6, 0.0  ;;  %v9254_v9 = vpop.f32.mrb[8].mxu0  ;;  %v11918_v41 = vld [vmem:[#allocation3 + $0x39] sm:$0xff] }
 0x3bd   : > { %3970 = vst.msk [vmem:[#allocation3 + $0x69] sm:$0xff] %vm297_vm0, %v3883_v7  ;;  %v3853_v10 = vadd.f32 %v9254_v9, %v11886_v24  ;;  %v3686_v11 = vpop.f32.mrb[9].mxu0  ;;  %v11912_v12 = vld [vmem:[#allocation3 + $0x31] sm:$0xff] }
 0x3be   : > { %3969 = vst.msk [vmem:[#allocation3 + $0x61] sm:$0xff] %vm297_vm0, %v3882_v8  ;;  %v3852_v35 = vadd.f32 %v11886_v24, %v3686_v11  ;;  %9296 = vmatprep.mubr.msk.f32.mxu1 %vm297_vm0, %v11912_v12 }
 0x3bf   : > { %v3885_v44 = vmax.f32 %v3853_v10, 0.0  ;;  %9297 = vmatmul.mubr.msk.f32.gmra.mrb[4].mxu1 %vm297_vm0, %v11918_v41 }
 0x3c0   : > { %v3884_v45 = vmax.f32 %v3852_v35, 0.0  ;;  %v9257_v46 = vpop.f32.mrb[10].mxu0  ;;  %v11930_v51 = vld [vmem:[#allocation3 + $0x51] sm:$0xff] }
 0x3c1   : > { %3972 = vst.msk [vmem:[#allocation3 + $0x81] sm:$0xff] %vm297_vm0, %v3885_v44  ;;  %v3855_v47 = vadd.f32 %v9257_v46, %v11886_v24  ;;  %v3696_v48 = vpop.f32.mrb[11].mxu0  ;;  %v11924_v49 = vld [vmem:[#allocation3 + $0x49] sm:$0xff] }
 0x3c2   : > { %3971 = vst.msk [vmem:[#allocation3 + $0x79] sm:$0xff] %vm297_vm0, %v3884_v45  ;;  %v3854_v50 = vadd.f32 %v11886_v24, %v3696_v48  ;;  %9299 = vmatprep.mubr.msk.f32.mxu1 %vm297_vm0, %v11924_v49 }
 0x3c3   : > { %v3887_v52 = vmax.f32 %v3855_v47, 0.0  ;;  %9300 = vmatmul.mubr.msk.f32.gmra.mrb[6].mxu1 %vm297_vm0, %v11930_v51 }
 0x3c4   : > { %v3886_v53 = vmax.f32 %v3854_v50, 0.0  ;;  %v9260_v54 = vpop.f32.mrb[12].mxu0  ;;  %v11942_v59 = vld [vmem:[#allocation3 + $0x69] sm:$0xff] }
 0x3c5   : > { %3974 = vst.msk [vmem:[#allocation3 + $0x99] sm:$0xff] %vm297_vm0, %v3887_v52  ;;  %v3857_v55 = vadd.f32 %v9260_v54, %v11886_v24  ;;  %v3706_v56 = vpop.f32.mrb[13].mxu0  ;;  %v11936_v57 = vld [vmem:[#allocation3 + $0x61] sm:$0xff] }
 0x3c6   : > { %3973 = vst.msk [vmem:[#allocation3 + $0x91] sm:$0xff] %vm297_vm0, %v3886_v53  ;;  %v3856_v58 = vadd.f32 %v11886_v24, %v3706_v56  ;;  %9302 = vmatprep.mubr.msk.f32.mxu1 %vm297_vm0, %v11936_v57 }
 0x3c7   : > { %v3889_v60 = vmax.f32 %v3857_v55, 0.0  ;;  %9303 = vmatmul.mubr.msk.f32.gmra.mrb[8].mxu1 %vm297_vm0, %v11942_v59 }
 0x3c8   : > { %v3888_v61 = vmax.f32 %v3856_v58, 0.0  ;;  %v9263_v13 = vpop.f32.mrb[14].mxu0  ;;  %v11954_v18 = vld [vmem:[#allocation3 + $0x81] sm:$0xff] }
 0x3c9   : > { %3976 = vst.msk [vmem:[#allocation3 + $0xb1] sm:$0xff] %vm297_vm0, %v3889_v60  ;;  %v3859_v14 = vadd.f32 %v9263_v13, %v11886_v24  ;;  %v3716_v15 = vpop.f32.mrb[15].mxu0  ;;  %v11948_v16 = vld [vmem:[#allocation3 + $0x79] sm:$0xff] }
 0x3ca   : > { %3975 = vst.msk [vmem:[#allocation3 + $0xa9] sm:$0xff] %vm297_vm0, %v3888_v61  ;;  %v3858_v17 = vadd.f32 %v11886_v24, %v3716_v15  ;;  %9305 = vmatprep.mubr.msk.f32.mxu1 %vm297_vm0, %v11948_v16 }
 0x3cb   : > { %v3891_v19 = vmax.f32 %v3859_v14, 0.0  ;;  %9306 = vmatmul.mubr.msk.f32.gmra.mrb[10].mxu1 %vm297_vm0, %v11954_v18 }
 0x3cc   : > { %v3890_v20 = vmax.f32 %v3858_v17, 0.0  ;;  %v9266_v63 = vpop.f32.mrb[16].mxu0  ;;  %v11966_v27 = vld [vmem:[#allocation3 + $0x99] sm:$0xff] }
 0x3cd   : > { %3978 = vst.msk [vmem:[#allocation3 + $0xc9] sm:$0xff] %vm297_vm0, %v3891_v19  ;;  %v3861_v21 = vadd.f32 %v9266_v63, %v11886_v24  ;;  %v3726_v22 = vpop.f32.mrb[17].mxu0  ;;  %v11960_v23 = vld [vmem:[#allocation3 + $0x91] sm:$0xff] }
 0x3ce   : > { %3977 = vst.msk [vmem:[#allocation3 + $0xc1] sm:$0xff] %vm297_vm0, %v3890_v20  ;;  %v3860_v26 = vadd.f32 %v11886_v24, %v3726_v22  ;;  %9308 = vmatprep.mubr.msk.f32.mxu1 %vm297_vm0, %v11960_v23 }
 0x3cf   : > { %v3893_v29 = vmax.f32 %v3861_v21, 0.0  ;;  %9309 = vmatmul.mubr.msk.f32.gmra.mrb[12].mxu1 %vm297_vm0, %v11966_v27 }
 0x3d0   : > { %v3892_v30 = vmax.f32 %v3860_v26, 0.0  ;;  %v9269_v36 = vpop.f32.mrb[18].mxu0  ;;  %v11978_v2 = vld [vmem:[#allocation3 + $0xb1] sm:$0xff] }
 0x3d1   : > { %3980 = vst.msk [vmem:[#allocation3 + $0xe1] sm:$0xff] %vm297_vm0, %v3893_v29  ;;  %v3863_v37 = vadd.f32 %v9269_v36, %v11886_v24  ;;  %v3736_v38 = vpop.f32.mrb[19].mxu0  ;;  %v11972_v42 = vld [vmem:[#allocation3 + $0xa9] sm:$0xff] }
 0x3d2   : > { %3979 = vst.msk [vmem:[#allocation3 + $0xd9] sm:$0xff] %vm297_vm0, %v3892_v30  ;;  %v3862_v43 = vadd.f32 %v11886_v24, %v3736_v38  ;;  %9311 = vmatprep.mubr.msk.f32.mxu1 %vm297_vm0, %v11972_v42 }
 0x3d3   : > { %v3895_v40 = vmax.f32 %v3863_v37, 0.0  ;;  %9312 = vmatmul.mubr.msk.f32.gmra.mrb[14].mxu1 %vm297_vm0, %v11978_v2 }
 0x3d4   : > { %v3894_v3 = vmax.f32 %v3862_v43, 0.0  ;;  %v9272_v39 = vpop.f32.mrb[20].mxu0  ;;  %v11990_v31 = vld [vmem:[#allocation3 + $0xc9] sm:$0xff] }
 0x3d5   : > { %3982 = vst.msk [vmem:[#allocation3 + $0xf9] sm:$0xff] %vm297_vm0, %v3895_v40  ;;  %v3865_v5 = vadd.f32 %v9272_v39, %v11886_v24  ;;  %v3746_v1 = vpop.f32.mrb[21].mxu0  ;;  %v11984_v4 = vld [vmem:[#allocation3 + $0xc1] sm:$0xff] }
 0x3d6   : > { %3981 = vst.msk [vmem:[#allocation3 + $0xf1] sm:$0xff] %vm297_vm0, %v3894_v3  ;;  %v3864_v28 = vadd.f32 %v11886_v24, %v3746_v1  ;;  %9314 = vmatprep.mubr.msk.f32.mxu1 %vm297_vm0, %v11984_v4  ;;  %v3995_v1 = vld [vmem:[#allocation3] sm:$0xff] }
 0x3d7   : > { %v3897_v32 = vmax.f32 %v3865_v5, 0.0  ;;  %9315 = vmatmul.mubr.msk.f32.gmra.mrb[16].mxu1 %vm297_vm0, %v11990_v31 }
 0x3d8   : > { %v3896_v33 = vmax.f32 %v3864_v28, 0.0  ;;  %v9275_v0 = vpop.f32.mrb[22].mxu0  ;;  %v12002_v10 = vld [vmem:[#allocation3 + $0xe1] sm:$0xff] }
 0x3d9   : > { %3984 = vst.msk [vmem:[#allocation3 + $0x111] sm:$0xff] %vm297_vm0, %v3897_v32  ;;  %v3867_v6 = vadd.f32 %v9275_v0, %v11886_v24  ;;  %v3756_v7 = vpop.f32.mrb[23].mxu0  ;;  %v11996_v8 = vld [vmem:[#allocation3 + $0xd9] sm:$0xff]  ;;  %v3996_v32 = vld [vmem:[#allocation3 + $0x8] sm:$0xff] }
 0x3da   : > { %3983 = vst.msk [vmem:[#allocation3 + $0x109] sm:$0xff] %vm297_vm0, %v3896_v33  ;;  %v3866_v9 = vadd.f32 %v11886_v24, %v3756_v7  ;;  %9317 = vmatprep.mubr.msk.f32.mxu1 %vm297_vm0, %v11996_v8  ;;  %v12073_v33 = vld [vmem:[#allocation10 + $0x18] sm:$0xff] }
 0x3db   : > { %v3899_v11 = vmax.f32 %v3867_v6, 0.0  ;;  %9318 = vmatmul.mubr.msk.f32.gmra.mrb[18].mxu1 %vm297_vm0, %v12002_v10  ;;  %v12076_v0 = vld [vmem:[#allocation3 + $0x18] sm:$0xff]  ;;  %v12082_v6 = vld [vmem:[#allocation3 + $0x20] sm:$0xff]  ;;  %v12086_v7 = vld [vmem:[#allocation3 + $0x30] sm:$0xff] }
 0x3dc   : > { %v3898_v35 = vmax.f32 %v3866_v9, 0.0  ;;  %v9278_v44 = vpop.f32.mrb[24].mxu0  ;;  %v12014_v50 = vld [vmem:[#allocation3 + $0xf9] sm:$0xff] }
 0x3dd   : > { %3986 = vst.msk [vmem:[#allocation3 + $0x129] sm:$0xff] %vm297_vm0, %v3899_v11  ;;  %v3869_v45 = vadd.f32 %v9278_v44, %v11886_v24  ;;  %v3766_v46 = vpop.f32.mrb[25].mxu0  ;;  %v12008_v47 = vld [vmem:[#allocation3 + $0xf1] sm:$0xff]  ;;  %v12106_v44 = vld [vmem:[#allocation3 + $0x68] sm:$0xff] }
 0x3de   : > { %3985 = vst.msk [vmem:[#allocation3 + $0x121] sm:$0xff] %vm297_vm0, %v3898_v35  ;;  %v3868_v48 = vadd.f32 %v11886_v24, %v3766_v46  ;;  %9320 = vmatprep.mubr.msk.f32.mxu1 %vm297_vm0, %v12008_v47  ;;  %v12090_v9 = vld [vmem:[#allocation3 + $0x38] sm:$0xff]  ;;  %v12098_v11 = vld [vmem:[#allocation3 + $0x50] sm:$0xff]  ;;  %v12102_v35 = vld [vmem:[#allocation3 + $0x60] sm:$0xff] }
 0x3df   : > { %v3901_v52 = vmax.f32 %v3869_v45, 0.0  ;;  %9321 = vmatmul.mubr.msk.f32.gmra.mrb[20].mxu1 %vm297_vm0, %v12014_v50  ;;  %v12110_v45 = vld [vmem:[#allocation3 + $0x78] sm:$0xff]  ;;  %v12114_v46 = vld [vmem:[#allocation3 + $0x80] sm:$0xff] }
 0x3e0   : > { %v3900_v53 = vmax.f32 %v3868_v48, 0.0  ;;  %v9281_v54 = vpop.f32.mrb[26].mxu0  ;;  %v12026_v61 = vld [vmem:[#allocation3 + $0x111] sm:$0xff] }
 0x3e1   : > { %3988 = vst.msk [vmem:[#allocation3 + $0x141] sm:$0xff] %vm297_vm0, %v3901_v52  ;;  %v3871_v55 = vadd.f32 %v9281_v54, %v11886_v24  ;;  %v3776_v56 = vpop.f32.mrb[27].mxu0  ;;  %v12020_v58 = vld [vmem:[#allocation3 + $0x109] sm:$0xff]  ;;  %v12122_v52 = vld [vmem:[#allocation3 + $0x98] sm:$0xff] }
 0x3e2   : > { %3987 = vst.msk [vmem:[#allocation3 + $0x139] sm:$0xff] %vm297_vm0, %v3900_v53  ;;  %v3870_v60 = vadd.f32 %v11886_v24, %v3776_v56  ;;  %9323 = vmatprep.mubr.msk.f32.mxu1 %vm297_vm0, %v12020_v58  ;;  %v12118_v48 = vld [vmem:[#allocation3 + $0x90] sm:$0xff]  ;;  %v12126_v53 = vld [vmem:[#allocation3 + $0xa8] sm:$0xff] }
 0x3e3   : > { %v3903_v13 = vmax.f32 %v3871_v55, 0.0  ;;  %9324 = vmatmul.mubr.msk.f32.gmra.mrb[22].mxu1 %vm297_vm0, %v12026_v61  ;;  %v12130_v54 = vld [vmem:[#allocation3 + $0xb0] sm:$0xff]  ;;  %v12134_v55 = vld [vmem:[#allocation3 + $0xc0] sm:$0xff]  ;;  %v12138_v56 = vld [vmem:[#allocation3 + $0xc8] sm:$0xff] }
 0x3e4   : > { %v3902_v14 = vmax.f32 %v3870_v60, 0.0  ;;  %v9284_v15 = vpop.f32.mrb[28].mxu0  ;;  %v12038_v21 = vld [vmem:[#allocation3 + $0x129] sm:$0xff]  ;;  %v12142_v60 = vld [vmem:[#allocation3 + $0xd8] sm:$0xff] }
 0x3e5   : > { %3990 = vst.msk [vmem:[#allocation3 + $0x159] sm:$0xff] %vm297_vm0, %v3903_v13  ;;  %v3873_v17 = vadd.f32 %v9284_v15, %v11886_v24  ;;  %v3786_v19 = vpop.f32.mrb[29].mxu0  ;;  %v12032_v20 = vld [vmem:[#allocation3 + $0x121] sm:$0xff]  ;;  %v12154_v15 = vld [vmem:[#allocation3 + $0xf8] sm:$0xff] }
 0x3e6   : > { %3989 = vst.msk [vmem:[#allocation3 + $0x151] sm:$0xff] %vm297_vm0, %v3902_v14  ;;  %v3872_v63 = vadd.f32 %v11886_v24, %v3786_v19  ;;  %9326 = vmatprep.mubr.msk.f32.mxu1 %vm297_vm0, %v12032_v20  ;;  %v12146_v13 = vld [vmem:[#allocation3 + $0xe0] sm:$0xff]  ;;  %v12150_v14 = vld [vmem:[#allocation3 + $0xf0] sm:$0xff] }
 0x3e7   : > { %v3905_v22 = vmax.f32 %v3873_v17, 0.0  ;;  %9327 = vmatmul.mubr.msk.f32.gmra.mrb[24].mxu1 %vm297_vm0, %v12038_v21  ;;  %v12158_v17 = vld [vmem:[#allocation3 + $0x108] sm:$0xff]  ;;  %v12162_v19 = vld [vmem:[#allocation3 + $0x110] sm:$0xff] }
 0x3e8   : > { %v3904_v26 = vmax.f32 %v3872_v63, 0.0  ;;  %v9287_v29 = vpop.f32.mrb[30].mxu0  ;;  %v12050_v43 = vld [vmem:[#allocation3 + $0x141] sm:$0xff] }
 0x3e9   : > { %3992 = vst.msk [vmem:[#allocation3 + $0x171] sm:$0xff] %vm297_vm0, %v3905_v22  ;;  %v3875_v30 = vadd.f32 %v9287_v29, %v11886_v24  ;;  %v3796_v36 = vpop.f32.mrb[31].mxu0  ;;  %v12044_v37 = vld [vmem:[#allocation3 + $0x139] sm:$0xff]  ;;  %v12170_v22 = vld [vmem:[#allocation3 + $0x128] sm:$0xff] }
 0x3ea   : > { %3991 = vst.msk [vmem:[#allocation3 + $0x169] sm:$0xff] %vm297_vm0, %v3904_v26  ;;  %v3874_v38 = vadd.f32 %v11886_v24, %v3796_v36  ;;  %9329 = vmatprep.mubr.msk.f32.mxu1 %vm297_vm0, %v12044_v37  ;;  %v12166_v63 = vld [vmem:[#allocation3 + $0x120] sm:$0xff]  ;;  %v12174_v26 = vld [vmem:[#allocation3 + $0x138] sm:$0xff] }
 0x3eb   : > { %v3907_v40 = vmax.f32 %v3875_v30, 0.0  ;;  %9330 = vmatmul.mubr.msk.f32.gmra.mrb[26].mxu1 %vm297_vm0, %v12050_v43  ;;  %v12178_v29 = vld [vmem:[#allocation3 + $0x140] sm:$0xff] }
 0x3ec   : > { %v3906_v3 = vmax.f32 %v3874_v38, 0.0  ;;  %v12060_v24 = vld [vmem:[#allocation3 + $0x159] sm:$0xff] }
 0x3ed   : > { %3994 = vst.msk [vmem:[#allocation3 + $0x189] sm:$0xff] %vm297_vm0, %v3907_v40  ;;  %v12055_v39 = vld [vmem:[#allocation3 + $0x151] sm:$0xff]  ;;  %v4704_v40 = vld [vmem:[#allocation3 + $0x2] sm:$0xff] }
 0x3ee   : > { %3993 = vst.msk [vmem:[#allocation3 + $0x181] sm:$0xff] %vm297_vm0, %v3906_v3  ;;  %9332 = vmatprep.mubr.msk.f32.mxu1 %vm297_vm0, %v12055_v39  ;;  %v12182_v30 = vld [vmem:[#allocation3 + $0x150] sm:$0xff]  ;;  %v12186_v36 = vld [vmem:[#allocation3 + $0x158] sm:$0xff] }
 0x3ef   : > { %9333 = vmatmul.mubr.msk.f32.gmra.mrb[28].mxu1 %vm297_vm0, %v12060_v24 }
 0x3f0   : > { %v12068_v28 = vld [vmem:[#allocation3 + $0x171] sm:$0xff] }
 0x3f1   : > { %v12064_v5 = vld [vmem:[#allocation3 + $0x169] sm:$0xff]  ;;  %13079 = vst [vmem:[#allocation23_spill] sm:$0xff] %v12068_v28 }
 0x3f2   : > { %13078 = vst [vmem:[#allocation22_spill] sm:$0xff] %v12064_v5  ;;  %9335 = vmatprep.mubr.msk.f32.mxu1 %vm297_vm0, %v12064_v5  ;;  %v12190_v38 = vld [vmem:[#allocation3 + $0x168] sm:$0xff]  ;;  %v12194_v3 = vld [vmem:[#allocation3 + $0x170] sm:$0xff] }
 0x3f3   : > { %9336 = vmatmul.mubr.msk.f32.gmra.mrb[30].mxu1 %vm297_vm0, %v12068_v28  ;;  %v12202_v28 = vld [vmem:[#allocation3 + $0x1a] sm:$0xff]  ;;  %v12208_v5 = vld [vmem:[#allocation3 + $0x22] sm:$0xff] }
 0x3f4   : > { %9340 = vmatprep.mubr.msk.f32.mxu1 %vm297_vm0, %v3995_v1  ;;  %v4705_v1 = vld [vmem:[#allocation3 + $0xa] sm:$0xff]  ;;  %13080 = vst [vmem:[#allocation37_spill] sm:$0xff] %v12202_v28  ;;  %13081 = vst [vmem:[#allocation40_spill] sm:$0xff] %v12208_v5 }
 0x3f7   : > { %9341 = vmatmul.mubr.msk.f32.vlgmr.msra.gmra.mrb[0].mxu1 %vm297_vm0, %v3996_v32  ;;  %v12199_v32 = vld [vmem:[#allocation10 + $0x20] sm:$0xff] }
 0x3f8   : > { %9389 = vmatpush3.msra.mxu1 %v11883_v62  ;;  %9343 = vmatprep.mubr.msk.f32.mxu1 %vm297_vm0, %v12076_v0  ;;  %v12094_v62 = vld [vmem:[#allocation3 + $0x48] sm:$0xff] }
 0x3f9   : > { %9438 = vmatprep.subr.mxu1 %v12073_v33 }
 0x3fb   : > { %9344 = vmatmul.mubr.msk.f32.gmra.mrb[2].mxu1 %vm297_vm0, %v12082_v6 }
 0x3fc   : > { %9346 = vmatprep.mubr.msk.f32.mxu1 %vm297_vm0, %v12086_v7 }
 0x3ff   : > { %9347 = vmatmul.mubr.msk.f32.gmra.mrb[4].mxu1 %vm297_vm0, %v12090_v9 }
 0x400   : > { %9349 = vmatprep.mubr.msk.f32.mxu1 %vm297_vm0, %v12094_v62 }
 0x403   : > { %9350 = vmatmul.mubr.msk.f32.gmra.mrb[6].mxu1 %vm297_vm0, %v12098_v11 }
 0x404   : > { %9352 = vmatprep.mubr.msk.f32.mxu1 %vm297_vm0, %v12102_v35 }
 0x407   : > { %9353 = vmatmul.mubr.msk.f32.gmra.mrb[8].mxu1 %vm297_vm0, %v12106_v44 }
 0x408   : > { %9355 = vmatprep.mubr.msk.f32.mxu1 %vm297_vm0, %v12110_v45 }
 0x40b   : > { %9356 = vmatmul.mubr.msk.f32.gmra.mrb[10].mxu1 %vm297_vm0, %v12114_v46 }
 0x40c   : > { %9358 = vmatprep.mubr.msk.f32.mxu1 %vm297_vm0, %v12118_v48 }
 0x40f   : > { %9359 = vmatmul.mubr.msk.f32.gmra.mrb[12].mxu1 %vm297_vm0, %v12122_v52 }
 0x410   : > { %9361 = vmatprep.mubr.msk.f32.mxu1 %vm297_vm0, %v12126_v53 }
 0x413   : > { %9362 = vmatmul.mubr.msk.f32.gmra.mrb[14].mxu1 %vm297_vm0, %v12130_v54 }
 0x414   : > { %9364 = vmatprep.mubr.msk.f32.mxu1 %vm297_vm0, %v12134_v55 }
 0x417   : > { %9365 = vmatmul.mubr.msk.f32.gmra.mrb[16].mxu1 %vm297_vm0, %v12138_v56 }
 0x418   : > { %9367 = vmatprep.mubr.msk.f32.mxu1 %vm297_vm0, %v12142_v60 }
 0x41b   : > { %9368 = vmatmul.mubr.msk.f32.gmra.mrb[18].mxu1 %vm297_vm0, %v12146_v13 }
 0x41c   : > { %9370 = vmatprep.mubr.msk.f32.mxu1 %vm297_vm0, %v12150_v14 }
 0x41f   : > { %9371 = vmatmul.mubr.msk.f32.gmra.mrb[20].mxu1 %vm297_vm0, %v12154_v15 }
 0x420   : > { %9373 = vmatprep.mubr.msk.f32.mxu1 %vm297_vm0, %v12158_v17 }
 0x423   : > { %9374 = vmatmul.mubr.msk.f32.gmra.mrb[22].mxu1 %vm297_vm0, %v12162_v19 }
 0x424   : > { %9376 = vmatprep.mubr.msk.f32.mxu1 %vm297_vm0, %v12166_v63 }
 0x427   : > { %9377 = vmatmul.mubr.msk.f32.gmra.mrb[24].mxu1 %vm297_vm0, %v12170_v22 }
 0x428   : > { %9379 = vmatprep.mubr.msk.f32.mxu1 %vm297_vm0, %v12174_v26 }
 0x42b   : > { %9380 = vmatmul.mubr.msk.f32.gmra.mrb[26].mxu1 %vm297_vm0, %v12178_v29 }
 0x42c   : > { %9382 = vmatprep.mubr.msk.f32.mxu1 %vm297_vm0, %v12182_v30 }
 0x42f   : > { %9383 = vmatmul.mubr.msk.f32.gmra.mrb[28].mxu1 %vm297_vm0, %v12186_v36 }
 0x430   : > { %9385 = vmatprep.mubr.msk.f32.mxu1 %vm297_vm0, %v12190_v38 }
 0x433   : > { %9386 = vmatmul.mubr.msk.f32.gmra.mrb[30].mxu1 %vm297_vm0, %v12194_v3 }
 0x434   : > { %9390 = vmatprep.mubr.msk.f32.mxu1 %vm297_vm0, %v4704_v40  ;;  %v12212_v40 = vld [vmem:[#allocation3 + $0x32] sm:$0xff] }
 0x435   : > { %13082 = vst [vmem:[#allocation41_spill] sm:$0xff] %v12212_v40 }
 0x437   : > { %9391 = vmatmul.mubr.msk.f32.vlgmr.msra.gmra.mrb[0].mxu1 %vm297_vm0, %v4705_v1  ;;  %v12216_v1 = vld [vmem:[#allocation3 + $0x3a] sm:$0xff] }
 0x438   : > { %9439 = vmatpush3.msra.mxu1 %v12073_v33  ;;  %9393 = vmatprep.mubr.msk.f32.mxu1 %vm297_vm0, %v12202_v28  ;;  %13083 = vst [vmem:[#allocation42_spill] sm:$0xff] %v12216_v1  ;;  %v12220_v33 = vld [vmem:[#allocation3 + $0x4a] sm:$0xff]  ;;  %v12224_v28 = vld [vmem:[#allocation3 + $0x52] sm:$0xff] }
 0x439   : > { %9488 = vmatprep.subr.mxu1 %v12199_v32  ;;  %13084 = vst [vmem:[#allocation44_spill] sm:$0xff] %v12220_v33  ;;  %13085 = vst [vmem:[#allocation46_spill] sm:$0xff] %v12224_v28 }
 0x43b   : > { %9394 = vmatmul.mubr.msk.f32.gmra.mrb[2].mxu1 %vm297_vm0, %v12208_v5  ;;  %v12228_v5 = vld [vmem:[#allocation3 + $0x62] sm:$0xff] }
 0x43c   : > { %9396 = vmatprep.mubr.msk.f32.mxu1 %vm297_vm0, %v12212_v40  ;;  %13086 = vst [vmem:[#allocation18_spill] sm:$0xff] %v12228_v5  ;;  %v12232_v40 = vld [vmem:[#allocation3 + $0x6a] sm:$0xff] }
 0x43d   : > { %13087 = vst [vmem:[#allocation19_spill] sm:$0xff] %v12232_v40 }
 0x43f   : > { %9397 = vmatmul.mubr.msk.f32.gmra.mrb[4].mxu1 %vm297_vm0, %v12216_v1  ;;  %v12236_v1 = vld [vmem:[#allocation3 + $0x7a] sm:$0xff] }
 0x440   : > { %9399 = vmatprep.mubr.msk.f32.mxu1 %vm297_vm0, %v12220_v33  ;;  %13088 = vst [vmem:[#allocation20_spill] sm:$0xff] %v12236_v1  ;;  %v12240_v33 = vld [vmem:[#allocation3 + $0x82] sm:$0xff] }
 0x441   : > { %13089 = vst [vmem:[#allocation21_spill] sm:$0xff] %v12240_v33 }
 0x443   : > { %9400 = vmatmul.mubr.msk.f32.gmra.mrb[6].mxu1 %vm297_vm0, %v12224_v28  ;;  %v12244_v28 = vld [vmem:[#allocation3 + $0x92] sm:$0xff] }
 0x444   : > { %9402 = vmatprep.mubr.msk.f32.mxu1 %vm297_vm0, %v12228_v5  ;;  %13090 = vst [vmem:[#allocation48_spill] sm:$0xff] %v12244_v28  ;;  %v12248_v5 = vld [vmem:[#allocation3 + $0x9a] sm:$0xff] }
 0x445   : > { %13091 = vst [vmem:[#allocation49_spill] sm:$0xff] %v12248_v5 }
 0x447   : > { %9403 = vmatmul.mubr.msk.f32.gmra.mrb[8].mxu1 %vm297_vm0, %v12232_v40  ;;  %v12252_v40 = vld [vmem:[#allocation3 + $0xaa] sm:$0xff] }
 0x448   : > { %9405 = vmatprep.mubr.msk.f32.mxu1 %vm297_vm0, %v12236_v1  ;;  %13092 = vst [vmem:[#allocation24_spill] sm:$0xff] %v12252_v40  ;;  %v12256_v1 = vld [vmem:[#allocation3 + $0xb2] sm:$0xff] }
 0x449   : > { %13093 = vst [vmem:[#allocation25_spill] sm:$0xff] %v12256_v1 }
 0x44b   : > { %9406 = vmatmul.mubr.msk.f32.gmra.mrb[10].mxu1 %vm297_vm0, %v12240_v33  ;;  %v12260_v33 = vld [vmem:[#allocation3 + $0xc2] sm:$0xff] }
 0x44c   : > { %9408 = vmatprep.mubr.msk.f32.mxu1 %vm297_vm0, %v12244_v28  ;;  %13094 = vst [vmem:[#allocation26_spill] sm:$0xff] %v12260_v33  ;;  %v12264_v28 = vld [vmem:[#allocation3 + $0xca] sm:$0xff] }
 0x44d   : > { %13095 = vst [vmem:[#allocation27_spill] sm:$0xff] %v12264_v28 }
 0x44f   : > { %9409 = vmatmul.mubr.msk.f32.gmra.mrb[12].mxu1 %vm297_vm0, %v12248_v5  ;;  %v12268_v5 = vld [vmem:[#allocation3 + $0xda] sm:$0xff] }
 0x450   : > { %9411 = vmatprep.mubr.msk.f32.mxu1 %vm297_vm0, %v12252_v40  ;;  %13096 = vst [vmem:[#allocation28_spill] sm:$0xff] %v12268_v5  ;;  %v12272_v40 = vld [vmem:[#allocation3 + $0xe2] sm:$0xff] }
 0x451   : > { %13097 = vst [vmem:[#allocation29_spill] sm:$0xff] %v12272_v40 }
 0x453   : > { %9412 = vmatmul.mubr.msk.f32.gmra.mrb[14].mxu1 %vm297_vm0, %v12256_v1  ;;  %v12276_v1 = vld [vmem:[#allocation3 + $0xf2] sm:$0xff] }
 0x454   : > { %9414 = vmatprep.mubr.msk.f32.mxu1 %vm297_vm0, %v12260_v33  ;;  %13098 = vst [vmem:[#allocation30_spill] sm:$0xff] %v12276_v1  ;;  %v12280_v33 = vld [vmem:[#allocation3 + $0xfa] sm:$0xff] }
 0x455   : > { %13099 = vst [vmem:[#allocation31_spill] sm:$0xff] %v12280_v33 }
 0x457   : > { %9415 = vmatmul.mubr.msk.f32.gmra.mrb[16].mxu1 %vm297_vm0, %v12264_v28  ;;  %v12284_v28 = vld [vmem:[#allocation3 + $0x10a] sm:$0xff] }
 0x458   : > { %9417 = vmatprep.mubr.msk.f32.mxu1 %vm297_vm0, %v12268_v5  ;;  %13100 = vst [vmem:[#allocation32_spill] sm:$0xff] %v12284_v28  ;;  %v12288_v5 = vld [vmem:[#allocation3 + $0x112] sm:$0xff] }
 0x459   : > { %13101 = vst [vmem:[#allocation33_spill] sm:$0xff] %v12288_v5 }
 0x45b   : > { %9418 = vmatmul.mubr.msk.f32.gmra.mrb[18].mxu1 %vm297_vm0, %v12272_v40  ;;  %v12292_v40 = vld [vmem:[#allocation3 + $0x122] sm:$0xff] }
 0x45c   : > { %9420 = vmatprep.mubr.msk.f32.mxu1 %vm297_vm0, %v12276_v1  ;;  %13102 = vst [vmem:[#allocation34_spill] sm:$0xff] %v12292_v40  ;;  %v12296_v1 = vld [vmem:[#allocation3 + $0x12a] sm:$0xff] }
 0x45d   : > { %13103 = vst [vmem:[#allocation35_spill] sm:$0xff] %v12296_v1 }
 0x45f   : > { %9421 = vmatmul.mubr.msk.f32.gmra.mrb[20].mxu1 %vm297_vm0, %v12280_v33  ;;  %v12300_v33 = vld [vmem:[#allocation3 + $0x13a] sm:$0xff] }
 0x460   : > { %9423 = vmatprep.mubr.msk.f32.mxu1 %vm297_vm0, %v12284_v28  ;;  %13104 = vst [vmem:[#allocation36_spill] sm:$0xff] %v12300_v33  ;;  %v12304_v28 = vld [vmem:[#allocation3 + $0x142] sm:$0xff] }
 0x461   : > { %13105 = vst [vmem:[#allocation38_spill] sm:$0xff] %v12304_v28 }
 0x463   : > { %9424 = vmatmul.mubr.msk.f32.gmra.mrb[22].mxu1 %vm297_vm0, %v12288_v5  ;;  %v12308_v5 = vld [vmem:[#allocation3 + $0x152] sm:$0xff] }
 0x464   : > { %9426 = vmatprep.mubr.msk.f32.mxu1 %vm297_vm0, %v12292_v40  ;;  %v12312_v40 = vld [vmem:[#allocation3 + $0x15a] sm:$0xff] }
 0x465   : > { %13106 = vst [vmem:[#allocation39_spill] sm:$0xff] %v12312_v40 }
 0x467   : > { %9427 = vmatmul.mubr.msk.f32.gmra.mrb[24].mxu1 %vm297_vm0, %v12296_v1  ;;  %v12316_v1 = vld [vmem:[#allocation3 + $0x16a] sm:$0xff] }
 0x468   : > { %9429 = vmatprep.mubr.msk.f32.mxu1 %vm297_vm0, %v12300_v33  ;;  %v12320_v33 = vld [vmem:[#allocation3 + $0x172] sm:$0xff] }
 0x46b   : > { %9430 = vmatmul.mubr.msk.f32.gmra.mrb[26].mxu1 %vm297_vm0, %v12304_v28  ;;  %v5898_v28 = vld [vmem:[#allocation10 + $0x28] sm:$0xff] }
 0x46c   : > { %9432 = vmatprep.mubr.msk.f32.mxu1 %vm297_vm0, %v12308_v5 }
 0x46f   : > { %9433 = vmatmul.mubr.msk.f32.gmra.mrb[28].mxu1 %vm297_vm0, %v12312_v40 }
 0x470   : > { %9435 = vmatprep.mubr.msk.f32.mxu1 %vm297_vm0, %v12316_v1 }
 0x473   : > { %9436 = vmatmul.mubr.msk.f32.gmra.mrb[30].mxu1 %vm297_vm0, %v12320_v33 }
 0x474   : > { %9440 = vmatprep.mubr.msk.f32.mxu1 %vm297_vm0, %v12076_v0  ;;  %v12385_v0 = vld [vmem:[#allocation3 + $0x180] sm:$0xff] }
 0x477   : > { %9441 = vmatmul.mubr.msk.f32.vlgmr.msra.gmra.mrb[0].mxu1 %vm297_vm0, %v12082_v6  ;;  %v12389_v6 = vld [vmem:[#allocation3 + $0x188] sm:$0xff] }
 0x478   : > { %9489 = vmatpush3.msra.mxu1 %v12199_v32  ;;  %9443 = vmatprep.mubr.msk.f32.mxu1 %vm297_vm0, %v12086_v7  ;;  %v6286_v32 = vld [vmem:[#allocation10 + $0x30] sm:$0xff] }
 0x479   : > { %9538 = vmatprep.subr.mxu1 %v5898_v28 }
 0x47b   : > { %9444 = vmatmul.mubr.msk.f32.gmra.mrb[2].mxu1 %vm297_vm0, %v12090_v9 }
 0x47c   : > { %9446 = vmatprep.mubr.msk.f32.mxu1 %vm297_vm0, %v12094_v62 }
 0x47f   : > { %9447 = vmatmul.mubr.msk.f32.gmra.mrb[4].mxu1 %vm297_vm0, %v12098_v11 }
 0x480   : > { %9449 = vmatprep.mubr.msk.f32.mxu1 %vm297_vm0, %v12102_v35 }
 0x483   : > { %9450 = vmatmul.mubr.msk.f32.gmra.mrb[6].mxu1 %vm297_vm0, %v12106_v44 }
 0x484   : > { %9452 = vmatprep.mubr.msk.f32.mxu1 %vm297_vm0, %v12110_v45 }
 0x487   : > { %9453 = vmatmul.mubr.msk.f32.gmra.mrb[8].mxu1 %vm297_vm0, %v12114_v46 }
 0x488   : > { %9455 = vmatprep.mubr.msk.f32.mxu1 %vm297_vm0, %v12118_v48 }
 0x48b   : > { %9456 = vmatmul.mubr.msk.f32.gmra.mrb[10].mxu1 %vm297_vm0, %v12122_v52 }
 0x48c   : > { %9458 = vmatprep.mubr.msk.f32.mxu1 %vm297_vm0, %v12126_v53 }
 0x48f   : > { %9459 = vmatmul.mubr.msk.f32.gmra.mrb[12].mxu1 %vm297_vm0, %v12130_v54 }
 0x490   : > { %9461 = vmatprep.mubr.msk.f32.mxu1 %vm297_vm0, %v12134_v55 }
 0x493   : > { %9462 = vmatmul.mubr.msk.f32.gmra.mrb[14].mxu1 %vm297_vm0, %v12138_v56 }
 0x494   : > { %9464 = vmatprep.mubr.msk.f32.mxu1 %vm297_vm0, %v12142_v60 }
 0x497   : > { %9465 = vmatmul.mubr.msk.f32.gmra.mrb[16].mxu1 %vm297_vm0, %v12146_v13 }
 0x498   : > { %9467 = vmatprep.mubr.msk.f32.mxu1 %vm297_vm0, %v12150_v14 }
 0x49b   : > { %9468 = vmatmul.mubr.msk.f32.gmra.mrb[18].mxu1 %vm297_vm0, %v12154_v15 }
 0x49c   : > { %9470 = vmatprep.mubr.msk.f32.mxu1 %vm297_vm0, %v12158_v17 }
 0x49f   : > { %9471 = vmatmul.mubr.msk.f32.gmra.mrb[20].mxu1 %vm297_vm0, %v12162_v19 }
 0x4a0   : > { %9473 = vmatprep.mubr.msk.f32.mxu1 %vm297_vm0, %v12166_v63 }
 0x4a3   : > { %9474 = vmatmul.mubr.msk.f32.gmra.mrb[22].mxu1 %vm297_vm0, %v12170_v22 }
 0x4a4   : > { %9476 = vmatprep.mubr.msk.f32.mxu1 %vm297_vm0, %v12174_v26 }
 0x4a7   : > { %9477 = vmatmul.mubr.msk.f32.gmra.mrb[24].mxu1 %vm297_vm0, %v12178_v29 }
 0x4a8   : > { %9479 = vmatprep.mubr.msk.f32.mxu1 %vm297_vm0, %v12182_v30 }
 0x4ab   : > { %9480 = vmatmul.mubr.msk.f32.gmra.mrb[26].mxu1 %vm297_vm0, %v12186_v36 }
 0x4ac   : > { %9482 = vmatprep.mubr.msk.f32.mxu1 %vm297_vm0, %v12190_v38 }
 0x4af   : > { %9483 = vmatmul.mubr.msk.f32.gmra.mrb[28].mxu1 %vm297_vm0, %v12194_v3 }
 0x4b0   : > { %9485 = vmatprep.mubr.msk.f32.mxu1 %vm297_vm0, %v12385_v0 }
 0x4b3   : > { %9486 = vmatmul.mubr.msk.f32.gmra.mrb[30].mxu1 %vm297_vm0, %v12389_v6 }
 0x4b4   : > { %9490 = vmatprep.mubr.msk.f32.mxu1 %vm297_vm0, %v11900_v34  ;;  %v13107_v34 = vld [vmem:[#allocation22_spill] sm:$0xff] }
 0x4b7   : > { %9491 = vmatmul.mubr.msk.f32.vlgmr.msra.gmra.mrb[0].mxu1 %vm297_vm0, %v11906_v25  ;;  %v13108_v25 = vld [vmem:[#allocation23_spill] sm:$0xff] }
 0x4b8   : > { %9539 = vmatpush3.msra.mxu1 %v5898_v28  ;;  %9493 = vmatprep.mubr.msk.f32.mxu1 %vm297_vm0, %v11912_v12  ;;  %v12453_v12 = vld [vmem:[#allocation3 + $0x181] sm:$0xff]  ;;  %v13116_v28 = vld [vmem:[#allocation19_spill] sm:$0xff] }
 0x4b9   : > { %9588 = vmatprep.subr.mxu1 %v6286_v32 }
 0x4bb   : > { %9494 = vmatmul.mubr.msk.f32.gmra.mrb[2].mxu1 %vm297_vm0, %v11918_v41  ;;  %v12457_v41 = vld [vmem:[#allocation3 + $0x189] sm:$0xff] }
 0x4bc   : > { %9496 = vmatprep.mubr.msk.f32.mxu1 %vm297_vm0, %v11924_v49  ;;  %v13109_v49 = vld [vmem:[#allocation37_spill] sm:$0xff] }
 0x4bf   : > { %9497 = vmatmul.mubr.msk.f32.gmra.mrb[4].mxu1 %vm297_vm0, %v11930_v51  ;;  %v6673_v51 = vld [vmem:[#allocation10 + $0x38] sm:$0xff] }
 0x4c0   : > { %9499 = vmatprep.mubr.msk.f32.mxu1 %vm297_vm0, %v11936_v57  ;;  %v13110_v57 = vld [vmem:[#allocation40_spill] sm:$0xff] }
 0x4c3   : > { %9500 = vmatmul.mubr.msk.f32.gmra.mrb[6].mxu1 %vm297_vm0, %v11942_v59  ;;  %v13111_v59 = vld [vmem:[#allocation41_spill] sm:$0xff] }
 0x4c4   : > { %9502 = vmatprep.mubr.msk.f32.mxu1 %vm297_vm0, %v11948_v16  ;;  %v13112_v16 = vld [vmem:[#allocation42_spill] sm:$0xff] }
 0x4c7   : > { %9503 = vmatmul.mubr.msk.f32.gmra.mrb[8].mxu1 %vm297_vm0, %v11954_v18  ;;  %v13113_v18 = vld [vmem:[#allocation44_spill] sm:$0xff] }
 0x4c8   : > { %9505 = vmatprep.mubr.msk.f32.mxu1 %vm297_vm0, %v11960_v23  ;;  %v13114_v23 = vld [vmem:[#allocation46_spill] sm:$0xff] }
 0x4cb   : > { %9506 = vmatmul.mubr.msk.f32.gmra.mrb[10].mxu1 %vm297_vm0, %v11966_v27  ;;  %v13115_v27 = vld [vmem:[#allocation18_spill] sm:$0xff] }
 0x4cc   : > { %9508 = vmatprep.mubr.msk.f32.mxu1 %vm297_vm0, %v11972_v42 }
 0x4cf   : > { %9509 = vmatmul.mubr.msk.f32.gmra.mrb[12].mxu1 %vm297_vm0, %v11978_v2 }
 0x4d0   : > { %9511 = vmatprep.mubr.msk.f32.mxu1 %vm297_vm0, %v11984_v4 }
 0x4d3   : > { %9512 = vmatmul.mubr.msk.f32.gmra.mrb[14].mxu1 %vm297_vm0, %v11990_v31 }
 0x4d4   : > { %9514 = vmatprep.mubr.msk.f32.mxu1 %vm297_vm0, %v11996_v8 }
 0x4d7   : > { %9515 = vmatmul.mubr.msk.f32.gmra.mrb[16].mxu1 %vm297_vm0, %v12002_v10 }
 0x4d8   : > { %9517 = vmatprep.mubr.msk.f32.mxu1 %vm297_vm0, %v12008_v47 }
 0x4db   : > { %9518 = vmatmul.mubr.msk.f32.gmra.mrb[18].mxu1 %vm297_vm0, %v12014_v50 }
 0x4dc   : > { %9520 = vmatprep.mubr.msk.f32.mxu1 %vm297_vm0, %v12020_v58 }
 0x4df   : > { %9521 = vmatmul.mubr.msk.f32.gmra.mrb[20].mxu1 %vm297_vm0, %v12026_v61 }
 0x4e0   : > { %9523 = vmatprep.mubr.msk.f32.mxu1 %vm297_vm0, %v12032_v20 }
 0x4e3   : > { %9524 = vmatmul.mubr.msk.f32.gmra.mrb[22].mxu1 %vm297_vm0, %v12038_v21 }
 0x4e4   : > { %9526 = vmatprep.mubr.msk.f32.mxu1 %vm297_vm0, %v12044_v37 }
 0x4e7   : > { %9527 = vmatmul.mubr.msk.f32.gmra.mrb[24].mxu1 %vm297_vm0, %v12050_v43 }
 0x4e8   : > { %9529 = vmatprep.mubr.msk.f32.mxu1 %vm297_vm0, %v12055_v39 }
 0x4eb   : > { %9530 = vmatmul.mubr.msk.f32.gmra.mrb[26].mxu1 %vm297_vm0, %v12060_v24 }
 0x4ec   : > { %9532 = vmatprep.mubr.msk.f32.mxu1 %vm297_vm0, %v13107_v34 }
 0x4ef   : > { %9533 = vmatmul.mubr.msk.f32.gmra.mrb[28].mxu1 %vm297_vm0, %v13108_v25 }
 0x4f0   : > { %9535 = vmatprep.mubr.msk.f32.mxu1 %vm297_vm0, %v12453_v12 }
 0x4f3   : > { %9536 = vmatmul.mubr.msk.f32.gmra.mrb[30].mxu1 %vm297_vm0, %v12457_v41 }
 0x4f4   : > { %9540 = vmatprep.mubr.msk.f32.mxu1 %vm297_vm0, %v13109_v49  ;;  %v13118_v49 = vld [vmem:[#allocation21_spill] sm:$0xff] }
 0x4f7   : > { %9541 = vmatmul.mubr.msk.f32.vlgmr.msra.gmra.mrb[0].mxu1 %vm297_vm0, %v13110_v57  ;;  %v13119_v57 = vld [vmem:[#allocation48_spill] sm:$0xff] }
 0x4f8   : > { %9589 = vmatpush3.msra.mxu1 %v6286_v32  ;;  %9543 = vmatprep.mubr.msk.f32.mxu1 %vm297_vm0, %v13111_v59  ;;  %v13117_v32 = vld [vmem:[#allocation20_spill] sm:$0xff] }
 0x4f9   : > { %9638 = vmatprep.subr.mxu1 %v6673_v51 }
 0x4fb   : > { %9544 = vmatmul.mubr.msk.f32.gmra.mrb[2].mxu1 %vm297_vm0, %v13112_v16  ;;  %v13120_v16 = vld [vmem:[#allocation49_spill] sm:$0xff] }
 0x4fc   : > { %9546 = vmatprep.mubr.msk.f32.mxu1 %vm297_vm0, %v13113_v18  ;;  %v13121_v18 = vld [vmem:[#allocation24_spill] sm:$0xff] }
 0x4ff   : > { %9547 = vmatmul.mubr.msk.f32.gmra.mrb[4].mxu1 %vm297_vm0, %v13114_v23  ;;  %v13122_v23 = vld [vmem:[#allocation25_spill] sm:$0xff] }
 0x500   : > { %9549 = vmatprep.mubr.msk.f32.mxu1 %vm297_vm0, %v13115_v27  ;;  %v13123_v27 = vld [vmem:[#allocation26_spill] sm:$0xff] }
 0x503   : > { %9550 = vmatmul.mubr.msk.f32.gmra.mrb[6].mxu1 %vm297_vm0, %v13116_v28  ;;  %v13124_v28 = vld [vmem:[#allocation27_spill] sm:$0xff] }
 0x504   : > { %9552 = vmatprep.mubr.msk.f32.mxu1 %vm297_vm0, %v13117_v32  ;;  %v13125_v32 = vld [vmem:[#allocation28_spill] sm:$0xff] }
 0x507   : > { %9553 = vmatmul.mubr.msk.f32.gmra.mrb[8].mxu1 %vm297_vm0, %v13118_v49  ;;  %v13126_v49 = vld [vmem:[#allocation29_spill] sm:$0xff] }
 0x508   : > { %9555 = vmatprep.mubr.msk.f32.mxu1 %vm297_vm0, %v13119_v57  ;;  %v13127_v57 = vld [vmem:[#allocation30_spill] sm:$0xff] }
 0x50b   : > { %9556 = vmatmul.mubr.msk.f32.gmra.mrb[10].mxu1 %vm297_vm0, %v13120_v16  ;;  %v13128_v16 = vld [vmem:[#allocation31_spill] sm:$0xff] }
 0x50c   : > { %9558 = vmatprep.mubr.msk.f32.mxu1 %vm297_vm0, %v13121_v18  ;;  %v13129_v18 = vld [vmem:[#allocation32_spill] sm:$0xff] }
 0x50f   : > { %9559 = vmatmul.mubr.msk.f32.gmra.mrb[12].mxu1 %vm297_vm0, %v13122_v23  ;;  %v13130_v23 = vld [vmem:[#allocation33_spill] sm:$0xff] }
 0x510   : > { %9561 = vmatprep.mubr.msk.f32.mxu1 %vm297_vm0, %v13123_v27  ;;  %v13131_v27 = vld [vmem:[#allocation34_spill] sm:$0xff] }
 0x513   : > { %9562 = vmatmul.mubr.msk.f32.gmra.mrb[14].mxu1 %vm297_vm0, %v13124_v28  ;;  %v13132_v28 = vld [vmem:[#allocation35_spill] sm:$0xff] }
 0x514   : > { %9564 = vmatprep.mubr.msk.f32.mxu1 %vm297_vm0, %v13125_v32  ;;  %v13133_v32 = vld [vmem:[#allocation36_spill] sm:$0xff] }
 0x517   : > { %9565 = vmatmul.mubr.msk.f32.gmra.mrb[16].mxu1 %vm297_vm0, %v13126_v49  ;;  %v13134_v49 = vld [vmem:[#allocation38_spill] sm:$0xff] }
 0x518   : > { %9567 = vmatprep.mubr.msk.f32.mxu1 %vm297_vm0, %v13127_v57 }
 0x51b   : > { %9568 = vmatmul.mubr.msk.f32.gmra.mrb[18].mxu1 %vm297_vm0, %v13128_v16 }
 0x51c   : > { %9570 = vmatprep.mubr.msk.f32.mxu1 %vm297_vm0, %v13129_v18 }
 0x51f   : > { %9571 = vmatmul.mubr.msk.f32.gmra.mrb[20].mxu1 %vm297_vm0, %v13130_v23 }
 0x520   : > { %9573 = vmatprep.mubr.msk.f32.mxu1 %vm297_vm0, %v13131_v27  ;;  %v12521_v27 = vld [vmem:[#allocation3 + $0x182] sm:$0xff] }
 0x523   : > { %9574 = vmatmul.mubr.msk.f32.gmra.mrb[22].mxu1 %vm297_vm0, %v13132_v28 }
 0x524   : > { %9576 = vmatprep.mubr.msk.f32.mxu1 %vm297_vm0, %v13133_v32  ;;  %v12525_v32 = vld [vmem:[#allocation3 + $0x18a] sm:$0xff] }
 0x527   : > { %9577 = vmatmul.mubr.msk.f32.gmra.mrb[24].mxu1 %vm297_vm0, %v13134_v49 }
 0x528   : > { %9579 = vmatprep.mubr.msk.f32.mxu1 %vm297_vm0, %v12308_v5 }
 0x52b   : > { %9580 = vmatmul.mubr.msk.f32.gmra.mrb[26].mxu1 %vm297_vm0, %v12312_v40  ;;  %v7060_v40 = vld [vmem:[#allocation10 + $0x40] sm:$0xff] }
 0x52c   : > { %9582 = vmatprep.mubr.msk.f32.mxu1 %vm297_vm0, %v12316_v1 }
 0x52f   : > { %9583 = vmatmul.mubr.msk.f32.gmra.mrb[28].mxu1 %vm297_vm0, %v12320_v33 }
 0x530   : > { %9585 = vmatprep.mubr.msk.f32.mxu1 %vm297_vm0, %v12521_v27 }
 0x533   : > { %9586 = vmatmul.mubr.msk.f32.gmra.mrb[30].mxu1 %vm297_vm0, %v12525_v32 }
 0x534   : > { %9590 = vmatprep.mubr.msk.f32.mxu1 %vm297_vm0, %v12086_v7  ;;  %v6283_v7 = vld [vmem:[#allocation3 + $0x198] sm:$0xff] }
 0x537   : > { %9591 = vmatmul.mubr.msk.f32.vlgmr.msra.gmra.mrb[0].mxu1 %vm297_vm0, %v12090_v9  ;;  %v6284_v9 = vld [vmem:[#allocation3 + $0x1a0] sm:$0xff] }
 0x538   : > { %9639 = vmatpush3.msra.mxu1 %v6673_v51  ;;  %9593 = vmatprep.mubr.msk.f32.mxu1 %vm297_vm0, %v12094_v62  ;;  %v6640_v62 = vld [vmem:[#allocation3 + $0x31] sm:$0xff] }
 0x539   : > { %9688 = vmatprep.subr.mxu1 %v7060_v40 }
 0x53b   : > { %9594 = vmatmul.mubr.msk.f32.gmra.mrb[2].mxu1 %vm297_vm0, %v12098_v11  ;;  %v6641_v11 = vld [vmem:[#allocation3 + $0x39] sm:$0xff] }
 0x53c   : > { %9596 = vmatprep.mubr.msk.f32.mxu1 %vm297_vm0, %v12102_v35  ;;  %v6642_v35 = vld [vmem:[#allocation3 + $0x49] sm:$0xff] }
 0x53f   : > { %9597 = vmatmul.mubr.msk.f32.gmra.mrb[4].mxu1 %vm297_vm0, %v12106_v44  ;;  %v6643_v44 = vld [vmem:[#allocation3 + $0x51] sm:$0xff] }
 0x540   : > { %9599 = vmatprep.mubr.msk.f32.mxu1 %vm297_vm0, %v12110_v45  ;;  %v6644_v45 = vld [vmem:[#allocation3 + $0x61] sm:$0xff] }
 0x543   : > { %9600 = vmatmul.mubr.msk.f32.gmra.mrb[6].mxu1 %vm297_vm0, %v12114_v46  ;;  %v6645_v46 = vld [vmem:[#allocation3 + $0x69] sm:$0xff] }
 0x544   : > { %9602 = vmatprep.mubr.msk.f32.mxu1 %vm297_vm0, %v12118_v48  ;;  %v6646_v48 = vld [vmem:[#allocation3 + $0x79] sm:$0xff] }
 0x547   : > { %9603 = vmatmul.mubr.msk.f32.gmra.mrb[8].mxu1 %vm297_vm0, %v12122_v52  ;;  %v6647_v52 = vld [vmem:[#allocation3 + $0x81] sm:$0xff] }
 0x548   : > { %9605 = vmatprep.mubr.msk.f32.mxu1 %vm297_vm0, %v12126_v53  ;;  %v6648_v53 = vld [vmem:[#allocation3 + $0x91] sm:$0xff] }
 0x54b   : > { %9606 = vmatmul.mubr.msk.f32.gmra.mrb[10].mxu1 %vm297_vm0, %v12130_v54  ;;  %v6649_v54 = vld [vmem:[#allocation3 + $0x99] sm:$0xff] }
 0x54c   : > { %9608 = vmatprep.mubr.msk.f32.mxu1 %vm297_vm0, %v12134_v55  ;;  %v13149_v55 = vld [vmem:[#allocation29_spill] sm:$0xff] }
 0x54f   : > { %9609 = vmatmul.mubr.msk.f32.gmra.mrb[12].mxu1 %vm297_vm0, %v12138_v56  ;;  %v13150_v56 = vld [vmem:[#allocation34_spill] sm:$0xff] }
 0x550   : > { %9611 = vmatprep.mubr.msk.f32.mxu1 %vm297_vm0, %v12142_v60  ;;  %v13151_v60 = vld [vmem:[#allocation36_spill] sm:$0xff] }
 0x553   : > { %9612 = vmatmul.mubr.msk.f32.gmra.mrb[14].mxu1 %vm297_vm0, %v12146_v13  ;;  %v13152_v13 = vld [vmem:[#allocation39_spill] sm:$0xff] }
 0x554   : > { %9614 = vmatprep.mubr.msk.f32.mxu1 %vm297_vm0, %v12150_v14  ;;  %v7057_v14 = vld [vmem:[#allocation3 + $0x19a] sm:$0xff] }
 0x557   : > { %9615 = vmatmul.mubr.msk.f32.gmra.mrb[16].mxu1 %vm297_vm0, %v12154_v15  ;;  %v12705_v15 = vld [vmem:[#allocation12] ss:$0 sm:$0xff] }
 0x558   : > { %9617 = vmatprep.mubr.msk.f32.mxu1 %vm297_vm0, %v12158_v17 }
 0x55b   : > { %9618 = vmatmul.mubr.msk.f32.gmra.mrb[18].mxu1 %vm297_vm0, %v12162_v19 }
 0x55c   : > { %9620 = vmatprep.mubr.msk.f32.mxu1 %vm297_vm0, %v12166_v63 }
 0x55f   : > { %9621 = vmatmul.mubr.msk.f32.gmra.mrb[20].mxu1 %vm297_vm0, %v12170_v22 }
 0x560   : > { %9623 = vmatprep.mubr.msk.f32.mxu1 %vm297_vm0, %v12174_v26 }
 0x563   : > { %9624 = vmatmul.mubr.msk.f32.gmra.mrb[22].mxu1 %vm297_vm0, %v12178_v29 }
 0x564   : > { %9626 = vmatprep.mubr.msk.f32.mxu1 %vm297_vm0, %v12182_v30 }
 0x567   : > { %9627 = vmatmul.mubr.msk.f32.gmra.mrb[24].mxu1 %vm297_vm0, %v12186_v36 }
 0x568   : > { %9629 = vmatprep.mubr.msk.f32.mxu1 %vm297_vm0, %v12190_v38 }
 0x56b   : > { %9630 = vmatmul.mubr.msk.f32.gmra.mrb[26].mxu1 %vm297_vm0, %v12194_v3 }
 0x56c   : > { %9632 = vmatprep.mubr.msk.f32.mxu1 %vm297_vm0, %v12385_v0 }
 0x56f   : > { %9633 = vmatmul.mubr.msk.f32.gmra.mrb[28].mxu1 %vm297_vm0, %v12389_v6 }
 0x570   : > { %9635 = vmatprep.mubr.msk.f32.mxu1 %vm297_vm0, %v6283_v7 }
 0x573   : > { %9636 = vmatmul.mubr.msk.f32.gmra.mrb[30].mxu1 %vm297_vm0, %v6284_v9 }
 0x574   : > { %9640 = vmatprep.mubr.msk.f32.mxu1 %vm297_vm0, %v6640_v62 }
 0x577   : > { %9641 = vmatmul.mubr.msk.f32.vlgmr.msra.gmra.mrb[0].mxu1 %vm297_vm0, %v6641_v11 }
 0x578   : > { %9689 = vmatpush3.msra.mxu1 %v7060_v40  ;;  %9643 = vmatprep.mubr.msk.f32.mxu1 %vm297_vm0, %v6642_v35 }
 0x57b   : > { %9644 = vmatmul.mubr.msk.f32.gmra.mrb[2].mxu1 %vm297_vm0, %v6643_v44 }
 0x57c   : > { %9646 = vmatprep.mubr.msk.f32.mxu1 %vm297_vm0, %v6644_v45 }
 0x57f   : > { %9647 = vmatmul.mubr.msk.f32.gmra.mrb[4].mxu1 %vm297_vm0, %v6645_v46 }
 0x580   : > { %9649 = vmatprep.mubr.msk.f32.mxu1 %vm297_vm0, %v6646_v48 }
 0x583   : > { %9650 = vmatmul.mubr.msk.f32.gmra.mrb[6].mxu1 %vm297_vm0, %v6647_v52 }
 0x584   : > { %9652 = vmatprep.mubr.msk.f32.mxu1 %vm297_vm0, %v6648_v53 }
 0x587   : > { %9653 = vmatmul.mubr.msk.f32.gmra.mrb[8].mxu1 %vm297_vm0, %v6649_v54 }
 0x588   : > { %9655 = vmatprep.mubr.msk.f32.mxu1 %vm297_vm0, %v11972_v42  ;;  %v6670_v42 = vld [vmem:[#allocation3 + $0x199] sm:$0xff] }
 0x58b   : > { %9656 = vmatmul.mubr.msk.f32.gmra.mrb[10].mxu1 %vm297_vm0, %v11978_v2  ;;  %v6671_v2 = vld [vmem:[#allocation3 + $0x1a1] sm:$0xff] }
 0x58c   : > { %9658 = vmatprep.mubr.msk.f32.mxu1 %vm297_vm0, %v11984_v4  ;;  %v13135_v4 = vld [vmem:[#allocation42_spill] sm:$0xff] }
 0x58f   : > { %9659 = vmatmul.mubr.msk.f32.gmra.mrb[12].mxu1 %vm297_vm0, %v11990_v31  ;;  %v13136_v31 = vld [vmem:[#allocation44_spill] sm:$0xff] }
 0x590   : > { %9661 = vmatprep.mubr.msk.f32.mxu1 %vm297_vm0, %v11996_v8  ;;  %v13137_v8 = vld [vmem:[#allocation46_spill] sm:$0xff] }
 0x593   : > { %9662 = vmatmul.mubr.msk.f32.gmra.mrb[14].mxu1 %vm297_vm0, %v12002_v10  ;;  %v13138_v10 = vld [vmem:[#allocation18_spill] sm:$0xff] }
 0x594   : > { %9664 = vmatprep.mubr.msk.f32.mxu1 %vm297_vm0, %v12008_v47  ;;  %v13139_v47 = vld [vmem:[#allocation19_spill] sm:$0xff] }
 0x597   : > { %9665 = vmatmul.mubr.msk.f32.gmra.mrb[16].mxu1 %vm297_vm0, %v12014_v50  ;;  %v13140_v50 = vld [vmem:[#allocation20_spill] sm:$0xff] }
 0x598   : > { %9667 = vmatprep.mubr.msk.f32.mxu1 %vm297_vm0, %v12020_v58  ;;  %v13141_v58 = vld [vmem:[#allocation21_spill] sm:$0xff] }
 0x59b   : > { %9668 = vmatmul.mubr.msk.f32.gmra.mrb[18].mxu1 %vm297_vm0, %v12026_v61  ;;  %v13142_v61 = vld [vmem:[#allocation48_spill] sm:$0xff] }
 0x59c   : > { %9670 = vmatprep.mubr.msk.f32.mxu1 %vm297_vm0, %v12032_v20  ;;  %v13143_v20 = vld [vmem:[#allocation49_spill] sm:$0xff] }
 0x59f   : > { %9671 = vmatmul.mubr.msk.f32.gmra.mrb[20].mxu1 %vm297_vm0, %v12038_v21  ;;  %v13144_v21 = vld [vmem:[#allocation24_spill] sm:$0xff] }
 0x5a0   : > { %9673 = vmatprep.mubr.msk.f32.mxu1 %vm297_vm0, %v12044_v37  ;;  %v13145_v37 = vld [vmem:[#allocation25_spill] sm:$0xff] }
 0x5a3   : > { %9674 = vmatmul.mubr.msk.f32.gmra.mrb[22].mxu1 %vm297_vm0, %v12050_v43  ;;  %v13146_v43 = vld [vmem:[#allocation26_spill] sm:$0xff] }
 0x5a4   : > { %9676 = vmatprep.mubr.msk.f32.mxu1 %vm297_vm0, %v12055_v39  ;;  %v13147_v39 = vld [vmem:[#allocation27_spill] sm:$0xff] }
 0x5a7   : > { %9677 = vmatmul.mubr.msk.f32.gmra.mrb[24].mxu1 %vm297_vm0, %v12060_v24  ;;  %v13148_v24 = vld [vmem:[#allocation28_spill] sm:$0xff] }
 0x5a8   : > { %9679 = vmatprep.mubr.msk.f32.mxu1 %vm297_vm0, %v13107_v34 }
 0x5ab   : > { %9680 = vmatmul.mubr.msk.f32.gmra.mrb[26].mxu1 %vm297_vm0, %v13108_v25 }
 0x5ac   : > { %9682 = vmatprep.mubr.msk.f32.mxu1 %vm297_vm0, %v12453_v12 }
 0x5af   : > { %9683 = vmatmul.mubr.msk.f32.gmra.mrb[28].mxu1 %vm297_vm0, %v12457_v41 }
 0x5b0   : > { %9685 = vmatprep.mubr.msk.f32.mxu1 %vm297_vm0, %v6670_v42 }
 0x5b3   : > { %9686 = vmatmul.mubr.msk.f32.gmra.mrb[30].mxu1 %vm297_vm0, %v6671_v2 }
 0x5b4   : > { %9690 = vmatprep.mubr.msk.f32.mxu1 %vm297_vm0, %v13111_v59 }
 0x5b7   : > { %9691 = vmatmul.mubr.msk.f32.vlgmr.msra.gmra.mrb[0].mxu1 %vm297_vm0, %v13135_v4 }
 0x5b8   : > { %9693 = vmatprep.mubr.msk.f32.mxu1 %vm297_vm0, %v13136_v31 }
 0x5bb   : > { %9694 = vmatmul.mubr.msk.f32.gmra.mrb[2].mxu1 %vm297_vm0, %v13137_v8 }
 0x5bc   : > { %9696 = vmatprep.mubr.msk.f32.mxu1 %vm297_vm0, %v13138_v10 }
 0x5bf   : > { %9697 = vmatmul.mubr.msk.f32.gmra.mrb[4].mxu1 %vm297_vm0, %v13139_v47 }
 0x5c0   : > { %9699 = vmatprep.mubr.msk.f32.mxu1 %vm297_vm0, %v13140_v50 }
 0x5c3   : > { %9700 = vmatmul.mubr.msk.f32.gmra.mrb[6].mxu1 %vm297_vm0, %v13141_v58 }
 0x5c4   : > { %9702 = vmatprep.mubr.msk.f32.mxu1 %vm297_vm0, %v13142_v61 }
 0x5c7   : > { %9703 = vmatmul.mubr.msk.f32.gmra.mrb[8].mxu1 %vm297_vm0, %v13143_v20 }
 0x5c8   : > { %9705 = vmatprep.mubr.msk.f32.mxu1 %vm297_vm0, %v13144_v21 }
 0x5cb   : > { %9706 = vmatmul.mubr.msk.f32.gmra.mrb[10].mxu1 %vm297_vm0, %v13145_v37 }
 0x5cc   : > { %9708 = vmatprep.mubr.msk.f32.mxu1 %vm297_vm0, %v13146_v43 }
 0x5cf   : > { %9709 = vmatmul.mubr.msk.f32.gmra.mrb[12].mxu1 %vm297_vm0, %v13147_v39 }
 0x5d0   : > { %9711 = vmatprep.mubr.msk.f32.mxu1 %vm297_vm0, %v13148_v24 }
 0x5d3   : > { %9712 = vmatmul.mubr.msk.f32.gmra.mrb[14].mxu1 %vm297_vm0, %v13149_v55 }
 0x5d4   : > { %9714 = vmatprep.mubr.msk.f32.mxu1 %vm297_vm0, %v13127_v57 }
 0x5d7   : > { %9715 = vmatmul.mubr.msk.f32.gmra.mrb[16].mxu1 %vm297_vm0, %v13128_v16 }
 0x5d8   : > { %9717 = vmatprep.mubr.msk.f32.mxu1 %vm297_vm0, %v13129_v18 }
 0x5db   : > { %9718 = vmatmul.mubr.msk.f32.gmra.mrb[18].mxu1 %vm297_vm0, %v13130_v23 }
 0x5dc   : > { %9720 = vmatprep.mubr.msk.f32.mxu1 %vm297_vm0, %v13150_v56 }
 0x5df   : > { %9721 = vmatmul.mubr.msk.f32.gmra.mrb[20].mxu1 %vm297_vm0, %v13132_v28 }
 0x5e0   : > { %9723 = vmatprep.mubr.msk.f32.mxu1 %vm297_vm0, %v13151_v60 }
 0x5e3   : > { %9724 = vmatmul.mubr.msk.f32.gmra.mrb[22].mxu1 %vm297_vm0, %v13134_v49 }
 0x5e4   : > { %9726 = vmatprep.mubr.msk.f32.mxu1 %vm297_vm0, %v12308_v5  ;;  %v7058_v5 = vld [vmem:[#allocation3 + $0x1a2] sm:$0xff] }
 0x5e7   : > { %9727 = vmatmul.mubr.msk.f32.gmra.mrb[24].mxu1 %vm297_vm0, %v13152_v13 }
 0x5e8   : > { %9729 = vmatprep.mubr.msk.f32.mxu1 %vm297_vm0, %v12316_v1 }
 0x5eb   : > { %9730 = vmatmul.mubr.msk.f32.gmra.mrb[26].mxu1 %vm297_vm0, %v12320_v33 }
 0x5ec   : > { %9732 = vmatprep.mubr.msk.f32.mxu1 %vm297_vm0, %v12521_v27 }
 0x5ef   : > { %9733 = vmatmul.mubr.msk.f32.gmra.mrb[28].mxu1 %vm297_vm0, %v12525_v32 }
 0x5f0   : > { %9735 = vmatprep.mubr.msk.f32.mxu1 %vm297_vm0, %v7057_v14 }
 0x5f3   : > { %9736 = vmatmul.mubr.msk.f32.gmra.mrb[30].mxu1 %vm297_vm0, %v7058_v5 }
 0x68a   : > { %v9692_v17 = vpop.f32.mrb[0].mxu1 }
 0x68b   : > { %v7422_v19 = vadd.f32 %v9692_v17, %v12705_v15  ;;  %v7223_v63 = vpop.f32.mrb[1].mxu1 }
 0x68c   : > { %v7421_v22 = vadd.f32 %v12705_v15, %v7223_v63 }
 0x68d   : > { %v7454_v26 = vmax.f32 %v7422_v19, 0.0 }
 0x68e   : > { %v7453_v29 = vmax.f32 %v7421_v22, 0.0  ;;  %v9695_v30 = vpop.f32.mrb[2].mxu1 }
 0x68f   : > { %7486 = vst.msk [vmem:[%s12711_s24 + $0x8] sm:$0xff] %vm297_vm0, %v7454_v26  ;;  %v7424_v36 = vadd.f32 %v9695_v30, %v12705_v15  ;;  %v7233_v38 = vpop.f32.mrb[3].mxu1 }
 0x690   : > { %7485 = vst.msk [vmem:[%s12711_s24] sm:$0xff] %vm297_vm0, %v7453_v29  ;;  %v7423_v3 = vadd.f32 %v12705_v15, %v7233_v38 }
 0x691   : > { %v7456_v40 = vmax.f32 %v7424_v36, 0.0 }
 0x692   : > { %v7455_v1 = vmax.f32 %v7423_v3, 0.0  ;;  %v9698_v33 = vpop.f32.mrb[4].mxu1 }
 0x693   : > { %7488 = vst.msk [vmem:[%s12711_s24 + $0x18] sm:$0xff] %vm297_vm0, %v7456_v40  ;;  %v7426_v0 = vadd.f32 %v9698_v33, %v12705_v15  ;;  %v7243_v6 = vpop.f32.mrb[5].mxu1 }
 0x694   : > { %7487 = vst.msk [vmem:[%s12711_s24 + $0x10] sm:$0xff] %vm297_vm0, %v7455_v1  ;;  %v7425_v34 = vadd.f32 %v12705_v15, %v7243_v6 }
 0x695   : > { %v7458_v25 = vmax.f32 %v7426_v0, 0.0 }
 0x696   : > { %v7457_v12 = vmax.f32 %v7425_v34, 0.0  ;;  %v9701_v41 = vpop.f32.mrb[6].mxu1 }
 0x697   : > { %7490 = vst.msk [vmem:[%s12711_s24 + $0x28] sm:$0xff] %vm297_vm0, %v7458_v25  ;;  %v7428_v51 = vadd.f32 %v9701_v41, %v12705_v15  ;;  %v7253_v59 = vpop.f32.mrb[7].mxu1 }
 0x698   : > { %7489 = vst.msk [vmem:[%s12711_s24 + $0x20] sm:$0xff] %vm297_vm0, %v7457_v12  ;;  %v7427_v16 = vadd.f32 %v12705_v15, %v7253_v59 }
 0x699   : > { %v7460_v18 = vmax.f32 %v7428_v51, 0.0 }
 0x69a   : > { %v7459_v23 = vmax.f32 %v7427_v16, 0.0  ;;  %v9704_v27 = vpop.f32.mrb[8].mxu1 }
 0x69b   : > { %7492 = vst.msk [vmem:[%s12711_s24 + $0x38] sm:$0xff] %vm297_vm0, %v7460_v18  ;;  %v7430_v28 = vadd.f32 %v9704_v27, %v12705_v15  ;;  %v7263_v32 = vpop.f32.mrb[9].mxu1 }
 0x69c   : > { %7491 = vst.msk [vmem:[%s12711_s24 + $0x30] sm:$0xff] %vm297_vm0, %v7459_v23  ;;  %v7429_v49 = vadd.f32 %v12705_v15, %v7263_v32 }
 0x69d   : > { %v7462_v57 = vmax.f32 %v7430_v28, 0.0 }
 0x69e   : > { %v7461_v7 = vmax.f32 %v7429_v49, 0.0  ;;  %v9707_v9 = vpop.f32.mrb[10].mxu1 }
 0x69f   : > { %7494 = vst.msk [vmem:[%s12711_s24 + $0x48] sm:$0xff] %vm297_vm0, %v7462_v57  ;;  %v7432_v62 = vadd.f32 %v9707_v9, %v12705_v15  ;;  %v7273_v11 = vpop.f32.mrb[11].mxu1 }
 0x6a0   : > { %7493 = vst.msk [vmem:[%s12711_s24 + $0x40] sm:$0xff] %vm297_vm0, %v7461_v7  ;;  %v7431_v35 = vadd.f32 %v12705_v15, %v7273_v11 }
 0x6a1   : > { %v7464_v44 = vmax.f32 %v7432_v62, 0.0 }
 0x6a2   : > { %v7463_v45 = vmax.f32 %v7431_v35, 0.0  ;;  %v9710_v46 = vpop.f32.mrb[12].mxu1 }
 0x6a3   : > { %7496 = vst.msk [vmem:[%s12711_s24 + $0x58] sm:$0xff] %vm297_vm0, %v7464_v44  ;;  %v7434_v48 = vadd.f32 %v9710_v46, %v12705_v15  ;;  %v7283_v52 = vpop.f32.mrb[13].mxu1 }
 0x6a4   : > { %7495 = vst.msk [vmem:[%s12711_s24 + $0x50] sm:$0xff] %vm297_vm0, %v7463_v45  ;;  %v7433_v53 = vadd.f32 %v12705_v15, %v7283_v52 }
 0x6a5   : > { %v7466_v54 = vmax.f32 %v7434_v48, 0.0 }
 0x6a6   : > { %v7465_v42 = vmax.f32 %v7433_v53, 0.0  ;;  %v9713_v2 = vpop.f32.mrb[14].mxu1 }
 0x6a7   : > { %7498 = vst.msk [vmem:[%s12711_s24 + $0x68] sm:$0xff] %vm297_vm0, %v7466_v54  ;;  %v7436_v4 = vadd.f32 %v9713_v2, %v12705_v15  ;;  %v7293_v31 = vpop.f32.mrb[15].mxu1 }
 0x6a8   : > { %7497 = vst.msk [vmem:[%s12711_s24 + $0x60] sm:$0xff] %vm297_vm0, %v7465_v42  ;;  %v7435_v8 = vadd.f32 %v12705_v15, %v7293_v31 }
 0x6a9   : > { %v7468_v10 = vmax.f32 %v7436_v4, 0.0 }
 0x6aa   : > { %v7467_v47 = vmax.f32 %v7435_v8, 0.0  ;;  %v9716_v50 = vpop.f32.mrb[16].mxu1 }
 0x6ab   : > { %7500 = vst.msk [vmem:[%s12711_s24 + $0x78] sm:$0xff] %vm297_vm0, %v7468_v10  ;;  %v7438_v58 = vadd.f32 %v9716_v50, %v12705_v15  ;;  %v7303_v61 = vpop.f32.mrb[17].mxu1 }
 0x6ac   : > { %7499 = vst.msk [vmem:[%s12711_s24 + $0x70] sm:$0xff] %vm297_vm0, %v7467_v47  ;;  %v7437_v20 = vadd.f32 %v12705_v15, %v7303_v61 }
 0x6ad   : > { %v7470_v21 = vmax.f32 %v7438_v58, 0.0 }
 0x6ae   : > { %v7469_v37 = vmax.f32 %v7437_v20, 0.0  ;;  %v9719_v43 = vpop.f32.mrb[18].mxu1 }
 0x6af   : > { %7502 = vst.msk [vmem:[%s12711_s24 + $0x88] sm:$0xff] %vm297_vm0, %v7470_v21  ;;  %v7440_v39 = vadd.f32 %v9719_v43, %v12705_v15  ;;  %v7313_v24 = vpop.f32.mrb[19].mxu1 }
 0x6b0   : > { %7501 = vst.msk [vmem:[%s12711_s24 + $0x80] sm:$0xff] %vm297_vm0, %v7469_v37  ;;  %v7439_v55 = vadd.f32 %v12705_v15, %v7313_v24 }
 0x6b1   : > { %v7472_v56 = vmax.f32 %v7440_v39, 0.0 }
 0x6b2   : > { %v7471_v60 = vmax.f32 %v7439_v55, 0.0  ;;  %v9722_v13 = vpop.f32.mrb[20].mxu1 }
 0x6b3   : > { %7504 = vst.msk [vmem:[%s12711_s24 + $0x98] sm:$0xff] %vm297_vm0, %v7472_v56  ;;  %v7442_v14 = vadd.f32 %v9722_v13, %v12705_v15  ;;  %v7323_v5 = vpop.f32.mrb[21].mxu1 }
 0x6b4   : > { %7503 = vst.msk [vmem:[%s12711_s24 + $0x90] sm:$0xff] %vm297_vm0, %v7471_v60  ;;  %v7441_v17 = vadd.f32 %v12705_v15, %v7323_v5 }
 0x6b5   : > { %v7474_v19 = vmax.f32 %v7442_v14, 0.0 }
 0x6b6   : > { %v7473_v63 = vmax.f32 %v7441_v17, 0.0  ;;  %v9725_v22 = vpop.f32.mrb[22].mxu1 }
 0x6b7   : > { %7506 = vst.msk [vmem:[%s12711_s24 + $0xa8] sm:$0xff] %vm297_vm0, %v7474_v19  ;;  %v7444_v26 = vadd.f32 %v9725_v22, %v12705_v15  ;;  %v7333_v29 = vpop.f32.mrb[23].mxu1 }
 0x6b8   : > { %7505 = vst.msk [vmem:[%s12711_s24 + $0xa0] sm:$0xff] %vm297_vm0, %v7473_v63  ;;  %v7443_v30 = vadd.f32 %v12705_v15, %v7333_v29 }
 0x6b9   : > { %v7476_v36 = vmax.f32 %v7444_v26, 0.0 }
 0x6ba   : > { %v7475_v38 = vmax.f32 %v7443_v30, 0.0  ;;  %v9728_v3 = vpop.f32.mrb[24].mxu1 }
 0x6bb   : > { %7508 = vst.msk [vmem:[%s12711_s24 + $0xb8] sm:$0xff] %vm297_vm0, %v7476_v36  ;;  %v7446_v40 = vadd.f32 %v9728_v3, %v12705_v15  ;;  %v7343_v1 = vpop.f32.mrb[25].mxu1 }
 0x6bc   : > { %7507 = vst.msk [vmem:[%s12711_s24 + $0xb0] sm:$0xff] %vm297_vm0, %v7475_v38  ;;  %v7445_v33 = vadd.f32 %v12705_v15, %v7343_v1 }
 0x6bd   : > { %v7478_v0 = vmax.f32 %v7446_v40, 0.0 }
 0x6be   : > { %v7477_v6 = vmax.f32 %v7445_v33, 0.0  ;;  %v9731_v34 = vpop.f32.mrb[26].mxu1 }
 0x6bf   : > { %7510 = vst.msk [vmem:[%s12711_s24 + $0xc8] sm:$0xff] %vm297_vm0, %v7478_v0  ;;  %v7448_v25 = vadd.f32 %v9731_v34, %v12705_v15  ;;  %v7353_v12 = vpop.f32.mrb[27].mxu1 }
 0x6c0   : > { %7509 = vst.msk [vmem:[%s12711_s24 + $0xc0] sm:$0xff] %vm297_vm0, %v7477_v6  ;;  %v7447_v41 = vadd.f32 %v12705_v15, %v7353_v12 }
 0x6c1   : > { %v7480_v51 = vmax.f32 %v7448_v25, 0.0 }
 0x6c2   : > { %v7479_v59 = vmax.f32 %v7447_v41, 0.0  ;;  %v9734_v16 = vpop.f32.mrb[28].mxu1 }
 0x6c3   : > { %7512 = vst.msk [vmem:[%s12711_s24 + $0xd8] sm:$0xff] %vm297_vm0, %v7480_v51  ;;  %v7450_v18 = vadd.f32 %v9734_v16, %v12705_v15  ;;  %v7363_v23 = vpop.f32.mrb[29].mxu1 }
 0x6c4   : > { %7511 = vst.msk [vmem:[%s12711_s24 + $0xd0] sm:$0xff] %vm297_vm0, %v7479_v59  ;;  %v7449_v27 = vadd.f32 %v12705_v15, %v7363_v23 }
 0x6c5   : > { %v7482_v28 = vmax.f32 %v7450_v18, 0.0 }
 0x6c6   : > { %v7481_v32 = vmax.f32 %v7449_v27, 0.0  ;;  %v9737_v49 = vpop.f32.mrb[30].mxu1 }
 0x6c7   : > { %7514 = vst.msk [vmem:[%s12711_s24 + $0xe8] sm:$0xff] %vm297_vm0, %v7482_v28  ;;  %v7452_v57 = vadd.f32 %v9737_v49, %v12705_v15  ;;  %v7373_v7 = vpop.f32.mrb[31].mxu1 }
 0x6c8   : > { %7513 = vst.msk [vmem:[%s12711_s24 + $0xe0] sm:$0xff] %vm297_vm0, %v7481_v32  ;;  %v7451_v9 = vadd.f32 %v12705_v15, %v7373_v7 }
 0x6c9   : > { %v7484_v62 = vmax.f32 %v7452_v57, 0.0 }
 0x6ca   : > { %v7483_v11 = vmax.f32 %v7451_v9, 0.0 }
 0x6cb   : > { %7516 = vst.msk [vmem:[%s12711_s24 + $0xf8] sm:$0xff] %vm297_vm0, %v7484_v62 }
 0x6cc   : > { %7515 = vst.msk [vmem:[%s12711_s24 + $0xf0] sm:$0xff] %vm297_vm0, %v7483_v11 }
 0x6cd   : > { %10497 = shalt.err (!%p10494_p13)
}
 0x6ce   : > { %s10498_s29 = scalar_lea.hbm %s12808_s6, 4096  ;;  %s10502_s13 = scalar_lea.hbm %s12863_s5, 8192 }
 0x6cf   : > { %p10499_p9 = scmp.ne.s32.totalorder %s12808_s6, %s10498_s29  ;;  %p10503_p6 = scmp.lt.u32.totalorder %s12808_s6, %s12863_s5 }
 0x6d0   : > { %p10504_p4 = scmp.lt.u32.totalorder %s10502_s13, %s10498_s29  ;;  %p10506_p3 = scmp.lt.u32.totalorder %s10498_s29, %s12808_s6 }
 0x6d1   : > { %p10500_p0 = pnand %p10499_p9, %p10766_p10 }
 0x6d2   : > { %p10505_p8 = por %p10504_p4, %p10503_p6 }
 0x6d3   : > { %p10501_p11 = pneg %p10500_p0 }
 0x6d4   : > { %p10507_p5 = por %p10506_p3, %p10505_p8 }
 0x6d6   : > { %p10508_p7 = pnand %p10507_p5, %p10501_p11 }
 0x6d8   : > { %10511 = shalt.err (!%p10508_p7)
}
 0x6d9   : > { %s10569_s26 = smov 128   ;;  %s10570_s27 = smov 8  }
 0x6da   : > { %10268 = dma.vmem_to_hbm [thread:$0]  (%p10766_p10), %s12810_s23, 4096, %s12808_s6, %s7518_s22, %s10569_s26, %s10569_s26, %s10570_s27  }
 0x6db PF: > { %s7546_s16 = sand.u32 1, %s10546_s18   ;;  %p13153_p12 = scmp.ne.s32.totalorder %s12981_s25, 0 }
 0x6dc   : > { %p13154_p1 = scmp.ge.s32.totalorder %s10558_s21, 2  ;;  %s7547_s17 = scalar_lea.sflag [#allocation6], %s7546_s16 }
 0x6de   : > { %p10288_p2 = pnand %p13154_p1, %p13153_p12 }
 0x6e0   : > { %10541 = dma.done.wait (!%p10288_p2), %s7547_s17, 4096  }
 0x6e1   : > { %10543 = vsyncadd (!%p10288_p2), %s7547_s17, 4294963200  ;;  %p20_p13 = scmp.ge.s32.totalorder %s10756_s14, 4   ;;  %s13155_s18 = smov %s10550_s19 }
 0x6e2   : > { %s13156_s19 = smov %s10554_s20  ;;  %s13157_s20 = smov %s10772_s10 }
 0x6e3   : > { %s13158_s21 = smov %s10756_s14  ;;  %22 = sbr.rel (!%p20_p13) target bundleno = 7 (0x7), region = 121 }
 0x6ea   :  { %7552 = vsyncpa [#allocation5], 1 }
 0x6eb   :  { %7554 = vsyncpa [#allocation5 + $0x1], 1 }
 0x6ec   :  { %7555 = vsyncpa [#allocation8], 1 }
 0x6ed   :  { %7556 = vsyncpa [#allocation11], 1 }
 0x6ee   :  { %7557 = vsyncpa [#allocation6], 1 }
 0x6ef   :  { %7559 = vsyncpa [#allocation6 + $0x1], 1 }

</bundles_post_ra>
